<compile_context>
chip_gen: v7x
topology: tpu7x:2x2x1
jax: 0.10.0
libtpu: 0.0.40
codegen_flags: <defaults>
</compile_context>

<pallas_src>
import functools

import jax
import jax.numpy as jnp
from jax.experimental import pallas as pl
from jax.experimental.pallas import tpu as pltpu

EPS = 1e-5  # PyTorch InstanceNorm2d default eps


def _round_up(x, m):
    return ((x + m - 1) // m) * m


_VMEM_LIMIT_CACHE = None


def _vmem_limit():
    """Generation-aware scoped-VMEM limit (<=48MiB on v7x, up to 96MiB on v5e/v6e)."""
    global _VMEM_LIMIT_CACHE
    if _VMEM_LIMIT_CACHE is None:
        try:
            cap = int(pltpu.get_tpu_info().vmem_capacity_bytes)
        except Exception:
            cap = 64 * 1024 * 1024
        _VMEM_LIMIT_CACHE = int(min(cap * 3 // 4, 96 * 1024 * 1024))
    return _VMEM_LIMIT_CACHE


# ----------------------------------------------------------------------------
# Pallas kernel: direct (im2col-free) conv, stride 1, bias + activation fused
# ----------------------------------------------------------------------------
def _conv_kernel(x_ref, w_ref, b_ref, mask_ref, o_ref, *, taps, wp, l_out, act):
    """x_ref : (1, Cin, Lx)      bf16, flattened padded sample (lane-dense)
       w_ref : (KH*KW, Cout, Cin) bf16, fully resident weights
       b_ref : (Cout, 1)          f32
       mask_ref: (1, L_out)       f32, 1.0 on valid output columns
       o_ref : (1, Cout, L_out)   bf16, "wide" output (row stride = Wp)"""
    cout = o_ref.shape[1]
    acc = jnp.zeros((cout, l_out), jnp.float32)
    # Static tap loop: each tap is one MXU matmul on a flat-shifted window.
    for t, (ki, kj) in enumerate(taps):
        shift = ki * wp + kj
        win = x_ref[0, :, shift:shift + l_out]                 # (Cin, L_out)
        acc = acc + jnp.dot(w_ref[t], win,
                            preferred_element_type=jnp.float32)
    y = acc + b_ref[...]                                       # (Cout, L_out)
    if act == "relu":
        y = jnp.maximum(y, 0.0)
    elif act == "tanh":
        y = jnp.tanh(y)
    # zero the garbage (wrap-around) columns so downstream IN stats stay exact
    o_ref[0] = (y * mask_ref[...]).astype(o_ref.dtype)


def conv2d_wide(xp, w, b, act="none"):
    """Direct stride-1 conv on a pre-padded NCHW input.

    xp: [N, Cin, Hp, Wp]; w: [KH, KW, Cin, Cout]; b: [Cout].
    Returns (out_wide [N, Cout, OH, Wp] bf16, OW): only columns [0, OW) of each
    output row are valid, the remaining columns are zero.
    """
    n, cin, hp, wp = xp.shape
    kh, kw, cin2, cout = w.shape
    assert cin == cin2
    oh, ow = hp - kh + 1, wp - kw + 1
    l_out = oh * wp
    lx = _round_up(hp * wp + kw, 128)      # room for the last tap's flat overrun

    x_flat = xp.reshape(n, cin, hp * wp).astype(jnp.bfloat16)
    x_flat = jnp.pad(x_flat, ((0, 0), (0, 0), (0, lx - hp * wp)))
    w_t = jnp.transpose(w, (0, 1, 3, 2)).reshape(kh * kw, cout, cin).astype(jnp.bfloat16)
    b2 = b.reshape(cout, 1).astype(jnp.float32)
    col = jnp.arange(l_out, dtype=jnp.int32).reshape(1, l_out)
    mask = ((col % wp) < ow).astype(jnp.float32)
    taps = tuple((ki, kj) for ki in range(kh) for kj in range(kw))

    out = pl.pallas_call(
        functools.partial(_conv_kernel, taps=taps, wp=wp, l_out=l_out, act=act),
        out_shape=jax.ShapeDtypeStruct((n, cout, l_out), jnp.bfloat16),
        grid_spec=pl.GridSpec(
            grid=(n,),
            in_specs=[
                pl.BlockSpec((1, cin, lx), lambda i: (i, 0, 0)),
                pl.BlockSpec((kh * kw, cout, cin), lambda i: (0, 0, 0)),  # resident
                pl.BlockSpec((cout, 1), lambda i: (0, 0)),                # resident
                pl.BlockSpec((1, l_out), lambda i: (0, 0)),               # resident
            ],
            out_specs=pl.BlockSpec((1, cout, l_out), lambda i: (i, 0, 0)),
        ),
        compiler_params=pltpu.CompilerParams(
            dimension_semantics=("parallel",),
            vmem_limit_bytes=_vmem_limit()),
    )(x_flat, w_t, b2, mask)
    return out.reshape(n, cout, oh, wp), ow


# ----------------------------------------------------------------------------
# Pallas kernel: fused single-pass InstanceNorm / AdaIN (+ activation)
# ----------------------------------------------------------------------------
def _in_kernel(x_ref, g_ref, b_ref, mask_ref, o_ref, *, inv_hw, eps, act):
    """x_ref: (1, C, L) bf16 'wide' slab; g/b_ref: (1, C, 1) f32; mask: (1, L) f32."""
    m = mask_ref[...]
    x = x_ref[0].astype(jnp.float32) * m                    # (C, L) f32
    mean = jnp.sum(x, axis=1, keepdims=True) * inv_hw       # (C, 1)
    d = (x - mean) * m                                      # centered, masked
    var = jnp.sum(d * d, axis=1, keepdims=True) * inv_hw    # biased, two-pass
    rstd = jax.lax.rsqrt(var + eps)
    y = d * (rstd * g_ref[0]) + b_ref[0] * m
    if act == "relu":
        y = jnp.maximum(y, 0.0)
    elif act == "tanh":
        y = jnp.tanh(y)
    o_ref[0] = y.astype(o_ref.dtype)


def instance_norm_act(x_wide, w_true, gamma, beta, act="none"):
    """Instance norm over spatial dims with per-sample affine (AdaIN) + activation.

    x_wide: [N, C, H, Wc] (valid columns [0, w_true)); gamma, beta: [N, C]."""
    n, c, hh, wc = x_wide.shape
    l = hh * wc
    x_flat = x_wide.reshape(n, c, l)
    g = gamma.astype(jnp.float32).reshape(n, c, 1)
    b = beta.astype(jnp.float32).reshape(n, c, 1)
    col = jnp.arange(l, dtype=jnp.int32).reshape(1, l)
    mask = ((col % wc) < w_true).astype(jnp.float32)

    y = pl.pallas_call(
        functools.partial(_in_kernel, inv_hw=1.0 / float(hh * w_true),
                          eps=EPS, act=act),
        out_shape=jax.ShapeDtypeStruct((n, c, l), jnp.bfloat16),
        grid_spec=pl.GridSpec(
            grid=(n,),
            in_specs=[
                pl.BlockSpec((1, c, l), lambda i: (i, 0, 0)),
                pl.BlockSpec((1, c, 1), lambda i: (i, 0, 0)),
                pl.BlockSpec((1, c, 1), lambda i: (i, 0, 0)),
                pl.BlockSpec((1, l), lambda i: (0, 0)),
            ],
            out_specs=pl.BlockSpec((1, c, l), lambda i: (i, 0, 0)),
        ),
        compiler_params=pltpu.CompilerParams(
            dimension_semantics=("parallel",),
            vmem_limit_bytes=_vmem_limit()),
    )(x_flat, g, b, mask)
    return y.reshape(n, c, hh, wc)


# ----------------------------------------------------------------------------
# Thin XLA glue: crop / pad / space-to-depth / nearest upsample (data movement only)
# ----------------------------------------------------------------------------
def _crop(a, w_true):
    return a if a.shape[3] == w_true else a[:, :, :, :w_true]


def _space_to_depth(xp, w):
    """Turn a stride-2 conv into a stride-1 conv: x -> 4x channels, kernel -> k/2."""
    n, c, hp, wp = xp.shape
    kh, kw, cin, cout = w.shape
    assert hp % 2 == 0 and wp % 2 == 0 and kh % 2 == 0 and kw % 2 == 0
    parts = [xp[:, :, pi::2, pj::2] for pi in (0, 1) for pj in (0, 1)]
    x_s2d = jnp.concatenate(parts, axis=1)                       # [N, 4C, hp/2, wp/2]
    w_s2d = jnp.stack([w[pi::2, pj::2] for pi in (0, 1) for pj in (0, 1)], axis=2)
    w_s2d = w_s2d.reshape(kh // 2, kw // 2, 4 * cin, cout)
    return x_s2d, w_s2d


def conv_block(x_wide, w_true, weight, bias, pad, pad_mode, act="none", stride=1):
    xc = _crop(x_wide, w_true)
    if pad:
        xc = jnp.pad(xc, ((0, 0), (0, 0), (pad, pad), (pad, pad)), mode=pad_mode)
    if stride == 2:
        xc, weight = _space_to_depth(xc, weight)
    elif stride != 1:
        raise NotImplementedError("only stride 1 and 2 are used by this model")
    return conv2d_wide(xc, weight, bias, act=act)


def upsample2x(x_wide, w_true):
    # TODO(synk): could be folded into the following conv kernel's window gather to
    #             avoid materializing the 4x larger activation in HBM.
    xc = _crop(x_wide, w_true)
    return jnp.repeat(jnp.repeat(xc, 2, axis=2), 2, axis=3), 2 * w_true


# ----------------------------------------------------------------------------
# Parameter init (deterministic, synthetic)
# ----------------------------------------------------------------------------
def init_conv(key, kh, kw, cin, cout, scale=0.1):
    k1, k2 = jax.random.split(key)
    w = jax.random.normal(k1, (kh, kw, cin, cout), jnp.float32) * scale
    b = jax.random.normal(k2, (cout,), jnp.float32) * scale
    return w, b


def init_linear(key, din, dout, scale=0.1):
    k1, k2 = jax.random.split(key)
    w = jax.random.normal(k1, (din, dout), jnp.float32) * scale
    b = jax.random.normal(k2, (dout,), jnp.float32) * scale
    return w, b


def init_generator_params(key, input_nc, latent_nc, ngf, ng_downsample, ng_upsample):
    keys = iter(jax.random.split(key, 64))
    params = {}
    params["conv_in"] = init_conv(next(keys), 7, 7, input_nc, ngf)
    cur = ngf
    params["down"] = []
    for _ in range(ng_downsample - 1):
        params["down"].append(init_conv(next(keys), 4, 4, cur, cur * 2))
        cur *= 2
    params["res"] = [
        {"conv1": init_conv(next(keys), 3, 3, cur, cur),
         "conv2": init_conv(next(keys), 3, 3, cur, cur)}
        for _ in range(2)
    ]
    adain_dim = cur
    params["mlp1"] = init_linear(next(keys), latent_nc, adain_dim * 4)
    params["mlp2"] = init_linear(next(keys), adain_dim * 4, adain_dim * 8)
    # single ResAdaIN block, applied twice with different AdaIN params (as in the reference)
    params["res_adain"] = {
        "conv1": init_conv(next(keys), 3, 3, cur, cur),
        "conv2": init_conv(next(keys), 3, 3, cur, cur),
    }
    params["up"] = []
    for _ in range(ng_upsample):
        params["up"].append(init_conv(next(keys), 5, 5, cur, cur // 2))
        cur //= 2
    params["conv_out"] = init_conv(next(keys), 7, 7, cur, input_nc)
    params["adain_dim"] = adain_dim
    return params


# ----------------------------------------------------------------------------
# Generator forward (activations carried NCHW/bf16, "wide" width with zero garbage)
# ----------------------------------------------------------------------------
def _resblock(x_wide, w_true, blk):
    n, c = x_wide.shape[0], x_wide.shape[1]
    ones = jnp.ones((n, c), jnp.float32)
    zeros = jnp.zeros((n, c), jnp.float32)
    h1, w1 = conv_block(x_wide, w_true, *blk["conv1"], pad=1, pad_mode="constant")
    h1 = instance_norm_act(h1, w1, ones, zeros, act="relu")
    h2, w2 = conv_block(h1, w1, *blk["conv2"], pad=1, pad_mode="constant")
    h2 = instance_norm_act(h2, w2, ones, zeros, act="none")
    return _crop(x_wide, w_true) + _crop(h2, w2), w_true


def _res_adain_block(x_wide, w_true, blk, adain_params):
    # adain_params: [N, 4*C] split as [gamma1, beta1, gamma2, beta2]
    c = x_wide.shape[1]
    g1 = adain_params[:, 0 * c:1 * c]
    b1 = adain_params[:, 1 * c:2 * c]
    g2 = adain_params[:, 2 * c:3 * c]
    b2 = adain_params[:, 3 * c:4 * c]
    h1, w1 = conv_block(x_wide, w_true, *blk["conv1"], pad=1, pad_mode="constant")
    h1 = instance_norm_act(h1, w1, g1, b1, act="relu")
    h2, w2 = conv_block(h1, w1, *blk["conv2"], pad=1, pad_mode="constant")
    h2 = instance_norm_act(h2, w2, g2, b2, act="none")
    return _crop(x_wide, w_true) + _crop(h2, w2), w_true


def generator_forward(params, x_nchw, code):
    n = x_nchw.shape[0]
    adain_dim = params["adain_dim"]
    h = x_nchw.astype(jnp.float32)
    w_true = h.shape[3]

    def ones(c):
        return jnp.ones((n, c), jnp.float32)

    def zeros(c):
        return jnp.zeros((n, c), jnp.float32)

    # --- before AdaIN: ReflPad3 + Conv7 + IN + ReLU, downsamples, 2x ResBlock
    w, b = params["conv_in"]
    h, w_true = conv_block(h, w_true, w, b, pad=3, pad_mode="reflect")
    h = instance_norm_act(h, w_true, ones(h.shape[1]), zeros(h.shape[1]), act="relu")
    for (w, b) in params["down"]:
        h, w_true = conv_block(h, w_true, w, b, pad=1, pad_mode="reflect", stride=2)
        h = instance_norm_act(h, w_true, ones(h.shape[1]), zeros(h.shape[1]), act="relu")
    for blk in params["res"]:
        h, w_true = _resblock(h, w_true, blk)

    # --- MLP on the latent code (tiny: plain XLA, not a Pallas kernel)
    w1, bb1 = params["mlp1"]
    w2, bb2 = params["mlp2"]
    m = jnp.maximum(code.astype(jnp.float32) @ w1 + bb1, 0.0)
    m = jnp.maximum(m @ w2 + bb2, 0.0)

    # --- two passes through the shared ResAdaIN block with different AdaIN params
    h, w_true = _res_adain_block(h, w_true, params["res_adain"], m[:, 0:adain_dim * 4])
    h, w_true = _res_adain_block(h, w_true, params["res_adain"],
                                 m[:, adain_dim * 4:adain_dim * 8])

    # --- after AdaIN: upsample blocks + final Conv7 + tanh
    for (w, b) in params["up"]:
        h, w_true = upsample2x(h, w_true)
        h, w_true = conv_block(h, w_true, w, b, pad=2, pad_mode="reflect")
        h = instance_norm_act(h, w_true, ones(h.shape[1]), zeros(h.shape[1]), act="relu")
    w, b = params["conv_out"]
    h, w_true = conv_block(h, w_true, w, b, pad=3, pad_mode="reflect", act="tanh")

    return _crop(h, w_true).astype(jnp.float32)     # NCHW, like PyTorch


# ----------------------------------------------------------------------------
if __name__ == "__main__":
    key = jax.random.PRNGKey(0)
    kp, kx, kc = jax.random.split(key, 3)

    # small config consistent with the module:
    # Generator(input_nc=3, latent_nc=8, ngf=8, ng_downsample=2, ng_upsample=1)
    input_nc, latent_nc, ngf = 3, 8, 8
    ng_downsample, ng_upsample = 2, 1

    params = init_generator_params(kp, input_nc, latent_nc, ngf,
                                   ng_downsample, ng_upsample)

    x = jax.random.normal(kx, (2, input_nc, 16, 16), jnp.float32)   # NCHW, like PyTorch
    code = jax.random.normal(kc, (2, latent_nc), jnp.float32)

    out = generator_forward(params, x, code)
    out = jax.block_until_ready(out)
    assert out.shape == (2, input_nc, 16, 16), out.shape
    assert bool(jnp.all(jnp.isfinite(out)))
    print("KERNEL_OK")
</pallas_src>

<mosaic_0001>
module attributes {stable_mosaic.version = 11 : i64} {
  func.func @_conv_kernel(%arg0: i32, %arg1: memref<1x3x512xbf16, #tpu.memory_space<vmem>>, %arg2: memref<49x8x3xbf16, #tpu.memory_space<vmem>>, %arg3: memref<8x1xf32, #tpu.memory_space<vmem>>, %arg4: memref<1x352xf32, #tpu.memory_space<vmem>>, %arg5: memref<1x8x352xbf16, #tpu.memory_space<vmem>>) attributes {dimension_semantics = [#tpu.dimension_semantics<parallel>], iteration_bounds = array<i64: 2>, scalar_prefetch = 0 : i64, scratch_operands = 0 : i64, tpu.core_type = #tpu.core_type<tc>, window_params = [{transform_indices = @transform_0, window_bounds = array<i64: 1, 3, 512>}, {pipeline_mode = #tpu.pipeline_mode<synchronous>, transform_indices = @transform_1, window_bounds = array<i64: 49, 8, 3>}, {pipeline_mode = #tpu.pipeline_mode<synchronous>, transform_indices = @transform_2, window_bounds = array<i64: 8, 1>}, {pipeline_mode = #tpu.pipeline_mode<synchronous>, transform_indices = @transform_3, window_bounds = array<i64: 1, 352>}, {transform_indices = @transform_4, window_bounds = array<i64: 1, 8, 352>}]} {
    %cst = arith.constant 0.000000e+00 : f32
    %0 = vector.broadcast %cst : f32 to vector<8x352xf32>
    %c0 = arith.constant 0 : index
    %c0_0 = arith.constant 0 : index
    %c0_1 = arith.constant 0 : index
    %1 = vector.load %arg1[%c0, %c0_0, %c0_1] : memref<1x3x512xbf16, #tpu.memory_space<vmem>>, vector<1x3x352xbf16>
    %2 = vector.shape_cast %1 : vector<1x3x352xbf16> to vector<3x352xbf16>
    %c0_2 = arith.constant 0 : index
    %c0_3 = arith.constant 0 : index
    %c0_4 = arith.constant 0 : index
    %3 = vector.load %arg2[%c0_2, %c0_3, %c0_4] : memref<49x8x3xbf16, #tpu.memory_space<vmem>>, vector<1x8x3xbf16>
    %4 = vector.shape_cast %3 : vector<1x8x3xbf16> to vector<8x3xbf16>
    %cst_5 = arith.constant dense<0.000000e+00> : vector<8x352xf32>
    %5 = tpu.matmul %4, %2, %cst_5 {dimension_numbers = #tpu.dot_dimension_numbers<[1], [0], [0], [1], [0, 0, 1, 1], [], []>} : vector<8x3xbf16>, vector<3x352xbf16>, vector<8x352xf32> -> vector<8x352xf32>
    %6 = arith.addf %0, %5 : vector<8x352xf32>
    %c0_6 = arith.constant 0 : index
    %c0_7 = arith.constant 0 : index
    %c1 = arith.constant 1 : index
    %7 = vector.load %arg1[%c0_6, %c0_7, %c1] : memref<1x3x512xbf16, #tpu.memory_space<vmem>>, vector<1x3x352xbf16>
    %8 = vector.shape_cast %7 : vector<1x3x352xbf16> to vector<3x352xbf16>
    %c1_8 = arith.constant 1 : index
    %c0_9 = arith.constant 0 : index
    %c0_10 = arith.constant 0 : index
    %9 = vector.load %arg2[%c1_8, %c0_9, %c0_10] : memref<49x8x3xbf16, #tpu.memory_space<vmem>>, vector<1x8x3xbf16>
    %10 = vector.shape_cast %9 : vector<1x8x3xbf16> to vector<8x3xbf16>
    %cst_11 = arith.constant dense<0.000000e+00> : vector<8x352xf32>
    %11 = tpu.matmul %10, %8, %cst_11 {dimension_numbers = #tpu.dot_dimension_numbers<[1], [0], [0], [1], [0, 0, 1, 1], [], []>} : vector<8x3xbf16>, vector<3x352xbf16>, vector<8x352xf32> -> vector<8x352xf32>
    %12 = arith.addf %6, %11 : vector<8x352xf32>
    %c0_12 = arith.constant 0 : index
    %c0_13 = arith.constant 0 : index
    %c2 = arith.constant 2 : index
    %13 = vector.load %arg1[%c0_12, %c0_13, %c2] : memref<1x3x512xbf16, #tpu.memory_space<vmem>>, vector<1x3x352xbf16>
    %14 = vector.shape_cast %13 : vector<1x3x352xbf16> to vector<3x352xbf16>
    %c2_14 = arith.constant 2 : index
    %c0_15 = arith.constant 0 : index
    %c0_16 = arith.constant 0 : index
    %15 = vector.load %arg2[%c2_14, %c0_15, %c0_16] : memref<49x8x3xbf16, #tpu.memory_space<vmem>>, vector<1x8x3xbf16>
    %16 = vector.shape_cast %15 : vector<1x8x3xbf16> to vector<8x3xbf16>
    %cst_17 = arith.constant dense<0.000000e+00> : vector<8x352xf32>
    %17 = tpu.matmul %16, %14, %cst_17 {dimension_numbers = #tpu.dot_dimension_numbers<[1], [0], [0], [1], [0, 0, 1, 1], [], []>} : vector<8x3xbf16>, vector<3x352xbf16>, vector<8x352xf32> -> vector<8x352xf32>
    %18 = arith.addf %12, %17 : vector<8x352xf32>
    %c0_18 = arith.constant 0 : index
    %c0_19 = arith.constant 0 : index
    %c3 = arith.constant 3 : index
    %19 = vector.load %arg1[%c0_18, %c0_19, %c3] : memref<1x3x512xbf16, #tpu.memory_space<vmem>>, vector<1x3x352xbf16>
    %20 = vector.shape_cast %19 : vector<1x3x352xbf16> to vector<3x352xbf16>
    %c3_20 = arith.constant 3 : index
    %c0_21 = arith.constant 0 : index
    %c0_22 = arith.constant 0 : index
    %21 = vector.load %arg2[%c3_20, %c0_21, %c0_22] : memref<49x8x3xbf16, #tpu.memory_space<vmem>>, vector<1x8x3xbf16>
    %22 = vector.shape_cast %21 : vector<1x8x3xbf16> to vector<8x3xbf16>
    %cst_23 = arith.constant dense<0.000000e+00> : vector<8x352xf32>
    %23 = tpu.matmul %22, %20, %cst_23 {dimension_numbers = #tpu.dot_dimension_numbers<[1], [0], [0], [1], [0, 0, 1, 1], [], []>} : vector<8x3xbf16>, vector<3x352xbf16>, vector<8x352xf32> -> vector<8x352xf32>
    %24 = arith.addf %18, %23 : vector<8x352xf32>
    %c0_24 = arith.constant 0 : index
    %c0_25 = arith.constant 0 : index
    %c4 = arith.constant 4 : index
    %25 = vector.load %arg1[%c0_24, %c0_25, %c4] : memref<1x3x512xbf16, #tpu.memory_space<vmem>>, vector<1x3x352xbf16>
    %26 = vector.shape_cast %25 : vector<1x3x352xbf16> to vector<3x352xbf16>
    %c4_26 = arith.constant 4 : index
    %c0_27 = arith.constant 0 : index
    %c0_28 = arith.constant 0 : index
    %27 = vector.load %arg2[%c4_26, %c0_27, %c0_28] : memref<49x8x3xbf16, #tpu.memory_space<vmem>>, vector<1x8x3xbf16>
    %28 = vector.shape_cast %27 : vector<1x8x3xbf16> to vector<8x3xbf16>
    %cst_29 = arith.constant dense<0.000000e+00> : vector<8x352xf32>
    %29 = tpu.matmul %28, %26, %cst_29 {dimension_numbers = #tpu.dot_dimension_numbers<[1], [0], [0], [1], [0, 0, 1, 1], [], []>} : vector<8x3xbf16>, vector<3x352xbf16>, vector<8x352xf32> -> vector<8x352xf32>
    %30 = arith.addf %24, %29 : vector<8x352xf32>
    %c0_30 = arith.constant 0 : index
    %c0_31 = arith.constant 0 : index
    %c5 = arith.constant 5 : index
    %31 = vector.load %arg1[%c0_30, %c0_31, %c5] : memref<1x3x512xbf16, #tpu.memory_space<vmem>>, vector<1x3x352xbf16>
    %32 = vector.shape_cast %31 : vector<1x3x352xbf16> to vector<3x352xbf16>
    %c5_32 = arith.constant 5 : index
    %c0_33 = arith.constant 0 : index
    %c0_34 = arith.constant 0 : index
    %33 = vector.load %arg2[%c5_32, %c0_33, %c0_34] : memref<49x8x3xbf16, #tpu.memory_space<vmem>>, vector<1x8x3xbf16>
    %34 = vector.shape_cast %33 : vector<1x8x3xbf16> to vector<8x3xbf16>
    %cst_35 = arith.constant dense<0.000000e+00> : vector<8x352xf32>
    %35 = tpu.matmul %34, %32, %cst_35 {dimension_numbers = #tpu.dot_dimension_numbers<[1], [0], [0], [1], [0, 0, 1, 1], [], []>} : vector<8x3xbf16>, vector<3x352xbf16>, vector<8x352xf32> -> vector<8x352xf32>
    %36 = arith.addf %30, %35 : vector<8x352xf32>
    %c0_36 = arith.constant 0 : index
    %c0_37 = arith.constant 0 : index
    %c6 = arith.constant 6 : index
    %37 = vector.load %arg1[%c0_36, %c0_37, %c6] : memref<1x3x512xbf16, #tpu.memory_space<vmem>>, vector<1x3x352xbf16>
    %38 = vector.shape_cast %37 : vector<1x3x352xbf16> to vector<3x352xbf16>
    %c6_38 = arith.constant 6 : index
    %c0_39 = arith.constant 0 : index
    %c0_40 = arith.constant 0 : index
    %39 = vector.load %arg2[%c6_38, %c0_39, %c0_40] : memref<49x8x3xbf16, #tpu.memory_space<vmem>>, vector<1x8x3xbf16>
    %40 = vector.shape_cast %39 : vector<1x8x3xbf16> to vector<8x3xbf16>
    %cst_41 = arith.constant dense<0.000000e+00> : vector<8x352xf32>
    %41 = tpu.matmul %40, %38, %cst_41 {dimension_numbers = #tpu.dot_dimension_numbers<[1], [0], [0], [1], [0, 0, 1, 1], [], []>} : vector<8x3xbf16>, vector<3x352xbf16>, vector<8x352xf32> -> vector<8x352xf32>
    %42 = arith.addf %36, %41 : vector<8x352xf32>
    %c0_42 = arith.constant 0 : index
    %c0_43 = arith.constant 0 : index
    %c22 = arith.constant 22 : index
    %43 = vector.load %arg1[%c0_42, %c0_43, %c22] : memref<1x3x512xbf16, #tpu.memory_space<vmem>>, vector<1x3x352xbf16>
    %44 = vector.shape_cast %43 : vector<1x3x352xbf16> to vector<3x352xbf16>
    %c7 = arith.constant 7 : index
    %c0_44 = arith.constant 0 : index
    %c0_45 = arith.constant 0 : index
    %45 = vector.load %arg2[%c7, %c0_44, %c0_45] : memref<49x8x3xbf16, #tpu.memory_space<vmem>>, vector<1x8x3xbf16>
    %46 = vector.shape_cast %45 : vector<1x8x3xbf16> to vector<8x3xbf16>
    %cst_46 = arith.constant dense<0.000000e+00> : vector<8x352xf32>
    %47 = tpu.matmul %46, %44, %cst_46 {dimension_numbers = #tpu.dot_dimension_numbers<[1], [0], [0], [1], [0, 0, 1, 1], [], []>} : vector<8x3xbf16>, vector<3x352xbf16>, vector<8x352xf32> -> vector<8x352xf32>
    %48 = arith.addf %42, %47 : vector<8x352xf32>
    %c0_47 = arith.constant 0 : index
    %c0_48 = arith.constant 0 : index
    %c23 = arith.constant 23 : index
    %49 = vector.load %arg1[%c0_47, %c0_48, %c23] : memref<1x3x512xbf16, #tpu.memory_space<vmem>>, vector<1x3x352xbf16>
    %50 = vector.shape_cast %49 : vector<1x3x352xbf16> to vector<3x352xbf16>
    %c8 = arith.constant 8 : index
    %c0_49 = arith.constant 0 : index
    %c0_50 = arith.constant 0 : index
    %51 = vector.load %arg2[%c8, %c0_49, %c0_50] : memref<49x8x3xbf16, #tpu.memory_space<vmem>>, vector<1x8x3xbf16>
    %52 = vector.shape_cast %51 : vector<1x8x3xbf16> to vector<8x3xbf16>
    %cst_51 = arith.constant dense<0.000000e+00> : vector<8x352xf32>
    %53 = tpu.matmul %52, %50, %cst_51 {dimension_numbers = #tpu.dot_dimension_numbers<[1], [0], [0], [1], [0, 0, 1, 1], [], []>} : vector<8x3xbf16>, vector<3x352xbf16>, vector<8x352xf32> -> vector<8x352xf32>
    %54 = arith.addf %48, %53 : vector<8x352xf32>
    %c0_52 = arith.constant 0 : index
    %c0_53 = arith.constant 0 : index
    %c24 = arith.constant 24 : index
    %55 = vector.load %arg1[%c0_52, %c0_53, %c24] : memref<1x3x512xbf16, #tpu.memory_space<vmem>>, vector<1x3x352xbf16>
    %56 = vector.shape_cast %55 : vector<1x3x352xbf16> to vector<3x352xbf16>
    %c9 = arith.constant 9 : index
    %c0_54 = arith.constant 0 : index
    %c0_55 = arith.constant 0 : index
    %57 = vector.load %arg2[%c9, %c0_54, %c0_55] : memref<49x8x3xbf16, #tpu.memory_space<vmem>>, vector<1x8x3xbf16>
    %58 = vector.shape_cast %57 : vector<1x8x3xbf16> to vector<8x3xbf16>
    %cst_56 = arith.constant dense<0.000000e+00> : vector<8x352xf32>
    %59 = tpu.matmul %58, %56, %cst_56 {dimension_numbers = #tpu.dot_dimension_numbers<[1], [0], [0], [1], [0, 0, 1, 1], [], []>} : vector<8x3xbf16>, vector<3x352xbf16>, vector<8x352xf32> -> vector<8x352xf32>
    %60 = arith.addf %54, %59 : vector<8x352xf32>
    %c0_57 = arith.constant 0 : index
    %c0_58 = arith.constant 0 : index
    %c25 = arith.constant 25 : index
    %61 = vector.load %arg1[%c0_57, %c0_58, %c25] : memref<1x3x512xbf16, #tpu.memory_space<vmem>>, vector<1x3x352xbf16>
    %62 = vector.shape_cast %61 : vector<1x3x352xbf16> to vector<3x352xbf16>
    %c10 = arith.constant 10 : index
    %c0_59 = arith.constant 0 : index
    %c0_60 = arith.constant 0 : index
    %63 = vector.load %arg2[%c10, %c0_59, %c0_60] : memref<49x8x3xbf16, #tpu.memory_space<vmem>>, vector<1x8x3xbf16>
    %64 = vector.shape_cast %63 : vector<1x8x3xbf16> to vector<8x3xbf16>
    %cst_61 = arith.constant dense<0.000000e+00> : vector<8x352xf32>
    %65 = tpu.matmul %64, %62, %cst_61 {dimension_numbers = #tpu.dot_dimension_numbers<[1], [0], [0], [1], [0, 0, 1, 1], [], []>} : vector<8x3xbf16>, vector<3x352xbf16>, vector<8x352xf32> -> vector<8x352xf32>
    %66 = arith.addf %60, %65 : vector<8x352xf32>
    %c0_62 = arith.constant 0 : index
    %c0_63 = arith.constant 0 : index
    %c26 = arith.constant 26 : index
    %67 = vector.load %arg1[%c0_62, %c0_63, %c26] : memref<1x3x512xbf16, #tpu.memory_space<vmem>>, vector<1x3x352xbf16>
    %68 = vector.shape_cast %67 : vector<1x3x352xbf16> to vector<3x352xbf16>
    %c11 = arith.constant 11 : index
    %c0_64 = arith.constant 0 : index
    %c0_65 = arith.constant 0 : index
    %69 = vector.load %arg2[%c11, %c0_64, %c0_65] : memref<49x8x3xbf16, #tpu.memory_space<vmem>>, vector<1x8x3xbf16>
    %70 = vector.shape_cast %69 : vector<1x8x3xbf16> to vector<8x3xbf16>
    %cst_66 = arith.constant dense<0.000000e+00> : vector<8x352xf32>
    %71 = tpu.matmul %70, %68, %cst_66 {dimension_numbers = #tpu.dot_dimension_numbers<[1], [0], [0], [1], [0, 0, 1, 1], [], []>} : vector<8x3xbf16>, vector<3x352xbf16>, vector<8x352xf32> -> vector<8x352xf32>
    %72 = arith.addf %66, %71 : vector<8x352xf32>
    %c0_67 = arith.constant 0 : index
    %c0_68 = arith.constant 0 : index
    %c27 = arith.constant 27 : index
    %73 = vector.load %arg1[%c0_67, %c0_68, %c27] : memref<1x3x512xbf16, #tpu.memory_space<vmem>>, vector<1x3x352xbf16>
    %74 = vector.shape_cast %73 : vector<1x3x352xbf16> to vector<3x352xbf16>
    %c12 = arith.constant 12 : index
    %c0_69 = arith.constant 0 : index
    %c0_70 = arith.constant 0 : index
    %75 = vector.load %arg2[%c12, %c0_69, %c0_70] : memref<49x8x3xbf16, #tpu.memory_space<vmem>>, vector<1x8x3xbf16>
    %76 = vector.shape_cast %75 : vector<1x8x3xbf16> to vector<8x3xbf16>
    %cst_71 = arith.constant dense<0.000000e+00> : vector<8x352xf32>
    %77 = tpu.matmul %76, %74, %cst_71 {dimension_numbers = #tpu.dot_dimension_numbers<[1], [0], [0], [1], [0, 0, 1, 1], [], []>} : vector<8x3xbf16>, vector<3x352xbf16>, vector<8x352xf32> -> vector<8x352xf32>
    %78 = arith.addf %72, %77 : vector<8x352xf32>
    %c0_72 = arith.constant 0 : index
    %c0_73 = arith.constant 0 : index
    %c28 = arith.constant 28 : index
    %79 = vector.load %arg1[%c0_72, %c0_73, %c28] : memref<1x3x512xbf16, #tpu.memory_space<vmem>>, vector<1x3x352xbf16>
    %80 = vector.shape_cast %79 : vector<1x3x352xbf16> to vector<3x352xbf16>
    %c13 = arith.constant 13 : index
    %c0_74 = arith.constant 0 : index
    %c0_75 = arith.constant 0 : index
    %81 = vector.load %arg2[%c13, %c0_74, %c0_75] : memref<49x8x3xbf16, #tpu.memory_space<vmem>>, vector<1x8x3xbf16>
    %82 = vector.shape_cast %81 : vector<1x8x3xbf16> to vector<8x3xbf16>
    %cst_76 = arith.constant dense<0.000000e+00> : vector<8x352xf32>
    %83 = tpu.matmul %82, %80, %cst_76 {dimension_numbers = #tpu.dot_dimension_numbers<[1], [0], [0], [1], [0, 0, 1, 1], [], []>} : vector<8x3xbf16>, vector<3x352xbf16>, vector<8x352xf32> -> vector<8x352xf32>
    %84 = arith.addf %78, %83 : vector<8x352xf32>
    %c0_77 = arith.constant 0 : index
    %c0_78 = arith.constant 0 : index
    %c44 = arith.constant 44 : index
    %85 = vector.load %arg1[%c0_77, %c0_78, %c44] : memref<1x3x512xbf16, #tpu.memory_space<vmem>>, vector<1x3x352xbf16>
    %86 = vector.shape_cast %85 : vector<1x3x352xbf16> to vector<3x352xbf16>
    %c14 = arith.constant 14 : index
    %c0_79 = arith.constant 0 : index
    %c0_80 = arith.constant 0 : index
    %87 = vector.load %arg2[%c14, %c0_79, %c0_80] : memref<49x8x3xbf16, #tpu.memory_space<vmem>>, vector<1x8x3xbf16>
    %88 = vector.shape_cast %87 : vector<1x8x3xbf16> to vector<8x3xbf16>
    %cst_81 = arith.constant dense<0.000000e+00> : vector<8x352xf32>
    %89 = tpu.matmul %88, %86, %cst_81 {dimension_numbers = #tpu.dot_dimension_numbers<[1], [0], [0], [1], [0, 0, 1, 1], [], []>} : vector<8x3xbf16>, vector<3x352xbf16>, vector<8x352xf32> -> vector<8x352xf32>
    %90 = arith.addf %84, %89 : vector<8x352xf32>
    %c0_82 = arith.constant 0 : index
    %c0_83 = arith.constant 0 : index
    %c45 = arith.constant 45 : index
    %91 = vector.load %arg1[%c0_82, %c0_83, %c45] : memref<1x3x512xbf16, #tpu.memory_space<vmem>>, vector<1x3x352xbf16>
    %92 = vector.shape_cast %91 : vector<1x3x352xbf16> to vector<3x352xbf16>
    %c15 = arith.constant 15 : index
    %c0_84 = arith.constant 0 : index
    %c0_85 = arith.constant 0 : index
    %93 = vector.load %arg2[%c15, %c0_84, %c0_85] : memref<49x8x3xbf16, #tpu.memory_space<vmem>>, vector<1x8x3xbf16>
    %94 = vector.shape_cast %93 : vector<1x8x3xbf16> to vector<8x3xbf16>
    %cst_86 = arith.constant dense<0.000000e+00> : vector<8x352xf32>
    %95 = tpu.matmul %94, %92, %cst_86 {dimension_numbers = #tpu.dot_dimension_numbers<[1], [0], [0], [1], [0, 0, 1, 1], [], []>} : vector<8x3xbf16>, vector<3x352xbf16>, vector<8x352xf32> -> vector<8x352xf32>
    %96 = arith.addf %90, %95 : vector<8x352xf32>
    %c0_87 = arith.constant 0 : index
    %c0_88 = arith.constant 0 : index
    %c46 = arith.constant 46 : index
    %97 = vector.load %arg1[%c0_87, %c0_88, %c46] : memref<1x3x512xbf16, #tpu.memory_space<vmem>>, vector<1x3x352xbf16>
    %98 = vector.shape_cast %97 : vector<1x3x352xbf16> to vector<3x352xbf16>
    %c16 = arith.constant 16 : index
    %c0_89 = arith.constant 0 : index
    %c0_90 = arith.constant 0 : index
    %99 = vector.load %arg2[%c16, %c0_89, %c0_90] : memref<49x8x3xbf16, #tpu.memory_space<vmem>>, vector<1x8x3xbf16>
    %100 = vector.shape_cast %99 : vector<1x8x3xbf16> to vector<8x3xbf16>
    %cst_91 = arith.constant dense<0.000000e+00> : vector<8x352xf32>
    %101 = tpu.matmul %100, %98, %cst_91 {dimension_numbers = #tpu.dot_dimension_numbers<[1], [0], [0], [1], [0, 0, 1, 1], [], []>} : vector<8x3xbf16>, vector<3x352xbf16>, vector<8x352xf32> -> vector<8x352xf32>
    %102 = arith.addf %96, %101 : vector<8x352xf32>
    %c0_92 = arith.constant 0 : index
    %c0_93 = arith.constant 0 : index
    %c47 = arith.constant 47 : index
    %103 = vector.load %arg1[%c0_92, %c0_93, %c47] : memref<1x3x512xbf16, #tpu.memory_space<vmem>>, vector<1x3x352xbf16>
    %104 = vector.shape_cast %103 : vector<1x3x352xbf16> to vector<3x352xbf16>
    %c17 = arith.constant 17 : index
    %c0_94 = arith.constant 0 : index
    %c0_95 = arith.constant 0 : index
    %105 = vector.load %arg2[%c17, %c0_94, %c0_95] : memref<49x8x3xbf16, #tpu.memory_space<vmem>>, vector<1x8x3xbf16>
    %106 = vector.shape_cast %105 : vector<1x8x3xbf16> to vector<8x3xbf16>
    %cst_96 = arith.constant dense<0.000000e+00> : vector<8x352xf32>
    %107 = tpu.matmul %106, %104, %cst_96 {dimension_numbers = #tpu.dot_dimension_numbers<[1], [0], [0], [1], [0, 0, 1, 1], [], []>} : vector<8x3xbf16>, vector<3x352xbf16>, vector<8x352xf32> -> vector<8x352xf32>
    %108 = arith.addf %102, %107 : vector<8x352xf32>
    %c0_97 = arith.constant 0 : index
    %c0_98 = arith.constant 0 : index
    %c48 = arith.constant 48 : index
    %109 = vector.load %arg1[%c0_97, %c0_98, %c48] : memref<1x3x512xbf16, #tpu.memory_space<vmem>>, vector<1x3x352xbf16>
    %110 = vector.shape_cast %109 : vector<1x3x352xbf16> to vector<3x352xbf16>
    %c18 = arith.constant 18 : index
    %c0_99 = arith.constant 0 : index
    %c0_100 = arith.constant 0 : index
    %111 = vector.load %arg2[%c18, %c0_99, %c0_100] : memref<49x8x3xbf16, #tpu.memory_space<vmem>>, vector<1x8x3xbf16>
    %112 = vector.shape_cast %111 : vector<1x8x3xbf16> to vector<8x3xbf16>
    %cst_101 = arith.constant dense<0.000000e+00> : vector<8x352xf32>
    %113 = tpu.matmul %112, %110, %cst_101 {dimension_numbers = #tpu.dot_dimension_numbers<[1], [0], [0], [1], [0, 0, 1, 1], [], []>} : vector<8x3xbf16>, vector<3x352xbf16>, vector<8x352xf32> -> vector<8x352xf32>
    %114 = arith.addf %108, %113 : vector<8x352xf32>
    %c0_102 = arith.constant 0 : index
    %c0_103 = arith.constant 0 : index
    %c49 = arith.constant 49 : index
    %115 = vector.load %arg1[%c0_102, %c0_103, %c49] : memref<1x3x512xbf16, #tpu.memory_space<vmem>>, vector<1x3x352xbf16>
    %116 = vector.shape_cast %115 : vector<1x3x352xbf16> to vector<3x352xbf16>
    %c19 = arith.constant 19 : index
    %c0_104 = arith.constant 0 : index
    %c0_105 = arith.constant 0 : index
    %117 = vector.load %arg2[%c19, %c0_104, %c0_105] : memref<49x8x3xbf16, #tpu.memory_space<vmem>>, vector<1x8x3xbf16>
    %118 = vector.shape_cast %117 : vector<1x8x3xbf16> to vector<8x3xbf16>
    %cst_106 = arith.constant dense<0.000000e+00> : vector<8x352xf32>
    %119 = tpu.matmul %118, %116, %cst_106 {dimension_numbers = #tpu.dot_dimension_numbers<[1], [0], [0], [1], [0, 0, 1, 1], [], []>} : vector<8x3xbf16>, vector<3x352xbf16>, vector<8x352xf32> -> vector<8x352xf32>
    %120 = arith.addf %114, %119 : vector<8x352xf32>
    %c0_107 = arith.constant 0 : index
    %c0_108 = arith.constant 0 : index
    %c50 = arith.constant 50 : index
    %121 = vector.load %arg1[%c0_107, %c0_108, %c50] : memref<1x3x512xbf16, #tpu.memory_space<vmem>>, vector<1x3x352xbf16>
    %122 = vector.shape_cast %121 : vector<1x3x352xbf16> to vector<3x352xbf16>
    %c20 = arith.constant 20 : index
    %c0_109 = arith.constant 0 : index
    %c0_110 = arith.constant 0 : index
    %123 = vector.load %arg2[%c20, %c0_109, %c0_110] : memref<49x8x3xbf16, #tpu.memory_space<vmem>>, vector<1x8x3xbf16>
    %124 = vector.shape_cast %123 : vector<1x8x3xbf16> to vector<8x3xbf16>
    %cst_111 = arith.constant dense<0.000000e+00> : vector<8x352xf32>
    %125 = tpu.matmul %124, %122, %cst_111 {dimension_numbers = #tpu.dot_dimension_numbers<[1], [0], [0], [1], [0, 0, 1, 1], [], []>} : vector<8x3xbf16>, vector<3x352xbf16>, vector<8x352xf32> -> vector<8x352xf32>
    %126 = arith.addf %120, %125 : vector<8x352xf32>
    %c0_112 = arith.constant 0 : index
    %c0_113 = arith.constant 0 : index
    %c66 = arith.constant 66 : index
    %127 = vector.load %arg1[%c0_112, %c0_113, %c66] : memref<1x3x512xbf16, #tpu.memory_space<vmem>>, vector<1x3x352xbf16>
    %128 = vector.shape_cast %127 : vector<1x3x352xbf16> to vector<3x352xbf16>
    %c21 = arith.constant 21 : index
    %c0_114 = arith.constant 0 : index
    %c0_115 = arith.constant 0 : index
    %129 = vector.load %arg2[%c21, %c0_114, %c0_115] : memref<49x8x3xbf16, #tpu.memory_space<vmem>>, vector<1x8x3xbf16>
    %130 = vector.shape_cast %129 : vector<1x8x3xbf16> to vector<8x3xbf16>
    %cst_116 = arith.constant dense<0.000000e+00> : vector<8x352xf32>
    %131 = tpu.matmul %130, %128, %cst_116 {dimension_numbers = #tpu.dot_dimension_numbers<[1], [0], [0], [1], [0, 0, 1, 1], [], []>} : vector<8x3xbf16>, vector<3x352xbf16>, vector<8x352xf32> -> vector<8x352xf32>
    %132 = arith.addf %126, %131 : vector<8x352xf32>
    %c0_117 = arith.constant 0 : index
    %c0_118 = arith.constant 0 : index
    %c67 = arith.constant 67 : index
    %133 = vector.load %arg1[%c0_117, %c0_118, %c67] : memref<1x3x512xbf16, #tpu.memory_space<vmem>>, vector<1x3x352xbf16>
    %134 = vector.shape_cast %133 : vector<1x3x352xbf16> to vector<3x352xbf16>
    %c22_119 = arith.constant 22 : index
    %c0_120 = arith.constant 0 : index
    %c0_121 = arith.constant 0 : index
    %135 = vector.load %arg2[%c22_119, %c0_120, %c0_121] : memref<49x8x3xbf16, #tpu.memory_space<vmem>>, vector<1x8x3xbf16>
    %136 = vector.shape_cast %135 : vector<1x8x3xbf16> to vector<8x3xbf16>
    %cst_122 = arith.constant dense<0.000000e+00> : vector<8x352xf32>
    %137 = tpu.matmul %136, %134, %cst_122 {dimension_numbers = #tpu.dot_dimension_numbers<[1], [0], [0], [1], [0, 0, 1, 1], [], []>} : vector<8x3xbf16>, vector<3x352xbf16>, vector<8x352xf32> -> vector<8x352xf32>
    %138 = arith.addf %132, %137 : vector<8x352xf32>
    %c0_123 = arith.constant 0 : index
    %c0_124 = arith.constant 0 : index
    %c68 = arith.constant 68 : index
    %139 = vector.load %arg1[%c0_123, %c0_124, %c68] : memref<1x3x512xbf16, #tpu.memory_space<vmem>>, vector<1x3x352xbf16>
    %140 = vector.shape_cast %139 : vector<1x3x352xbf16> to vector<3x352xbf16>
    %c23_125 = arith.constant 23 : index
    %c0_126 = arith.constant 0 : index
    %c0_127 = arith.constant 0 : index
    %141 = vector.load %arg2[%c23_125, %c0_126, %c0_127] : memref<49x8x3xbf16, #tpu.memory_space<vmem>>, vector<1x8x3xbf16>
    %142 = vector.shape_cast %141 : vector<1x8x3xbf16> to vector<8x3xbf16>
    %cst_128 = arith.constant dense<0.000000e+00> : vector<8x352xf32>
    %143 = tpu.matmul %142, %140, %cst_128 {dimension_numbers = #tpu.dot_dimension_numbers<[1], [0], [0], [1], [0, 0, 1, 1], [], []>} : vector<8x3xbf16>, vector<3x352xbf16>, vector<8x352xf32> -> vector<8x352xf32>
    %144 = arith.addf %138, %143 : vector<8x352xf32>
    %c0_129 = arith.constant 0 : index
    %c0_130 = arith.constant 0 : index
    %c69 = arith.constant 69 : index
    %145 = vector.load %arg1[%c0_129, %c0_130, %c69] : memref<1x3x512xbf16, #tpu.memory_space<vmem>>, vector<1x3x352xbf16>
    %146 = vector.shape_cast %145 : vector<1x3x352xbf16> to vector<3x352xbf16>
    %c24_131 = arith.constant 24 : index
    %c0_132 = arith.constant 0 : index
    %c0_133 = arith.constant 0 : index
    %147 = vector.load %arg2[%c24_131, %c0_132, %c0_133] : memref<49x8x3xbf16, #tpu.memory_space<vmem>>, vector<1x8x3xbf16>
    %148 = vector.shape_cast %147 : vector<1x8x3xbf16> to vector<8x3xbf16>
    %cst_134 = arith.constant dense<0.000000e+00> : vector<8x352xf32>
    %149 = tpu.matmul %148, %146, %cst_134 {dimension_numbers = #tpu.dot_dimension_numbers<[1], [0], [0], [1], [0, 0, 1, 1], [], []>} : vector<8x3xbf16>, vector<3x352xbf16>, vector<8x352xf32> -> vector<8x352xf32>
    %150 = arith.addf %144, %149 : vector<8x352xf32>
    %c0_135 = arith.constant 0 : index
    %c0_136 = arith.constant 0 : index
    %c70 = arith.constant 70 : index
    %151 = vector.load %arg1[%c0_135, %c0_136, %c70] : memref<1x3x512xbf16, #tpu.memory_space<vmem>>, vector<1x3x352xbf16>
    %152 = vector.shape_cast %151 : vector<1x3x352xbf16> to vector<3x352xbf16>
    %c25_137 = arith.constant 25 : index
    %c0_138 = arith.constant 0 : index
    %c0_139 = arith.constant 0 : index
    %153 = vector.load %arg2[%c25_137, %c0_138, %c0_139] : memref<49x8x3xbf16, #tpu.memory_space<vmem>>, vector<1x8x3xbf16>
    %154 = vector.shape_cast %153 : vector<1x8x3xbf16> to vector<8x3xbf16>
    %cst_140 = arith.constant dense<0.000000e+00> : vector<8x352xf32>
    %155 = tpu.matmul %154, %152, %cst_140 {dimension_numbers = #tpu.dot_dimension_numbers<[1], [0], [0], [1], [0, 0, 1, 1], [], []>} : vector<8x3xbf16>, vector<3x352xbf16>, vector<8x352xf32> -> vector<8x352xf32>
    %156 = arith.addf %150, %155 : vector<8x352xf32>
    %c0_141 = arith.constant 0 : index
    %c0_142 = arith.constant 0 : index
    %c71 = arith.constant 71 : index
    %157 = vector.load %arg1[%c0_141, %c0_142, %c71] : memref<1x3x512xbf16, #tpu.memory_space<vmem>>, vector<1x3x352xbf16>
    %158 = vector.shape_cast %157 : vector<1x3x352xbf16> to vector<3x352xbf16>
    %c26_143 = arith.constant 26 : index
    %c0_144 = arith.constant 0 : index
    %c0_145 = arith.constant 0 : index
    %159 = vector.load %arg2[%c26_143, %c0_144, %c0_145] : memref<49x8x3xbf16, #tpu.memory_space<vmem>>, vector<1x8x3xbf16>
    %160 = vector.shape_cast %159 : vector<1x8x3xbf16> to vector<8x3xbf16>
    %cst_146 = arith.constant dense<0.000000e+00> : vector<8x352xf32>
    %161 = tpu.matmul %160, %158, %cst_146 {dimension_numbers = #tpu.dot_dimension_numbers<[1], [0], [0], [1], [0, 0, 1, 1], [], []>} : vector<8x3xbf16>, vector<3x352xbf16>, vector<8x352xf32> -> vector<8x352xf32>
    %162 = arith.addf %156, %161 : vector<8x352xf32>
    %c0_147 = arith.constant 0 : index
    %c0_148 = arith.constant 0 : index
    %c72 = arith.constant 72 : index
    %163 = vector.load %arg1[%c0_147, %c0_148, %c72] : memref<1x3x512xbf16, #tpu.memory_space<vmem>>, vector<1x3x352xbf16>
    %164 = vector.shape_cast %163 : vector<1x3x352xbf16> to vector<3x352xbf16>
    %c27_149 = arith.constant 27 : index
    %c0_150 = arith.constant 0 : index
    %c0_151 = arith.constant 0 : index
    %165 = vector.load %arg2[%c27_149, %c0_150, %c0_151] : memref<49x8x3xbf16, #tpu.memory_space<vmem>>, vector<1x8x3xbf16>
    %166 = vector.shape_cast %165 : vector<1x8x3xbf16> to vector<8x3xbf16>
    %cst_152 = arith.constant dense<0.000000e+00> : vector<8x352xf32>
    %167 = tpu.matmul %166, %164, %cst_152 {dimension_numbers = #tpu.dot_dimension_numbers<[1], [0], [0], [1], [0, 0, 1, 1], [], []>} : vector<8x3xbf16>, vector<3x352xbf16>, vector<8x352xf32> -> vector<8x352xf32>
    %168 = arith.addf %162, %167 : vector<8x352xf32>
    %c0_153 = arith.constant 0 : index
    %c0_154 = arith.constant 0 : index
    %c88 = arith.constant 88 : index
    %169 = vector.load %arg1[%c0_153, %c0_154, %c88] : memref<1x3x512xbf16, #tpu.memory_space<vmem>>, vector<1x3x352xbf16>
    %170 = vector.shape_cast %169 : vector<1x3x352xbf16> to vector<3x352xbf16>
    %c28_155 = arith.constant 28 : index
    %c0_156 = arith.constant 0 : index
    %c0_157 = arith.constant 0 : index
    %171 = vector.load %arg2[%c28_155, %c0_156, %c0_157] : memref<49x8x3xbf16, #tpu.memory_space<vmem>>, vector<1x8x3xbf16>
    %172 = vector.shape_cast %171 : vector<1x8x3xbf16> to vector<8x3xbf16>
    %cst_158 = arith.constant dense<0.000000e+00> : vector<8x352xf32>
    %173 = tpu.matmul %172, %170, %cst_158 {dimension_numbers = #tpu.dot_dimension_numbers<[1], [0], [0], [1], [0, 0, 1, 1], [], []>} : vector<8x3xbf16>, vector<3x352xbf16>, vector<8x352xf32> -> vector<8x352xf32>
    %174 = arith.addf %168, %173 : vector<8x352xf32>
    %c0_159 = arith.constant 0 : index
    %c0_160 = arith.constant 0 : index
    %c89 = arith.constant 89 : index
    %175 = vector.load %arg1[%c0_159, %c0_160, %c89] : memref<1x3x512xbf16, #tpu.memory_space<vmem>>, vector<1x3x352xbf16>
    %176 = vector.shape_cast %175 : vector<1x3x352xbf16> to vector<3x352xbf16>
    %c29 = arith.constant 29 : index
    %c0_161 = arith.constant 0 : index
    %c0_162 = arith.constant 0 : index
    %177 = vector.load %arg2[%c29, %c0_161, %c0_162] : memref<49x8x3xbf16, #tpu.memory_space<vmem>>, vector<1x8x3xbf16>
    %178 = vector.shape_cast %177 : vector<1x8x3xbf16> to vector<8x3xbf16>
    %cst_163 = arith.constant dense<0.000000e+00> : vector<8x352xf32>
    %179 = tpu.matmul %178, %176, %cst_163 {dimension_numbers = #tpu.dot_dimension_numbers<[1], [0], [0], [1], [0, 0, 1, 1], [], []>} : vector<8x3xbf16>, vector<3x352xbf16>, vector<8x352xf32> -> vector<8x352xf32>
    %180 = arith.addf %174, %179 : vector<8x352xf32>
    %c0_164 = arith.constant 0 : index
    %c0_165 = arith.constant 0 : index
    %c90 = arith.constant 90 : index
    %181 = vector.load %arg1[%c0_164, %c0_165, %c90] : memref<1x3x512xbf16, #tpu.memory_space<vmem>>, vector<1x3x352xbf16>
    %182 = vector.shape_cast %181 : vector<1x3x352xbf16> to vector<3x352xbf16>
    %c30 = arith.constant 30 : index
    %c0_166 = arith.constant 0 : index
    %c0_167 = arith.constant 0 : index
    %183 = vector.load %arg2[%c30, %c0_166, %c0_167] : memref<49x8x3xbf16, #tpu.memory_space<vmem>>, vector<1x8x3xbf16>
    %184 = vector.shape_cast %183 : vector<1x8x3xbf16> to vector<8x3xbf16>
    %cst_168 = arith.constant dense<0.000000e+00> : vector<8x352xf32>
    %185 = tpu.matmul %184, %182, %cst_168 {dimension_numbers = #tpu.dot_dimension_numbers<[1], [0], [0], [1], [0, 0, 1, 1], [], []>} : vector<8x3xbf16>, vector<3x352xbf16>, vector<8x352xf32> -> vector<8x352xf32>
    %186 = arith.addf %180, %185 : vector<8x352xf32>
    %c0_169 = arith.constant 0 : index
    %c0_170 = arith.constant 0 : index
    %c91 = arith.constant 91 : index
    %187 = vector.load %arg1[%c0_169, %c0_170, %c91] : memref<1x3x512xbf16, #tpu.memory_space<vmem>>, vector<1x3x352xbf16>
    %188 = vector.shape_cast %187 : vector<1x3x352xbf16> to vector<3x352xbf16>
    %c31 = arith.constant 31 : index
    %c0_171 = arith.constant 0 : index
    %c0_172 = arith.constant 0 : index
    %189 = vector.load %arg2[%c31, %c0_171, %c0_172] : memref<49x8x3xbf16, #tpu.memory_space<vmem>>, vector<1x8x3xbf16>
    %190 = vector.shape_cast %189 : vector<1x8x3xbf16> to vector<8x3xbf16>
    %cst_173 = arith.constant dense<0.000000e+00> : vector<8x352xf32>
    %191 = tpu.matmul %190, %188, %cst_173 {dimension_numbers = #tpu.dot_dimension_numbers<[1], [0], [0], [1], [0, 0, 1, 1], [], []>} : vector<8x3xbf16>, vector<3x352xbf16>, vector<8x352xf32> -> vector<8x352xf32>
    %192 = arith.addf %186, %191 : vector<8x352xf32>
    %c0_174 = arith.constant 0 : index
    %c0_175 = arith.constant 0 : index
    %c92 = arith.constant 92 : index
    %193 = vector.load %arg1[%c0_174, %c0_175, %c92] : memref<1x3x512xbf16, #tpu.memory_space<vmem>>, vector<1x3x352xbf16>
    %194 = vector.shape_cast %193 : vector<1x3x352xbf16> to vector<3x352xbf16>
    %c32 = arith.constant 32 : index
    %c0_176 = arith.constant 0 : index
    %c0_177 = arith.constant 0 : index
    %195 = vector.load %arg2[%c32, %c0_176, %c0_177] : memref<49x8x3xbf16, #tpu.memory_space<vmem>>, vector<1x8x3xbf16>
    %196 = vector.shape_cast %195 : vector<1x8x3xbf16> to vector<8x3xbf16>
    %cst_178 = arith.constant dense<0.000000e+00> : vector<8x352xf32>
    %197 = tpu.matmul %196, %194, %cst_178 {dimension_numbers = #tpu.dot_dimension_numbers<[1], [0], [0], [1], [0, 0, 1, 1], [], []>} : vector<8x3xbf16>, vector<3x352xbf16>, vector<8x352xf32> -> vector<8x352xf32>
    %198 = arith.addf %192, %197 : vector<8x352xf32>
    %c0_179 = arith.constant 0 : index
    %c0_180 = arith.constant 0 : index
    %c93 = arith.constant 93 : index
    %199 = vector.load %arg1[%c0_179, %c0_180, %c93] : memref<1x3x512xbf16, #tpu.memory_space<vmem>>, vector<1x3x352xbf16>
    %200 = vector.shape_cast %199 : vector<1x3x352xbf16> to vector<3x352xbf16>
    %c33 = arith.constant 33 : index
    %c0_181 = arith.constant 0 : index
    %c0_182 = arith.constant 0 : index
    %201 = vector.load %arg2[%c33, %c0_181, %c0_182] : memref<49x8x3xbf16, #tpu.memory_space<vmem>>, vector<1x8x3xbf16>
    %202 = vector.shape_cast %201 : vector<1x8x3xbf16> to vector<8x3xbf16>
    %cst_183 = arith.constant dense<0.000000e+00> : vector<8x352xf32>
    %203 = tpu.matmul %202, %200, %cst_183 {dimension_numbers = #tpu.dot_dimension_numbers<[1], [0], [0], [1], [0, 0, 1, 1], [], []>} : vector<8x3xbf16>, vector<3x352xbf16>, vector<8x352xf32> -> vector<8x352xf32>
    %204 = arith.addf %198, %203 : vector<8x352xf32>
    %c0_184 = arith.constant 0 : index
    %c0_185 = arith.constant 0 : index
    %c94 = arith.constant 94 : index
    %205 = vector.load %arg1[%c0_184, %c0_185, %c94] : memref<1x3x512xbf16, #tpu.memory_space<vmem>>, vector<1x3x352xbf16>
    %206 = vector.shape_cast %205 : vector<1x3x352xbf16> to vector<3x352xbf16>
    %c34 = arith.constant 34 : index
    %c0_186 = arith.constant 0 : index
    %c0_187 = arith.constant 0 : index
    %207 = vector.load %arg2[%c34, %c0_186, %c0_187] : memref<49x8x3xbf16, #tpu.memory_space<vmem>>, vector<1x8x3xbf16>
    %208 = vector.shape_cast %207 : vector<1x8x3xbf16> to vector<8x3xbf16>
    %cst_188 = arith.constant dense<0.000000e+00> : vector<8x352xf32>
    %209 = tpu.matmul %208, %206, %cst_188 {dimension_numbers = #tpu.dot_dimension_numbers<[1], [0], [0], [1], [0, 0, 1, 1], [], []>} : vector<8x3xbf16>, vector<3x352xbf16>, vector<8x352xf32> -> vector<8x352xf32>
    %210 = arith.addf %204, %209 : vector<8x352xf32>
    %c0_189 = arith.constant 0 : index
    %c0_190 = arith.constant 0 : index
    %c110 = arith.constant 110 : index
    %211 = vector.load %arg1[%c0_189, %c0_190, %c110] : memref<1x3x512xbf16, #tpu.memory_space<vmem>>, vector<1x3x352xbf16>
    %212 = vector.shape_cast %211 : vector<1x3x352xbf16> to vector<3x352xbf16>
    %c35 = arith.constant 35 : index
    %c0_191 = arith.constant 0 : index
    %c0_192 = arith.constant 0 : index
    %213 = vector.load %arg2[%c35, %c0_191, %c0_192] : memref<49x8x3xbf16, #tpu.memory_space<vmem>>, vector<1x8x3xbf16>
    %214 = vector.shape_cast %213 : vector<1x8x3xbf16> to vector<8x3xbf16>
    %cst_193 = arith.constant dense<0.000000e+00> : vector<8x352xf32>
    %215 = tpu.matmul %214, %212, %cst_193 {dimension_numbers = #tpu.dot_dimension_numbers<[1], [0], [0], [1], [0, 0, 1, 1], [], []>} : vector<8x3xbf16>, vector<3x352xbf16>, vector<8x352xf32> -> vector<8x352xf32>
    %216 = arith.addf %210, %215 : vector<8x352xf32>
    %c0_194 = arith.constant 0 : index
    %c0_195 = arith.constant 0 : index
    %c111 = arith.constant 111 : index
    %217 = vector.load %arg1[%c0_194, %c0_195, %c111] : memref<1x3x512xbf16, #tpu.memory_space<vmem>>, vector<1x3x352xbf16>
    %218 = vector.shape_cast %217 : vector<1x3x352xbf16> to vector<3x352xbf16>
    %c36 = arith.constant 36 : index
    %c0_196 = arith.constant 0 : index
    %c0_197 = arith.constant 0 : index
    %219 = vector.load %arg2[%c36, %c0_196, %c0_197] : memref<49x8x3xbf16, #tpu.memory_space<vmem>>, vector<1x8x3xbf16>
    %220 = vector.shape_cast %219 : vector<1x8x3xbf16> to vector<8x3xbf16>
    %cst_198 = arith.constant dense<0.000000e+00> : vector<8x352xf32>
    %221 = tpu.matmul %220, %218, %cst_198 {dimension_numbers = #tpu.dot_dimension_numbers<[1], [0], [0], [1], [0, 0, 1, 1], [], []>} : vector<8x3xbf16>, vector<3x352xbf16>, vector<8x352xf32> -> vector<8x352xf32>
    %222 = arith.addf %216, %221 : vector<8x352xf32>
    %c0_199 = arith.constant 0 : index
    %c0_200 = arith.constant 0 : index
    %c112 = arith.constant 112 : index
    %223 = vector.load %arg1[%c0_199, %c0_200, %c112] : memref<1x3x512xbf16, #tpu.memory_space<vmem>>, vector<1x3x352xbf16>
    %224 = vector.shape_cast %223 : vector<1x3x352xbf16> to vector<3x352xbf16>
    %c37 = arith.constant 37 : index
    %c0_201 = arith.constant 0 : index
    %c0_202 = arith.constant 0 : index
    %225 = vector.load %arg2[%c37, %c0_201, %c0_202] : memref<49x8x3xbf16, #tpu.memory_space<vmem>>, vector<1x8x3xbf16>
    %226 = vector.shape_cast %225 : vector<1x8x3xbf16> to vector<8x3xbf16>
    %cst_203 = arith.constant dense<0.000000e+00> : vector<8x352xf32>
    %227 = tpu.matmul %226, %224, %cst_203 {dimension_numbers = #tpu.dot_dimension_numbers<[1], [0], [0], [1], [0, 0, 1, 1], [], []>} : vector<8x3xbf16>, vector<3x352xbf16>, vector<8x352xf32> -> vector<8x352xf32>
    %228 = arith.addf %222, %227 : vector<8x352xf32>
    %c0_204 = arith.constant 0 : index
    %c0_205 = arith.constant 0 : index
    %c113 = arith.constant 113 : index
    %229 = vector.load %arg1[%c0_204, %c0_205, %c113] : memref<1x3x512xbf16, #tpu.memory_space<vmem>>, vector<1x3x352xbf16>
    %230 = vector.shape_cast %229 : vector<1x3x352xbf16> to vector<3x352xbf16>
    %c38 = arith.constant 38 : index
    %c0_206 = arith.constant 0 : index
    %c0_207 = arith.constant 0 : index
    %231 = vector.load %arg2[%c38, %c0_206, %c0_207] : memref<49x8x3xbf16, #tpu.memory_space<vmem>>, vector<1x8x3xbf16>
    %232 = vector.shape_cast %231 : vector<1x8x3xbf16> to vector<8x3xbf16>
    %cst_208 = arith.constant dense<0.000000e+00> : vector<8x352xf32>
    %233 = tpu.matmul %232, %230, %cst_208 {dimension_numbers = #tpu.dot_dimension_numbers<[1], [0], [0], [1], [0, 0, 1, 1], [], []>} : vector<8x3xbf16>, vector<3x352xbf16>, vector<8x352xf32> -> vector<8x352xf32>
    %234 = arith.addf %228, %233 : vector<8x352xf32>
    %c0_209 = arith.constant 0 : index
    %c0_210 = arith.constant 0 : index
    %c114 = arith.constant 114 : index
    %235 = vector.load %arg1[%c0_209, %c0_210, %c114] : memref<1x3x512xbf16, #tpu.memory_space<vmem>>, vector<1x3x352xbf16>
    %236 = vector.shape_cast %235 : vector<1x3x352xbf16> to vector<3x352xbf16>
    %c39 = arith.constant 39 : index
    %c0_211 = arith.constant 0 : index
    %c0_212 = arith.constant 0 : index
    %237 = vector.load %arg2[%c39, %c0_211, %c0_212] : memref<49x8x3xbf16, #tpu.memory_space<vmem>>, vector<1x8x3xbf16>
    %238 = vector.shape_cast %237 : vector<1x8x3xbf16> to vector<8x3xbf16>
    %cst_213 = arith.constant dense<0.000000e+00> : vector<8x352xf32>
    %239 = tpu.matmul %238, %236, %cst_213 {dimension_numbers = #tpu.dot_dimension_numbers<[1], [0], [0], [1], [0, 0, 1, 1], [], []>} : vector<8x3xbf16>, vector<3x352xbf16>, vector<8x352xf32> -> vector<8x352xf32>
    %240 = arith.addf %234, %239 : vector<8x352xf32>
    %c0_214 = arith.constant 0 : index
    %c0_215 = arith.constant 0 : index
    %c115 = arith.constant 115 : index
    %241 = vector.load %arg1[%c0_214, %c0_215, %c115] : memref<1x3x512xbf16, #tpu.memory_space<vmem>>, vector<1x3x352xbf16>
    %242 = vector.shape_cast %241 : vector<1x3x352xbf16> to vector<3x352xbf16>
    %c40 = arith.constant 40 : index
    %c0_216 = arith.constant 0 : index
    %c0_217 = arith.constant 0 : index
    %243 = vector.load %arg2[%c40, %c0_216, %c0_217] : memref<49x8x3xbf16, #tpu.memory_space<vmem>>, vector<1x8x3xbf16>
    %244 = vector.shape_cast %243 : vector<1x8x3xbf16> to vector<8x3xbf16>
    %cst_218 = arith.constant dense<0.000000e+00> : vector<8x352xf32>
    %245 = tpu.matmul %244, %242, %cst_218 {dimension_numbers = #tpu.dot_dimension_numbers<[1], [0], [0], [1], [0, 0, 1, 1], [], []>} : vector<8x3xbf16>, vector<3x352xbf16>, vector<8x352xf32> -> vector<8x352xf32>
    %246 = arith.addf %240, %245 : vector<8x352xf32>
    %c0_219 = arith.constant 0 : index
    %c0_220 = arith.constant 0 : index
    %c116 = arith.constant 116 : index
    %247 = vector.load %arg1[%c0_219, %c0_220, %c116] : memref<1x3x512xbf16, #tpu.memory_space<vmem>>, vector<1x3x352xbf16>
    %248 = vector.shape_cast %247 : vector<1x3x352xbf16> to vector<3x352xbf16>
    %c41 = arith.constant 41 : index
    %c0_221 = arith.constant 0 : index
    %c0_222 = arith.constant 0 : index
    %249 = vector.load %arg2[%c41, %c0_221, %c0_222] : memref<49x8x3xbf16, #tpu.memory_space<vmem>>, vector<1x8x3xbf16>
    %250 = vector.shape_cast %249 : vector<1x8x3xbf16> to vector<8x3xbf16>
    %cst_223 = arith.constant dense<0.000000e+00> : vector<8x352xf32>
    %251 = tpu.matmul %250, %248, %cst_223 {dimension_numbers = #tpu.dot_dimension_numbers<[1], [0], [0], [1], [0, 0, 1, 1], [], []>} : vector<8x3xbf16>, vector<3x352xbf16>, vector<8x352xf32> -> vector<8x352xf32>
    %252 = arith.addf %246, %251 : vector<8x352xf32>
    %c0_224 = arith.constant 0 : index
    %c0_225 = arith.constant 0 : index
    %c132 = arith.constant 132 : index
    %253 = vector.load %arg1[%c0_224, %c0_225, %c132] : memref<1x3x512xbf16, #tpu.memory_space<vmem>>, vector<1x3x352xbf16>
    %254 = vector.shape_cast %253 : vector<1x3x352xbf16> to vector<3x352xbf16>
    %c42 = arith.constant 42 : index
    %c0_226 = arith.constant 0 : index
    %c0_227 = arith.constant 0 : index
    %255 = vector.load %arg2[%c42, %c0_226, %c0_227] : memref<49x8x3xbf16, #tpu.memory_space<vmem>>, vector<1x8x3xbf16>
    %256 = vector.shape_cast %255 : vector<1x8x3xbf16> to vector<8x3xbf16>
    %cst_228 = arith.constant dense<0.000000e+00> : vector<8x352xf32>
    %257 = tpu.matmul %256, %254, %cst_228 {dimension_numbers = #tpu.dot_dimension_numbers<[1], [0], [0], [1], [0, 0, 1, 1], [], []>} : vector<8x3xbf16>, vector<3x352xbf16>, vector<8x352xf32> -> vector<8x352xf32>
    %258 = arith.addf %252, %257 : vector<8x352xf32>
    %c0_229 = arith.constant 0 : index
    %c0_230 = arith.constant 0 : index
    %c133 = arith.constant 133 : index
    %259 = vector.load %arg1[%c0_229, %c0_230, %c133] : memref<1x3x512xbf16, #tpu.memory_space<vmem>>, vector<1x3x352xbf16>
    %260 = vector.shape_cast %259 : vector<1x3x352xbf16> to vector<3x352xbf16>
    %c43 = arith.constant 43 : index
    %c0_231 = arith.constant 0 : index
    %c0_232 = arith.constant 0 : index
    %261 = vector.load %arg2[%c43, %c0_231, %c0_232] : memref<49x8x3xbf16, #tpu.memory_space<vmem>>, vector<1x8x3xbf16>
    %262 = vector.shape_cast %261 : vector<1x8x3xbf16> to vector<8x3xbf16>
    %cst_233 = arith.constant dense<0.000000e+00> : vector<8x352xf32>
    %263 = tpu.matmul %262, %260, %cst_233 {dimension_numbers = #tpu.dot_dimension_numbers<[1], [0], [0], [1], [0, 0, 1, 1], [], []>} : vector<8x3xbf16>, vector<3x352xbf16>, vector<8x352xf32> -> vector<8x352xf32>
    %264 = arith.addf %258, %263 : vector<8x352xf32>
    %c0_234 = arith.constant 0 : index
    %c0_235 = arith.constant 0 : index
    %c134 = arith.constant 134 : index
    %265 = vector.load %arg1[%c0_234, %c0_235, %c134] : memref<1x3x512xbf16, #tpu.memory_space<vmem>>, vector<1x3x352xbf16>
    %266 = vector.shape_cast %265 : vector<1x3x352xbf16> to vector<3x352xbf16>
    %c44_236 = arith.constant 44 : index
    %c0_237 = arith.constant 0 : index
    %c0_238 = arith.constant 0 : index
    %267 = vector.load %arg2[%c44_236, %c0_237, %c0_238] : memref<49x8x3xbf16, #tpu.memory_space<vmem>>, vector<1x8x3xbf16>
    %268 = vector.shape_cast %267 : vector<1x8x3xbf16> to vector<8x3xbf16>
    %cst_239 = arith.constant dense<0.000000e+00> : vector<8x352xf32>
    %269 = tpu.matmul %268, %266, %cst_239 {dimension_numbers = #tpu.dot_dimension_numbers<[1], [0], [0], [1], [0, 0, 1, 1], [], []>} : vector<8x3xbf16>, vector<3x352xbf16>, vector<8x352xf32> -> vector<8x352xf32>
    %270 = arith.addf %264, %269 : vector<8x352xf32>
    %c0_240 = arith.constant 0 : index
    %c0_241 = arith.constant 0 : index
    %c135 = arith.constant 135 : index
    %271 = vector.load %arg1[%c0_240, %c0_241, %c135] : memref<1x3x512xbf16, #tpu.memory_space<vmem>>, vector<1x3x352xbf16>
    %272 = vector.shape_cast %271 : vector<1x3x352xbf16> to vector<3x352xbf16>
    %c45_242 = arith.constant 45 : index
    %c0_243 = arith.constant 0 : index
    %c0_244 = arith.constant 0 : index
    %273 = vector.load %arg2[%c45_242, %c0_243, %c0_244] : memref<49x8x3xbf16, #tpu.memory_space<vmem>>, vector<1x8x3xbf16>
    %274 = vector.shape_cast %273 : vector<1x8x3xbf16> to vector<8x3xbf16>
    %cst_245 = arith.constant dense<0.000000e+00> : vector<8x352xf32>
    %275 = tpu.matmul %274, %272, %cst_245 {dimension_numbers = #tpu.dot_dimension_numbers<[1], [0], [0], [1], [0, 0, 1, 1], [], []>} : vector<8x3xbf16>, vector<3x352xbf16>, vector<8x352xf32> -> vector<8x352xf32>
    %276 = arith.addf %270, %275 : vector<8x352xf32>
    %c0_246 = arith.constant 0 : index
    %c0_247 = arith.constant 0 : index
    %c136 = arith.constant 136 : index
    %277 = vector.load %arg1[%c0_246, %c0_247, %c136] : memref<1x3x512xbf16, #tpu.memory_space<vmem>>, vector<1x3x352xbf16>
    %278 = vector.shape_cast %277 : vector<1x3x352xbf16> to vector<3x352xbf16>
    %c46_248 = arith.constant 46 : index
    %c0_249 = arith.constant 0 : index
    %c0_250 = arith.constant 0 : index
    %279 = vector.load %arg2[%c46_248, %c0_249, %c0_250] : memref<49x8x3xbf16, #tpu.memory_space<vmem>>, vector<1x8x3xbf16>
    %280 = vector.shape_cast %279 : vector<1x8x3xbf16> to vector<8x3xbf16>
    %cst_251 = arith.constant dense<0.000000e+00> : vector<8x352xf32>
    %281 = tpu.matmul %280, %278, %cst_251 {dimension_numbers = #tpu.dot_dimension_numbers<[1], [0], [0], [1], [0, 0, 1, 1], [], []>} : vector<8x3xbf16>, vector<3x352xbf16>, vector<8x352xf32> -> vector<8x352xf32>
    %282 = arith.addf %276, %281 : vector<8x352xf32>
    %c0_252 = arith.constant 0 : index
    %c0_253 = arith.constant 0 : index
    %c137 = arith.constant 137 : index
    %283 = vector.load %arg1[%c0_252, %c0_253, %c137] : memref<1x3x512xbf16, #tpu.memory_space<vmem>>, vector<1x3x352xbf16>
    %284 = vector.shape_cast %283 : vector<1x3x352xbf16> to vector<3x352xbf16>
    %c47_254 = arith.constant 47 : index
    %c0_255 = arith.constant 0 : index
    %c0_256 = arith.constant 0 : index
    %285 = vector.load %arg2[%c47_254, %c0_255, %c0_256] : memref<49x8x3xbf16, #tpu.memory_space<vmem>>, vector<1x8x3xbf16>
    %286 = vector.shape_cast %285 : vector<1x8x3xbf16> to vector<8x3xbf16>
    %cst_257 = arith.constant dense<0.000000e+00> : vector<8x352xf32>
    %287 = tpu.matmul %286, %284, %cst_257 {dimension_numbers = #tpu.dot_dimension_numbers<[1], [0], [0], [1], [0, 0, 1, 1], [], []>} : vector<8x3xbf16>, vector<3x352xbf16>, vector<8x352xf32> -> vector<8x352xf32>
    %288 = arith.addf %282, %287 : vector<8x352xf32>
    %c0_258 = arith.constant 0 : index
    %c0_259 = arith.constant 0 : index
    %c138 = arith.constant 138 : index
    %289 = vector.load %arg1[%c0_258, %c0_259, %c138] : memref<1x3x512xbf16, #tpu.memory_space<vmem>>, vector<1x3x352xbf16>
    %290 = vector.shape_cast %289 : vector<1x3x352xbf16> to vector<3x352xbf16>
    %c48_260 = arith.constant 48 : index
    %c0_261 = arith.constant 0 : index
    %c0_262 = arith.constant 0 : index
    %291 = vector.load %arg2[%c48_260, %c0_261, %c0_262] : memref<49x8x3xbf16, #tpu.memory_space<vmem>>, vector<1x8x3xbf16>
    %292 = vector.shape_cast %291 : vector<1x8x3xbf16> to vector<8x3xbf16>
    %cst_263 = arith.constant dense<0.000000e+00> : vector<8x352xf32>
    %293 = tpu.matmul %292, %290, %cst_263 {dimension_numbers = #tpu.dot_dimension_numbers<[1], [0], [0], [1], [0, 0, 1, 1], [], []>} : vector<8x3xbf16>, vector<3x352xbf16>, vector<8x352xf32> -> vector<8x352xf32>
    %294 = arith.addf %288, %293 : vector<8x352xf32>
    %c0_264 = arith.constant 0 : index
    %c0_265 = arith.constant 0 : index
    %295 = vector.load %arg3[%c0_264, %c0_265] : memref<8x1xf32, #tpu.memory_space<vmem>>, vector<8x1xf32>
    %296 = vector.broadcast %295 : vector<8x1xf32> to vector<8x352xf32>
    %297 = arith.addf %294, %296 : vector<8x352xf32>
    %c0_266 = arith.constant 0 : index
    %c0_267 = arith.constant 0 : index
    %298 = vector.load %arg4[%c0_266, %c0_267] : memref<1x352xf32, #tpu.memory_space<vmem>>, vector<1x352xf32>
    %299 = vector.broadcast %298 : vector<1x352xf32> to vector<8x352xf32>
    %300 = arith.mulf %297, %299 : vector<8x352xf32>
    %301 = arith.truncf %300 : vector<8x352xf32> to vector<8x352xbf16>
    %c0_268 = arith.constant 0 : index
    %c0_269 = arith.constant 0 : index
    %c0_270 = arith.constant 0 : index
    %302 = vector.load %arg5[%c0_268, %c0_269, %c0_270] : memref<1x8x352xbf16, #tpu.memory_space<vmem>>, vector<1x8x352xbf16>
    %303 = vector.shape_cast %302 : vector<1x8x352xbf16> to vector<8x352xbf16>
    %304 = vector.shape_cast %301 : vector<8x352xbf16> to vector<1x8x352xbf16>
    tpu.vector_store %arg5[%c0_268, %c0_269, %c0_270], %304 {strides = array<i32>} : memref<1x8x352xbf16, #tpu.memory_space<vmem>>, vector<1x8x352xbf16>,
    return
  }
  func.func @transform_0(%arg0: i32) -> (i32, i32, i32) {
    %c0_i32 = arith.constant 0 : i32
    %c0_i32_0 = arith.constant 0 : i32
    %c0_i32_1 = arith.constant 0 : i32
    return %arg0, %c0_i32, %c0_i32_0 : i32, i32, i32
  }
  func.func @transform_1(%arg0: i32) -> (i32, i32, i32) {
    %c0_i32 = arith.constant 0 : i32
    %c0_i32_0 = arith.constant 0 : i32
    %c0_i32_1 = arith.constant 0 : i32
    %c0_i32_2 = arith.constant 0 : i32
    return %c0_i32, %c0_i32_0, %c0_i32_1 : i32, i32, i32
  }
  func.func @transform_2(%arg0: i32) -> (i32, i32) {
    %c0_i32 = arith.constant 0 : i32
    %c0_i32_0 = arith.constant 0 : i32
    %c0_i32_1 = arith.constant 0 : i32
    return %c0_i32, %c0_i32_0 : i32, i32
  }
  func.func @transform_3(%arg0: i32) -> (i32, i32) {
    %c0_i32 = arith.constant 0 : i32
    %c0_i32_0 = arith.constant 0 : i32
    %c0_i32_1 = arith.constant 0 : i32
    return %c0_i32, %c0_i32_0 : i32, i32
  }
  func.func @transform_4(%arg0: i32) -> (i32, i32, i32) {
    %c0_i32 = arith.constant 0 : i32
    %c0_i32_0 = arith.constant 0 : i32
    %c0_i32_1 = arith.constant 0 : i32
    return %arg0, %c0_i32, %c0_i32_0 : i32, i32, i32
  }
}

</mosaic_0001>

<bundles_post_ra>
// kernel: tpu_custom_call.1
= control target key start
LH: loop header
LB: loop body
LE: loop exit
PB: predicated region body
PF: predicated region fallthrough
CT: control target
= control target key end

     0   :  { %9 = vsyncpa [#allocation3], 0  ;;  %s8583_s0 = inlined_call_operand.vmem [shape: bf16[2,3,512], index: 0, kind: input, shape index: {}]   ;;  %s8584_s1 = inlined_call_operand.vmem [shape: bf16[49,8,3], index: 1, kind: input, shape index: {}]   ;;  %s8585_s2 = inlined_call_operand.vmem [shape: f32[8,1], index: 2, kind: input, shape index: {}]   ;;  %s8586_s3 = inlined_call_operand.vmem [shape: f32[1,352], index: 3, kind: input, shape index: {}]   ;;  %s8587_s4 = inlined_call_operand.hbm [shape: bf16[2,8,352], index: 4, kind: output, shape index: {}]  }
   0x1   :  { %11 = vsyncpa [#allocation3 + $0x1], 0  ;;  %s7327_s15 = smov 0   ;;  %s7329_s16 = smov 0  }
   0x2   :  { %s7331_s17 = smov 0   ;;  %s7333_s18 = smov 0  }
   0x3 LB: > { %s7348_s19 = sadd.s32 4294967295, %s7249_s18   ;;  %s6521_s20 = sadd.s32 4294967294, %s7249_s18   ;;  %s7249_s18 = sphi %s7333_s18, %s8593_s18   ;;  %s7245_s17 = sphi %s7331_s17, %s8592_s17   ;;  %s7241_s16 = sphi %s7329_s16, %s8591_s16   ;;  %s7237_s15 = sphi %s7327_s15, %s8590_s15  }
   0x4   : > { %s7352_s21 = sadd.s32 1, %s7249_s18   ;;  %s113_s22 = sadd.s32 1, %s7245_s17 }
   0x5   : > { %s110_s23 = ssub.s32 %s7249_s18, %s7352_s21  ;;  %p123_p0 = scmp.ne.s32.totalorder %s7245_s17, %s7241_s16 }
   0x6   : > { %p111_p1 = scmp.eq.s32.totalorder %s110_s23, 0  ;;  %p124_p2 = scmp.eq.s32.totalorder %s7348_s19, 1 }
   0x7   : > { %p129_p3 = scmp.ne.s32.totalorder %s7241_s16, %s7237_s15  ;;  %p130_p4 = scmp.eq.s32.totalorder %s6521_s20, 1 }
   0x8   : > { %s7363_s24 = scalar_select %p111_p1, %s7245_s17, %s113_s22  }
   0x9   : > { %p7365_p5 = por %p124_p2, %p123_p0  ;;  %p7369_p6 = por %p130_p4, %p129_p3 }
   0xa   : > { %p6524_p7 = scmp.ge.s32.totalorder %s7249_s18, 1  ;;  %p165_p8 = scmp.lt.s32.totalorder %s7249_s18, 3 }
   0xc   : > { %p166_p9 = pnand %p6524_p7, %p165_p8 }
   0xd   : > { %p191_p10 = scmp.lt.s32.totalorder (!%p166_p9), %s7348_s19, 1  ;;  %v206_v0 = vlaneseq (!%p166_p9)  ;;  %v7251_v1 = vmov (!%p166_p9), 1983009808   ;;  %v7252_v4 = vmov (!%p166_p9), 0.0   ;;  %vm7253_vm0 = vmmov (!%p166_p9), 0   ;;  %s7254_s6 = smov (!%p166_p9), 127  }
   0xe   : > { %169 = sbr.rel (%p166_p9) target bundleno = 775 (0x307), region = 36  ;;  %v204_v2 = vunpack.c.l.s4 (!%p166_p9), %v7251_v1  ;;  %6779 = vmatprep.subr.bf16.mxu1 (!%p166_p9), %v7252_v4  ;;  %6781 = vmatprep.mubr.msk.bf16.mxu1 (!%p166_p9), %vm7253_vm0, %v7252_v4  ;;  %s7255_s7 = smov (!%p166_p9), 126   ;;  %v7257_v25 = vmov (!%p166_p9), 0   ;;  %vm231_vm1 = vcmask (!%p166_p9), 1040384   ;;  %vm232_vm2 = vcmask (!%p166_p9), 1041408  }
   0xf   : > { %v7377_v3 = vshrl.u32 (!%p166_p9), %v206_v0, 7  ;;  %s7256_s8 = smov (!%p166_p9), 125   ;;  %276 = vmatprep.mubr.bf16.mxu0 (!%p166_p9), %v7257_v25  ;;  %7164 = vset.pattern.permute.xlu0 (!%p166_p9), %v7257_v25  ;;  %s7258_s9 = smov (!%p166_p9), 124   ;;  %vm224_vm3 = vcmask (!%p166_p9), 1039360   ;;  %vm444_vm4 = vcmask (!%p166_p9), 1031168   ;;  %vm227_vm5 = vcmask (!%p166_p9), 23552  }
  0x10   : > { %v205_v5 = vunpack.c.0.s8 (!%p166_p9), %v204_v2  ;;  %s7259_s10 = smov (!%p166_p9), 123   ;;  %s7260_s11 = smov (!%p166_p9), 122   ;;  %vm569_vm6 = vcmask (!%p166_p9), 1022976   ;;  %vm694_vm7 = vcmask (!%p166_p9), 1014784   ;;  %vm819_vm8 = vcmask (!%p166_p9), 1006592  }
  0x11   : > { %s7261_s12 = smov (!%p166_p9), 106   ;;  %s7262_s13 = smov (!%p166_p9), 105   ;;  %vm944_vm9 = vcmask (!%p166_p9), 998400   ;;  %vm1069_vm10 = vcmask (!%p166_p9), 867328   ;;  %vm1194_vm11 = vcmask (!%p166_p9), 859136   ;;  %vm1319_vm12 = vcmask (!%p166_p9), 850944  }
  0x12   : > { %v7386_v6 = vsub.s32 (!%p166_p9), %v205_v5, %v7377_v3  ;;  %s7263_s14 = smov (!%p166_p9), 104   ;;  %s7264_s20 = smov (!%p166_p9), 103   ;;  %vm1444_vm13 = vcmask (!%p166_p9), 842752   ;;  %vm1569_vm14 = vcmask (!%p166_p9), 834560   ;;  %vm1694_vm15 = vcmask (!%p166_p9), 826368  }
  0x13   : > { %s7265_s22 = smov (!%p166_p9), 102   ;;  %s7266_s23 = smov (!%p166_p9), 101  }
  0x14   : > { %s7269_s29 = smov (!%p166_p9), 83   ;;  %s7270_s30 = smov (!%p166_p9), 82  }
  0x15   : > { %s192_s27 = scalar_select %p191_p10, %s7348_s19, 1 }
  0x17   : > { %s6678_s28 = sshll.u32 %s192_s27, 3  ;;  %s7267_s27 = smov 100  }
  0x18   : > { %s7383_s5 = scalar_lea.vmem %s8583_s0, %s6678_s28  ;;  %s7268_s28 = smov 84  }
  0x19   : > { %v197_v7 = vld [vmem:[%s7383_s5] sm:$0x3f] }
  0x1a   : > { %v418_v8 = vld [vmem:[%s7383_s5] sm:$0x3f]  ;;  %v7393_v9 = vrot.slane %v197_v7, %v7386_v6  ;;  %v202_v10 = vcombine.high %v197_v7, %v197_v7 }
  0x1b   : > { %v429_v11 = vrot.slane %v418_v8, %v7386_v6  ;;  %v422_v15 = vcombine.high %v418_v8, %v418_v8  ;;  %v543_v16 = vld [vmem:[%s7383_s5] sm:$0x3f] }
  0x1c   : > { %218 = vrot.lane.b32.xlu1 %v7393_v9, %s7254_s6  ;;  %v7399_v12 = vcombine.high %v7393_v9, %v7393_v9  ;;  %v7403_v14 = vrot.slane %v202_v10, %v7386_v6  ;;  %v547_v17 = vcombine.high %v543_v16, %v543_v16  ;;  %v668_v18 = vld [vmem:[%s7383_s5] sm:$0x3f]  ;;  %v554_v20 = vrot.slane %v543_v16, %v7386_v6 }
  0x1d   : > { %v437_v13 = vcombine.high %v429_v11, %v429_v11  ;;  %v436_v19 = vrot.slane %v422_v15, %v7386_v6  ;;  %v679_v22 = vrot.slane %v668_v18, %v7386_v6  ;;  %v672_v26 = vcombine.high %v668_v18, %v668_v18  ;;  %v793_v27 = vld [vmem:[%s7383_s5] sm:$0x3f] }
  0x1e   : > { %220 = vrot.lane.b32.xlu0 %v7399_v12, %s7254_s6  ;;  %v561_v21 = vrot.slane %v547_v17, %v7386_v6  ;;  %v562_v23 = vcombine.high %v554_v20, %v554_v20  ;;  %v797_v28 = vcombine.high %v793_v27, %v793_v27  ;;  %v918_v29 = vld [vmem:[%s7383_s5] sm:$0x3f]  ;;  %v804_v31 = vrot.slane %v793_v27, %v7386_v6 }
  0x1f   : > { %v687_v24 = vcombine.high %v679_v22, %v679_v22  ;;  %v686_v30 = vrot.slane %v672_v26, %v7386_v6  ;;  %v929_v33 = vrot.slane %v918_v29, %v7386_v6  ;;  %v922_v36 = vcombine.high %v918_v29, %v918_v29  ;;  %v1043_v37 = vld [vmem:[%s7383_s5] sm:$0x3f] }
  0x20   : > { %440 = vrot.lane.b32.xlu1 %v437_v13, %s7255_s7  ;;  %v811_v32 = vrot.slane %v797_v28, %v7386_v6  ;;  %v812_v34 = vcombine.high %v804_v31, %v804_v31  ;;  %v1047_v38 = vcombine.high %v1043_v37, %v1043_v37  ;;  %v1168_v39 = vld [vmem:[%s7383_s5] sm:$0x3f]  ;;  %v1054_v41 = vrot.slane %v1043_v37, %v7386_v6 }
  0x21   : > { %v937_v35 = vcombine.high %v929_v33, %v929_v33  ;;  %v936_v40 = vrot.slane %v922_v36, %v7386_v6  ;;  %v1179_v43 = vrot.slane %v1168_v39, %v7386_v6  ;;  %v1172_v46 = vcombine.high %v1168_v39, %v1168_v39  ;;  %v1293_v47 = vld [vmem:[%s7383_s5] sm:$0x3f] }
  0x22   : > { %222 = vrot.lane.b32.xlu0 %v7403_v14, %s7254_s6  ;;  %v1061_v42 = vrot.slane %v1047_v38, %v7386_v6  ;;  %v1062_v44 = vcombine.high %v1054_v41, %v1054_v41  ;;  %v1297_v48 = vcombine.high %v1293_v47, %v1293_v47  ;;  %v1418_v49 = vld [vmem:[%s7383_s5] sm:$0x3f]  ;;  %v1304_v51 = vrot.slane %v1293_v47, %v7386_v6  ;;  %s7271_s6 = smov 81  }
  0x23   : > { %v1187_v45 = vcombine.high %v1179_v43, %v1179_v43  ;;  %v1186_v50 = vrot.slane %v1172_v46, %v7386_v6  ;;  %v1429_v53 = vrot.slane %v1418_v49, %v7386_v6  ;;  %v1422_v56 = vcombine.high %v1418_v49, %v1418_v49  ;;  %v1543_v57 = vld [vmem:[%s7383_s5] sm:$0x3f] }
  0x24   : > { %438 = vrot.lane.b32.xlu1 %v429_v11, %s7255_s7  ;;  %v1311_v52 = vrot.slane %v1297_v48, %v7386_v6  ;;  %v1312_v54 = vcombine.high %v1304_v51, %v1304_v51  ;;  %v1547_v58 = vcombine.high %v1543_v57, %v1543_v57  ;;  %v1668_v59 = vld [vmem:[%s7383_s5] sm:$0x3f]  ;;  %v1554_v61 = vrot.slane %v1543_v57, %v7386_v6 }
  0x25   : > { %v1437_v55 = vcombine.high %v1429_v53, %v1429_v53  ;;  %v1436_v60 = vrot.slane %v1422_v56, %v7386_v6  ;;  %v1679_v63 = vrot.slane %v1668_v59, %v7386_v6  ;;  %v1672_v2 = vcombine.high %v1668_v59, %v1668_v59  ;;  %v1793_v5 = vld [vmem:[%s7383_s5] sm:$0x3f] }
  0x26   : > { %442 = vrot.lane.b32.xlu0 %v436_v19, %s7255_s7  ;;  %v1561_v62 = vrot.slane %v1547_v58, %v7386_v6  ;;  %v1562_v0 = vcombine.high %v1554_v61, %v1554_v61  ;;  %v1797_v7 = vcombine.high %v1793_v5, %v1793_v5  ;;  %v1918_v8 = vld [vmem:[%s7383_s5] sm:$0xff]  ;;  %v1804_v11 = vrot.slane %v1793_v5, %v7386_v6  ;;  %s7272_s7 = smov 80  }
  0x27   : > { %v1687_v1 = vcombine.high %v1679_v63, %v1679_v63  ;;  %v1686_v10 = vrot.slane %v1672_v2, %v7386_v6  ;;  %v7453_v15 = vrot.slane %v1918_v8, %v7386_v6  ;;  %v1922_v18 = vcombine.high %v1918_v8, %v1918_v8  ;;  %v6527_v37 = vld [vmem:[%s8584_s1 + $0x4] sm:$0xf] }
  0x28   : > { %567 = vrot.lane.b32.xlu1 %v561_v21, %s7256_s8  ;;  %v1811_v13 = vrot.slane %v1797_v7, %v7386_v6  ;;  %v1812_v16 = vcombine.high %v1804_v11, %v1804_v11 }
  0x29   : > { %v7457_v17 = vcombine.high %v7453_v15, %v7453_v15  ;;  %v7461_v19 = vrot.slane %v1922_v18, %v7386_v6  ;;  %v6538_v18 = vld [vmem:[%s8584_s1 + $0x10] sm:$0xf] }
  0x2a   : > { %565 = vrot.lane.b32.xlu0 %v562_v23, %s7256_s8  ;;  %v7274_v23 = vmov 65535  }
  0x2c   : > { %690 = vrot.lane.b32.xlu1 %v687_v24, %s7258_s9  ;;  %v233_v24 = vsel %vm231_vm1, 4294967295, %v7274_v23  ;;  %vm1819_vm1 = vcmask 818176  }
  0x2d   : > { %v7488_v27 = vsel %vm232_vm2, %v233_v24, 0  ;;  %vm1947_vm2 = vcmask 687104  }
  0x2e   : > { %563 = vrot.lane.b32.xlu0 %v554_v20, %s7256_s8  ;;  %v7467_v20 = vcombine.high %v7461_v19, %v7461_v19  ;;  %s7273_s8 = smov 79   ;;  %v329_v38 = vand.u32 %v7488_v27, %v7393_v9 }
  0x30   : > { %688 = vrot.lane.b32.xlu1 %v679_v22, %s7258_s9 }
  0x32   : > { %692 = vrot.lane.b32.xlu0 %v686_v30, %s7258_s9 }
  0x34   : > { %817 = vrot.lane.b32.xlu1 %v811_v32, %s7259_s10  ;;  %v332_v32 = vand.u32 %v7488_v27, %v7399_v12 }
  0x36   : > { %815 = vrot.lane.b32.xlu0 %v812_v34, %s7259_s10 }
  0x38   : > { %940 = vrot.lane.b32.xlu1 %v937_v35, %s7260_s11  ;;  %v335_v35 = vand.u32 %v7488_v27, %v7403_v14 }
  0x3a   : > { %813 = vrot.lane.b32.xlu0 %v804_v31, %s7259_s10 }
  0x3c   : > { %938 = vrot.lane.b32.xlu1 %v929_v33, %s7260_s11 }
  0x3e   : > { %942 = vrot.lane.b32.xlu0 %v936_v40, %s7260_s11 }
  0x40   : > { %1067 = vrot.lane.b32.xlu1 %v1061_v42, %s7261_s12 }
  0x42   : > { %1065 = vrot.lane.b32.xlu0 %v1062_v44, %s7261_s12  ;;  %v198_v44 = vld [vmem:[%s8584_s1] sm:$0xf] }
  0x44   : > { %1190 = vrot.lane.b32.xlu1 %v1187_v45, %s7262_s13 }
  0x46   : > { %1063 = vrot.lane.b32.xlu0 %v1054_v41, %s7261_s12  ;;  %s7278_s12 = smov 60  }
  0x48   : > { %1188 = vrot.lane.b32.xlu1 %v1179_v43, %s7262_s13 }
  0x4a   : > { %1192 = vrot.lane.b32.xlu0 %v1186_v50, %s7262_s13  ;;  %s7290_s13 = smov 18  }
  0x4c   : > { %1317 = vrot.lane.b32.xlu1 %v1311_v52, %s7263_s14 }
  0x4e   : > { %1315 = vrot.lane.b32.xlu0 %v1312_v54, %s7263_s14  ;;  %v6532_v54 = vld [vmem:[%s8584_s1 + $0x8] sm:$0xf] }
  0x50   : > { %1440 = vrot.lane.b32.xlu1 %v1437_v55, %s7264_s20 }
  0x52   : > { %1313 = vrot.lane.b32.xlu0 %v1304_v51, %s7263_s14  ;;  %s7275_s14 = smov 78  }
  0x54   : > { %1438 = vrot.lane.b32.xlu1 %v1429_v53, %s7264_s20 }
  0x56   : > { %1442 = vrot.lane.b32.xlu0 %v1436_v60, %s7264_s20  ;;  %s7282_s20 = smov 56  }
  0x58   : > { %1567 = vrot.lane.b32.xlu1 %v1561_v62, %s7265_s22 }
  0x5a   : > { %1565 = vrot.lane.b32.xlu0 %v1562_v0, %s7265_s22  ;;  %v6535_v0 = vld [vmem:[%s8584_s1 + $0xc] sm:$0xf] }
  0x5c   : > { %1690 = vrot.lane.b32.xlu1 %v1687_v1, %s7266_s23 }
  0x5e   : > { %1563 = vrot.lane.b32.xlu0 %v1554_v61, %s7265_s22  ;;  %s7291_s22 = smov 17  }
  0x60   : > { %1688 = vrot.lane.b32.xlu1 %v1679_v63, %s7266_s23 }
  0x62   : > { %1692 = vrot.lane.b32.xlu0 %v1686_v10, %s7266_s23  ;;  %s7279_s23 = smov 59  }
  0x64   : > { %1817 = vrot.lane.b32.xlu1 %v1811_v13, %s7267_s27 }
  0x66   : > { %1815 = vrot.lane.b32.xlu0 %v1812_v16, %s7267_s27 }
  0x68   : > { %1941 = vrot.lane.b32.xlu1 %v7457_v17, %s7268_s28 }
  0x6a   : > { %1813 = vrot.lane.b32.xlu0 %v1804_v11, %s7267_s27  ;;  %s7283_s27 = smov 40  }
  0x6c   : > { %1939 = vrot.lane.b32.xlu1 %v7453_v15, %s7268_s28 }
  0x6e   : > { %1943 = vrot.lane.b32.xlu0 %v7461_v19, %s7268_s28 }
  0x70   : > { %2070 = vrot.lane.b32.xlu1 %v7457_v17, %s7269_s29 }
  0x72   : > { %1945 = vrot.lane.b32.xlu0 %v7467_v20, %s7268_s28  ;;  %s7276_s28 = smov 62  }
  0x74   : > { %2068 = vrot.lane.b32.xlu1 %v7453_v15, %s7269_s29 }
  0x76   : > { %2072 = vrot.lane.b32.xlu0 %v7461_v19, %s7269_s29 }
  0x78   : > { %2199 = vrot.lane.b32.xlu1 %v7457_v17, %s7270_s30 }
  0x7a   : > { %2074 = vrot.lane.b32.xlu0 %v7467_v20, %s7269_s29  ;;  %s7280_s29 = smov 58  }
  0x7c   : > { %2197 = vrot.lane.b32.xlu1 %v7453_v15, %s7270_s30 }
  0x7e   : > { %2201 = vrot.lane.b32.xlu0 %v7461_v19, %s7270_s30 }
  0x80   : > { %2328 = vrot.lane.b32.xlu1 %v7457_v17, %s7271_s6 }
  0x82   : > { %2203 = vrot.lane.b32.xlu0 %v7467_v20, %s7270_s30  ;;  %s7284_s30 = smov 39  }
  0x84   : > { %2326 = vrot.lane.b32.xlu1 %v7453_v15, %s7271_s6 }
  0x86   : > { %2330 = vrot.lane.b32.xlu0 %v7461_v19, %s7271_s6 }
  0x88   : > { %2457 = vrot.lane.b32.xlu1 %v7457_v17, %s7272_s7 }
  0x8a   : > { %2332 = vrot.lane.b32.xlu0 %v7467_v20, %s7271_s6  ;;  %s7277_s6 = smov 61  }
  0x8c   : > { %2455 = vrot.lane.b32.xlu1 %v7453_v15, %s7272_s7 }
  0x8e   : > { %v219_v21 = vpop.permute.xlu1 %218  ;;  %2459 = vrot.lane.b32.xlu0 %v7461_v19, %s7272_s7 }
  0x90   : > { %v221_v22 = vpop.permute.xlu0 %220  ;;  %2586 = vrot.lane.b32.xlu1 %v7457_v17, %s7273_s8 }
  0x91   : > { %v225_v29 = vsel %vm224_vm3, %v219_v21, %v221_v22 }
  0x92   : > { %v441_v26 = vpop.permute.xlu1 %440  ;;  %2461 = vrot.lane.b32.xlu0 %v7467_v20, %s7272_s7  ;;  %v236_v36 = vand.u32 %v7488_v27, %v225_v29  ;;  %s7281_s7 = smov 57  }
  0x94   : > { %v223_v28 = vpop.permute.xlu0 %222  ;;  %2584 = vrot.lane.b32.xlu1 %v7453_v15, %s7273_s8 }
  0x95   : > { %v242_v30 = vand.u32 %v7488_v27, %v223_v28  ;;  %v226_v31 = vsel %vm224_vm3, %v221_v22, %v223_v28  ;;  %vm2076_vm3 = vcmask 678912  }
  0x96   : > { %v239_v33 = vand.u32 %v7488_v27, %v226_v31  ;;  %v439_v34 = vpop.permute.xlu1 %438  ;;  %2588 = vrot.lane.b32.xlu0 %v7461_v19, %s7273_s8 }
  0x97   : > { %6780 = vmatpush3.bf16.msra.mxu1 %v242_v30  ;;  %v445_v9 = vsel %vm444_vm4, %v439_v34, %v441_v26 }
  0x98   : > { %244 = vmatprep.subr.bf16.mxu0 %v239_v33  ;;  %6785 = vmatprep.subr.bf16.mxu1 %v7252_v4  ;;  %v443_v12 = vpop.permute.xlu0 %442  ;;  %v451_v47 = vand.u32 %v445_v9, %v7488_v27 }
  0x99   : > { %245 = vmatpush1.bf16.msra.mxu0 %v236_v36  ;;  %v446_v39 = vsel %vm444_vm4, %v441_v26, %v443_v12  ;;  %2715 = vrot.lane.b32.xlu1 %v7457_v17, %s7275_s14  ;;  %v457_v43 = vand.u32 %v443_v12, %v7488_v27  ;;  %vm2205_vm4 = vcmask 670720  }
  0x9a   : > { %6782 = vmatmul.mubr.msk.bf16.vlgmr.msra.gmra.mrb[0].mxu1 %vm227_vm5, %v6527_v37  ;;  %337 = vmatprep.subr.bf16.mxu0 %v332_v32  ;;  %v454_v14 = vand.u32 %v446_v39, %v7488_v27  ;;  %v568_v40 = vpop.permute.xlu1 %567  ;;  %v6541_v32 = vld [vmem:[%s8584_s1 + $0x14] sm:$0xf] }
  0x9b   : > { %6786 = vmatpush3.bf16.msra.mxu1 %v335_v35  ;;  %6787 = vmatprep.mubr.msk.bf16.mxu1 %vm7253_vm0, %v7252_v4  ;;  %v582_v53 = vand.u32 %v568_v40, %v7488_v27 }
  0x9c   : > { %6528 = vmatmul.mubr.msk.bf16.vlgmr.msra.gmra.mrb[0].mxu0 %vm227_vm5, %v6527_v37  ;;  %v566_v41 = vpop.permute.xlu0 %565  ;;  %6791 = vmatprep.subr.bf16.mxu1 %v7252_v4 }
  0x9d   : > { %338 = vmatpush1.bf16.msra.mxu0 %v329_v38  ;;  %369 = vmatprep.mubr.bf16.mxu0 %v7257_v25  ;;  %v571_v45 = vsel %vm569_vm6, %v566_v41, %v568_v40  ;;  %v6544_v40 = vld [vmem:[%s8584_s1 + $0x18] sm:$0xf] }
  0x9e   : > { %459 = vmatprep.subr.bf16.mxu0 %v454_v14  ;;  %v691_v42 = vpop.permute.xlu1 %690  ;;  %2590 = vrot.lane.b32.xlu0 %v7467_v20, %s7273_s8  ;;  %v579_v48 = vand.u32 %v571_v45, %v7488_v27  ;;  %s7285_s8 = smov 38  }
  0x9f   : > { %2713 = vrot.lane.b32.xlu1 %v7453_v15, %s7275_s14 }
  0xa0   : > { %v564_v46 = vpop.permute.xlu0 %563 }
  0xa1   : > { %v570_v51 = vsel %vm569_vm6, %v564_v46, %v566_v41  ;;  %vm2334_vm6 = vcmask 662528  }
  0xa2   : > { %6788 = vmatmul.mubr.msk.bf16.vlgmr.msra.gmra.mrb[4].mxu1 %vm227_vm5, %v198_v44  ;;  %v689_v49 = vpop.permute.xlu1 %688  ;;  %2717 = vrot.lane.b32.xlu0 %v7461_v19, %s7275_s14  ;;  %v576_v57 = vand.u32 %v570_v51, %v7488_v27 }
  0xa3   : > { %6792 = vmatpush3.bf16.msra.mxu1 %v457_v43  ;;  %6793 = vmatprep.mubr.msk.bf16.mxu1 %vm7253_vm0, %v7252_v4  ;;  %v695_v61 = vsel %vm694_vm7, %v689_v49, %v691_v42  ;;  %v6547_v49 = vld [vmem:[%s8584_s1 + $0x1c] sm:$0xf] }
  0xa4   : > { %6530 = vmatmul.mubr.msk.bf16.vlgmr.msra.gmra.mrb[4].mxu0 %vm227_vm5, %v198_v44  ;;  %6797 = vmatprep.subr.bf16.mxu1 %v7252_v4  ;;  %v693_v50 = vpop.permute.xlu0 %692  ;;  %v701_v5 = vand.u32 %v695_v61, %v7488_v27 }
  0xa5   : > { %460 = vmatpush1.bf16.msra.mxu0 %v451_v47  ;;  %491 = vmatprep.mubr.bf16.mxu0 %v7257_v25  ;;  %v696_v55 = vsel %vm694_vm7, %v691_v42, %v693_v50  ;;  %v707_v63 = vand.u32 %v693_v50, %v7488_v27 }
  0xa6   : > { %584 = vmatprep.subr.bf16.mxu0 %v579_v48  ;;  %v818_v52 = vpop.permute.xlu1 %817  ;;  %2719 = vrot.lane.b32.xlu0 %v7467_v20, %s7275_s14  ;;  %v704_v58 = vand.u32 %v696_v55, %v7488_v27  ;;  %s7286_s14 = smov 37  }
  0xa7   : > { %2844 = vrot.lane.b32.xlu1 %v7457_v17, %s7276_s28  ;;  %v832_v16 = vand.u32 %v818_v52, %v7488_v27 }
  0xa8   : > { %v816_v56 = vpop.permute.xlu0 %815 }
  0xa9   : > { %v821_v1 = vsel %vm819_vm8, %v816_v56, %v818_v52 }
  0xaa   : > { %6794 = vmatmul.mubr.msk.bf16.vlgmr.msra.gmra.mrb[8].mxu1 %vm227_vm5, %v6532_v54  ;;  %v941_v59 = vpop.permute.xlu1 %940  ;;  %2846 = vrot.lane.b32.xlu0 %v7461_v19, %s7276_s28  ;;  %v829_v7 = vand.u32 %v821_v1, %v7488_v27 }
  0xab   : > { %6798 = vmatpush3.bf16.msra.mxu1 %v582_v53  ;;  %6799 = vmatprep.mubr.msk.bf16.mxu1 %vm7253_vm0, %v7252_v4 }
  0xac   : > { %6533 = vmatmul.mubr.msk.bf16.vlgmr.msra.gmra.mrb[8].mxu0 %vm227_vm5, %v6532_v54  ;;  %6803 = vmatprep.subr.bf16.mxu1 %v7252_v4  ;;  %v814_v60 = vpop.permute.xlu0 %813 }
  0xad   : > { %585 = vmatpush1.bf16.msra.mxu0 %v576_v57  ;;  %616 = vmatprep.mubr.bf16.mxu0 %v7257_v25  ;;  %v820_v11 = vsel %vm819_vm8, %v814_v60, %v816_v56 }
  0xae   : > { %709 = vmatprep.subr.bf16.mxu0 %v704_v58  ;;  %v939_v62 = vpop.permute.xlu1 %938  ;;  %2842 = vrot.lane.b32.xlu1 %v7453_v15, %s7276_s28  ;;  %v826_v23 = vand.u32 %v820_v11, %v7488_v27 }
  0xaf   : > { %2848 = vrot.lane.b32.xlu0 %v7467_v20, %s7276_s28  ;;  %v945_v29 = vsel %vm944_vm9, %v939_v62, %v941_v59  ;;  %s7292_s28 = smov 16  }
  0xb0   : > { %v943_v2 = vpop.permute.xlu0 %942  ;;  %v951_v35 = vand.u32 %v945_v29, %v7488_v27 }
  0xb1   : > { %v946_v21 = vsel %vm944_vm9, %v941_v59, %v943_v2  ;;  %v957_v31 = vand.u32 %v943_v2, %v7488_v27  ;;  %v6550_v59 = vld [vmem:[%s8584_s1 + $0x20] sm:$0xf] }
  0xb2   : > { %6800 = vmatmul.mubr.msk.bf16.vlgmr.msra.gmra.mrb[12].mxu1 %vm227_vm5, %v6535_v0  ;;  %v7566_v8 = vpop.permute.xlu1 %1067  ;;  %2973 = vrot.lane.b32.xlu1 %v7457_v17, %s7277_s6  ;;  %v954_v24 = vand.u32 %v946_v21, %v7488_v27 }
  0xb3   : > { %6804 = vmatpush3.bf16.msra.mxu1 %v707_v63  ;;  %6805 = vmatprep.mubr.msk.bf16.mxu1 %vm7253_vm0, %v7252_v4  ;;  %v1082_v14 = vand.u32 %v7566_v8, %v7488_v27 }
  0xb4   : > { %6536 = vmatmul.mubr.msk.bf16.vlgmr.msra.gmra.mrb[12].mxu0 %vm227_vm5, %v6535_v0  ;;  %6809 = vmatprep.subr.bf16.mxu1 %v7252_v4  ;;  %v1066_v10 = vpop.permute.xlu0 %1065 }
  0xb5   : > { %710 = vmatpush1.bf16.msra.mxu0 %v701_v5  ;;  %741 = vmatprep.mubr.bf16.mxu0 %v7257_v25  ;;  %v1071_v33 = vsel %vm1069_vm10, %v1066_v10, %v7566_v8  ;;  %v6553_v8 = vld [vmem:[%s8584_s1 + $0x24] sm:$0xf] }
  0xb6   : > { %834 = vmatprep.subr.bf16.mxu0 %v829_v7  ;;  %2975 = vrot.lane.b32.xlu0 %v7461_v19, %s7277_s6  ;;  %v7576_v13 = vpop.permute.xlu1 %1190  ;;  %v1079_v36 = vand.u32 %v1071_v33, %v7488_v27 }
  0xb7   : > { %2971 = vrot.lane.b32.xlu1 %v7453_v15, %s7277_s6 }
  0xb8   : > { %v1064_v22 = vpop.permute.xlu0 %1063 }
  0xb9   : > { %v1070_v38 = vsel %vm1069_vm10, %v1064_v22, %v1066_v10  ;;  %vm2463_vm10 = vcmask 654336  }
  0xba   : > { %6806 = vmatmul.mubr.msk.bf16.vlgmr.msra.gmra.mrb[16].mxu1 %vm227_vm5, %v6538_v18  ;;  %2977 = vrot.lane.b32.xlu0 %v7467_v20, %s7277_s6  ;;  %v1189_v26 = vpop.permute.xlu1 %1188  ;;  %v1076_v42 = vand.u32 %v1070_v38, %v7488_v27  ;;  %s7293_s6 = smov 15  }
  0xbb   : > { %6810 = vmatpush3.bf16.msra.mxu1 %v832_v16  ;;  %6811 = vmatprep.mubr.msk.bf16.mxu1 %vm7253_vm0, %v7252_v4  ;;  %v1195_v46 = vsel %vm1194_vm11, %v1189_v26, %v7576_v13  ;;  %v6556_v26 = vld [vmem:[%s8584_s1 + $0x28] sm:$0xf] }
  0xbc   : > { %6539 = vmatmul.mubr.msk.bf16.vlgmr.msra.gmra.mrb[16].mxu0 %vm227_vm5, %v6538_v18  ;;  %6815 = vmatprep.subr.bf16.mxu1 %v7252_v4  ;;  %v7592_v28 = vpop.permute.xlu0 %1192  ;;  %v1201_v52 = vand.u32 %v1195_v46, %v7488_v27 }
  0xbd   : > { %835 = vmatpush1.bf16.msra.mxu0 %v826_v23  ;;  %866 = vmatprep.mubr.bf16.mxu0 %v7257_v25  ;;  %v1196_v41 = vsel %vm1194_vm11, %v7576_v13, %v7592_v28  ;;  %v1207_v48 = vand.u32 %v7592_v28, %v7488_v27  ;;  %vm2592_vm11 = vcmask 646144  }
  0xbe   : > { %959 = vmatprep.subr.bf16.mxu0 %v954_v24  ;;  %3102 = vrot.lane.b32.xlu1 %v7457_v17, %s7278_s12  ;;  %v7597_v30 = vpop.permute.xlu1 %1317  ;;  %v1204_v43 = vand.u32 %v1196_v41, %v7488_v27 }
  0xbf   : > { %3104 = vrot.lane.b32.xlu0 %v7461_v19, %s7278_s12  ;;  %v1332_v58 = vand.u32 %v7597_v30, %v7488_v27 }
  0xc0   : > { %v1316_v34 = vpop.permute.xlu0 %1315 }
  0xc1   : > { %v1321_v50 = vsel %vm1319_vm12, %v1316_v34, %v7597_v30 }
  0xc2   : > { %6812 = vmatmul.mubr.msk.bf16.vlgmr.msra.gmra.mrb[20].mxu1 %vm227_vm5, %v6541_v32  ;;  %3100 = vrot.lane.b32.xlu1 %v7453_v15, %s7278_s12  ;;  %v7610_v37 = vpop.permute.xlu1 %1440  ;;  %v1329_v53 = vand.u32 %v1321_v50, %v7488_v27 }
  0xc3   : > { %6816 = vmatpush3.bf16.msra.mxu1 %v957_v31  ;;  %6817 = vmatprep.mubr.msk.bf16.mxu1 %vm7253_vm0, %v7252_v4 }
  0xc4   : > { %6542 = vmatmul.mubr.msk.bf16.vlgmr.msra.gmra.mrb[20].mxu0 %vm227_vm5, %v6541_v32  ;;  %6821 = vmatprep.subr.bf16.mxu1 %v7252_v4  ;;  %v1314_v12 = vpop.permute.xlu0 %1313 }
  0xc5   : > { %960 = vmatpush1.bf16.msra.mxu0 %v951_v35  ;;  %991 = vmatprep.mubr.bf16.mxu0 %v7257_v25  ;;  %v1320_v56 = vsel %vm1319_vm12, %v1314_v12, %v1316_v34  ;;  %vm2721_vm12 = vcmask 637952  }
  0xc6   : > { %1084 = vmatprep.subr.bf16.mxu0 %v1079_v36  ;;  %3106 = vrot.lane.b32.xlu0 %v7467_v20, %s7278_s12  ;;  %v7619_v39 = vpop.permute.xlu1 %1438  ;;  %v1326_v62 = vand.u32 %v1320_v56, %v7488_v27  ;;  %v6565_v56 = vld [vmem:[%s8584_s1 + $0x34] sm:$0xf]  ;;  %s7294_s12 = smov 14  }
  0xc7   : > { %3231 = vrot.lane.b32.xlu1 %v7457_v17, %s7279_s23  ;;  %v1445_v2 = vsel %vm1444_vm13, %v7619_v39, %v7610_v37 }
  0xc8   : > { %v7630_v9 = vpop.permute.xlu0 %1442  ;;  %v1451_v13 = vand.u32 %v1445_v2, %v7488_v27  ;;  %v6568_v2 = vld [vmem:[%s8584_s1 + $0x38] sm:$0xf] }
  0xc9   : > { %v1446_v60 = vsel %vm1444_vm13, %v7610_v37, %v7630_v9  ;;  %v1457_v7 = vand.u32 %v7630_v9, %v7488_v27  ;;  %v6559_v37 = vld [vmem:[%s8584_s1 + $0x2c] sm:$0xf]  ;;  %vm2850_vm13 = vcmask 506880  }
  0xca   : > { %6818 = vmatmul.mubr.msk.bf16.vlgmr.msra.gmra.mrb[24].mxu1 %vm227_vm5, %v6544_v40  ;;  %3233 = vrot.lane.b32.xlu0 %v7461_v19, %s7279_s23  ;;  %v7636_v44 = vpop.permute.xlu1 %1567  ;;  %v1454_v63 = vand.u32 %v1446_v60, %v7488_v27 }
  0xcb   : > { %6822 = vmatpush3.bf16.msra.mxu1 %v1082_v14  ;;  %6823 = vmatprep.mubr.msk.bf16.mxu1 %vm7253_vm0, %v7252_v4  ;;  %v1582_v24 = vand.u32 %v7636_v44, %v7488_v27 }
  0xcc   : > { %6545 = vmatmul.mubr.msk.bf16.vlgmr.msra.gmra.mrb[24].mxu0 %vm227_vm5, %v6544_v40  ;;  %6827 = vmatprep.subr.bf16.mxu1 %v7252_v4  ;;  %v7642_v45 = vpop.permute.xlu0 %1565 }
  0xcd   : > { %1085 = vmatpush1.bf16.msra.mxu0 %v1076_v42  ;;  %1116 = vmatprep.mubr.bf16.mxu0 %v7257_v25  ;;  %v1571_v10 = vsel %vm1569_vm14, %v7642_v45, %v7636_v44 }
  0xce   : > { %1209 = vmatprep.subr.bf16.mxu0 %v1204_v43  ;;  %3229 = vrot.lane.b32.xlu1 %v7453_v15, %s7279_s23  ;;  %v7648_v47 = vpop.permute.xlu1 %1690  ;;  %v1579_v16 = vand.u32 %v1571_v10, %v7488_v27 }
  0xcf   : > { %3235 = vrot.lane.b32.xlu0 %v7467_v20, %s7279_s23  ;;  %s7287_s23 = smov 36  }
  0xd0   : > { %v1564_v51 = vpop.permute.xlu0 %1563 }
  0xd1   : > { %v1570_v22 = vsel %vm1569_vm14, %v1564_v51, %v7642_v45  ;;  %v6562_v45 = vld [vmem:[%s8584_s1 + $0x30] sm:$0xf]  ;;  %vm2979_vm14 = vcmask 498688  }
  0xd2   : > { %6824 = vmatmul.mubr.msk.bf16.vlgmr.msra.gmra.mrb[28].mxu1 %vm227_vm5, %v6547_v49  ;;  %3360 = vrot.lane.b32.xlu1 %v7457_v17, %s7280_s29  ;;  %v7662_v54 = vpop.permute.xlu1 %1688  ;;  %v1576_v30 = vand.u32 %v1570_v22, %v7488_v27  ;;  %v6571_v22 = vld [vmem:[%s8584_s1 + $0x3c] sm:$0xf] }
  0xd3   : > { %6828 = vmatpush3.bf16.msra.mxu1 %v1207_v48  ;;  %6829 = vmatprep.mubr.msk.bf16.mxu1 %vm7253_vm0, %v7252_v4  ;;  %v1695_v34 = vsel %vm1694_vm15, %v7662_v54, %v7648_v47 }
  0xd4   : > { %6548 = vmatmul.mubr.msk.bf16.vlgmr.msra.gmra.mrb[28].mxu0 %vm227_vm5, %v6547_v49  ;;  %6833 = vmatprep.subr.bf16.mxu1 %v7252_v4  ;;  %v7668_v55 = vpop.permute.xlu0 %1692  ;;  %v1701_v39 = vand.u32 %v1695_v34, %v7488_v27 }
  0xd5   : > { %1210 = vmatpush1.bf16.msra.mxu0 %v1201_v52  ;;  %1241 = vmatprep.mubr.bf16.mxu0 %v7257_v25  ;;  %v1696_v28 = vsel %vm1694_vm15, %v7648_v47, %v7668_v55  ;;  %v1707_v36 = vand.u32 %v7668_v55, %v7488_v27  ;;  %vm3108_vm15 = vcmask 490496  }
  0xd6   : > { %1334 = vmatprep.subr.bf16.mxu0 %v1329_v53  ;;  %3362 = vrot.lane.b32.xlu0 %v7461_v19, %s7280_s29  ;;  %v7673_v57 = vpop.permute.xlu1 %1817  ;;  %v1704_v31 = vand.u32 %v1696_v28, %v7488_v27 }
  0xd7   : > { %3358 = vrot.lane.b32.xlu1 %v7453_v15, %s7280_s29  ;;  %v1832_v43 = vand.u32 %v7673_v57, %v7488_v27 }
  0xd8   : > { %v7684_v61 = vpop.permute.xlu0 %1815 }
  0xd9   : > { %v1821_v12 = vsel %vm1819_vm1, %v7684_v61, %v7673_v57 }
  0xda   : > { %6830 = vmatmul.mubr.msk.bf16.vlgmr.msra.gmra.mrb[32].mxu1 %vm227_vm5, %v6550_v59  ;;  %3364 = vrot.lane.b32.xlu0 %v7467_v20, %s7280_s29  ;;  %v7690_v0 = vpop.permute.xlu1 %1941  ;;  %v1829_v14 = vand.u32 %v1821_v12, %v7488_v27  ;;  %s7288_s29 = smov 35  }
  0xdb   : > { %6834 = vmatpush3.bf16.msra.mxu1 %v1332_v58  ;;  %6835 = vmatprep.mubr.msk.bf16.mxu1 %vm7253_vm0, %v7252_v4 }
  0xdc   : > { %6551 = vmatmul.mubr.msk.bf16.vlgmr.msra.gmra.mrb[32].mxu0 %vm227_vm5, %v6550_v59  ;;  %6839 = vmatprep.subr.bf16.mxu1 %v7252_v4  ;;  %v7696_v1 = vpop.permute.xlu0 %1813 }
  0xdd   : > { %1335 = vmatpush1.bf16.msra.mxu0 %v1326_v62  ;;  %1366 = vmatprep.mubr.bf16.mxu0 %v7257_v25  ;;  %v1820_v9 = vsel %vm1819_vm1, %v7696_v1, %v7684_v61  ;;  %vm3237_vm1 = vcmask 482304  }
  0xde   : > { %1459 = vmatprep.subr.bf16.mxu0 %v1454_v63  ;;  %3489 = vrot.lane.b32.xlu1 %v7457_v17, %s7281_s7  ;;  %v7703_v5 = vpop.permute.xlu1 %1939  ;;  %v1826_v47 = vand.u32 %v1820_v9, %v7488_v27 }
  0xdf   : > { %3491 = vrot.lane.b32.xlu0 %v7461_v19, %s7281_s7  ;;  %v1948_v52 = vsel %vm1947_vm2, %v7703_v5, %v7690_v0 }
  0xe0   : > { %v7714_v11 = vpop.permute.xlu0 %1943  ;;  %v1955_v58 = vand.u32 %v1948_v52, %v7488_v27 }
  0xe1   : > { %v1949_v44 = vsel %vm1947_vm2, %v7690_v0, %v7714_v11 }
  0xe2   : > { %6836 = vmatmul.mubr.msk.bf16.vlgmr.msra.gmra.mrb[36].mxu1 %vm227_vm5, %v6553_v8  ;;  %3487 = vrot.lane.b32.xlu1 %v7453_v15, %s7281_s7  ;;  %v7720_v18 = vpop.permute.xlu1 %2070  ;;  %v1958_v48 = vand.u32 %v1949_v44, %v7488_v27 }
  0xe3   : > { %6840 = vmatpush3.bf16.msra.mxu1 %v1457_v7  ;;  %6841 = vmatprep.mubr.msk.bf16.mxu1 %vm7253_vm0, %v7252_v4 }
  0xe4   : > { %6554 = vmatmul.mubr.msk.bf16.vlgmr.msra.gmra.mrb[36].mxu0 %vm227_vm5, %v6553_v8  ;;  %6845 = vmatprep.subr.bf16.mxu1 %v7252_v4  ;;  %v7726_v21 = vpop.permute.xlu0 %1945 }
  0xe5   : > { %1460 = vmatpush1.bf16.msra.mxu0 %v1451_v13  ;;  %1491 = vmatprep.mubr.bf16.mxu0 %v7257_v25  ;;  %v1950_v50 = vsel %vm1947_vm2, %v7714_v11, %v7726_v21  ;;  %vm3366_vm2 = vcmask 474112  }
  0xe6   : > { %1584 = vmatprep.subr.bf16.mxu0 %v1579_v16  ;;  %3493 = vrot.lane.b32.xlu0 %v7467_v20, %s7281_s7  ;;  %v7732_v23 = vpop.permute.xlu1 %2068  ;;  %v1961_v54 = vand.u32 %v1950_v50, %v7488_v27  ;;  %s7289_s7 = smov 34  }
  0xe7   : > { %3618 = vrot.lane.b32.xlu1 %v7457_v17, %s7282_s20  ;;  %v2077_v63 = vsel %vm2076_vm3, %v7732_v23, %v7720_v18  ;;  %v4369_v23 = vld [vmem:[%s7383_s5] sm:$0xff] }
  0xe8   : > { %v7743_v29 = vpop.permute.xlu0 %2072  ;;  %v2084_v7 = vand.u32 %v2077_v63, %v7488_v27  ;;  %v6583_v63 = vld [vmem:[%s8584_s1 + $0x4c] sm:$0xf] }
  0xe9   : > { %v2078_v55 = vsel %vm2076_vm3, %v7720_v18, %v7743_v29 }
  0xea   : > { %6842 = vmatmul.mubr.msk.bf16.vlgmr.msra.gmra.mrb[40].mxu1 %vm227_vm5, %v6556_v26  ;;  %3620 = vrot.lane.b32.xlu0 %v7461_v19, %s7282_s20  ;;  %v7749_v32 = vpop.permute.xlu1 %2199  ;;  %v2087_v59 = vand.u32 %v2078_v55, %v7488_v27 }
  0xeb   : > { %6846 = vmatpush3.bf16.msra.mxu1 %v1582_v24  ;;  %6847 = vmatprep.mubr.msk.bf16.mxu1 %vm7253_vm0, %v7252_v4 }
  0xec   : > { %6557 = vmatmul.mubr.msk.bf16.vlgmr.msra.gmra.mrb[40].mxu0 %vm227_vm5, %v6556_v26  ;;  %6851 = vmatprep.subr.bf16.mxu1 %v7252_v4  ;;  %v7755_v33 = vpop.permute.xlu0 %2074 }
  0xed   : > { %1585 = vmatpush1.bf16.msra.mxu0 %v1576_v30  ;;  %3616 = vrot.lane.b32.xlu1 %v7453_v15, %s7282_s20  ;;  %v2079_v61 = vsel %vm2076_vm3, %v7743_v29, %v7755_v33  ;;  %v7907_v29 = vrot.slane %v4369_v23, %v7386_v6  ;;  %v4373_v30 = vcombine.high %v4369_v23, %v4369_v23  ;;  %vm3495_vm3 = vcmask 465920  }
  0xee   : > { %1709 = vmatprep.subr.bf16.mxu0 %v1704_v31  ;;  %1616 = vmatprep.mubr.bf16.mxu0 %v7257_v25  ;;  %v7762_v35 = vpop.permute.xlu1 %2197  ;;  %v2090_v0 = vand.u32 %v2079_v61, %v7488_v27 }
  0xef   : > { %3622 = vrot.lane.b32.xlu0 %v7467_v20, %s7282_s20  ;;  %v2206_v13 = vsel %vm2205_vm4, %v7762_v35, %v7749_v32  ;;  %v7927_v33 = vcombine.high %v7907_v29, %v7907_v29  ;;  %s7295_s20 = smov 13  }
  0xf0   : > { %v7773_v38 = vpop.permute.xlu0 %2201  ;;  %v2213_v26 = vand.u32 %v2206_v13, %v7488_v27 }
  0xf1   : > { %3747 = vrot.lane.b32.xlu1 %v7457_v17, %s7283_s27  ;;  %v2207_v1 = vsel %vm2205_vm4, %v7749_v32, %v7773_v38 }
  0xf2   : > { %6848 = vmatmul.mubr.msk.bf16.vlgmr.msra.gmra.mrb[44].mxu1 %vm227_vm5, %v6559_v37  ;;  %v7779_v40 = vpop.permute.xlu1 %2328  ;;  %v2216_v8 = vand.u32 %v2207_v1, %v7488_v27 }
  0xf3   : > { %6852 = vmatpush3.bf16.msra.mxu1 %v1707_v36  ;;  %3749 = vrot.lane.b32.xlu0 %v7461_v19, %s7283_s27  ;;  %v6574_v36 = vld [vmem:[%s8584_s1 + $0x40] sm:$0xf] }
  0xf4   : > { %6560 = vmatmul.mubr.msk.bf16.vlgmr.msra.gmra.mrb[44].mxu0 %vm227_vm5, %v6559_v37  ;;  %6853 = vmatprep.mubr.msk.bf16.mxu1 %vm7253_vm0, %v7252_v4  ;;  %v7785_v41 = vpop.permute.xlu0 %2203 }
  0xf5   : > { %1710 = vmatpush1.bf16.msra.mxu0 %v1701_v39  ;;  %6857 = vmatprep.subr.bf16.mxu1 %v7252_v4  ;;  %v2208_v11 = vsel %vm2205_vm4, %v7773_v38, %v7785_v41  ;;  %vm3624_vm4 = vcmask 457728  }
  0xf6   : > { %1834 = vmatprep.subr.bf16.mxu0 %v1829_v14  ;;  %3745 = vrot.lane.b32.xlu1 %v7453_v15, %s7283_s27  ;;  %v7792_v42 = vpop.permute.xlu1 %2326  ;;  %v2219_v18 = vand.u32 %v2208_v11, %v7488_v27 }
  0xf7   : > { %1741 = vmatprep.mubr.bf16.mxu0 %v7257_v25  ;;  %3751 = vrot.lane.b32.xlu0 %v7467_v20, %s7283_s27  ;;  %s7296_s27 = smov 12  }
  0xf8   : > { %v7804_v46 = vpop.permute.xlu0 %2330 }
  0xf9   : > { %v2336_v21 = vsel %vm2334_vm6, %v7779_v40, %v7804_v46 }
  0xfa   : > { %6854 = vmatmul.mubr.msk.bf16.vlgmr.msra.gmra.mrb[48].mxu1 %vm227_vm5, %v6562_v45  ;;  %3876 = vrot.lane.b32.xlu1 %v7457_v17, %s7284_s30  ;;  %v7810_v49 = vpop.permute.xlu1 %2457  ;;  %v2345_v28 = vand.u32 %v2336_v21, %v7488_v27 }
  0xfb   : > { %6858 = vmatpush3.bf16.msra.mxu1 %v1832_v43  ;;  %3878 = vrot.lane.b32.xlu0 %v7461_v19, %s7284_s30  ;;  %v6577_v43 = vld [vmem:[%s8584_s1 + $0x44] sm:$0xf] }
  0xfc   : > { %6563 = vmatmul.mubr.msk.bf16.vlgmr.msra.gmra.mrb[48].mxu0 %vm227_vm5, %v6562_v45  ;;  %6859 = vmatprep.mubr.msk.bf16.mxu1 %vm7253_vm0, %v7252_v4  ;;  %v7819_v51 = vpop.permute.xlu0 %2332 }
  0xfd   : > { %1835 = vmatpush1.bf16.msra.mxu0 %v1826_v47  ;;  %6863 = vmatprep.subr.bf16.mxu1 %v7252_v4  ;;  %v2337_v31 = vsel %vm2334_vm6, %v7804_v46, %v7819_v51 }
  0xfe   : > { %1963 = vmatprep.subr.bf16.mxu0 %v1958_v48  ;;  %3874 = vrot.lane.b32.xlu1 %v7453_v15, %s7284_s30  ;;  %v7826_v53 = vpop.permute.xlu1 %2455  ;;  %v2348_v34 = vand.u32 %v2337_v31, %v7488_v27 }
  0xff   : > { %1866 = vmatprep.mubr.bf16.mxu0 %v7257_v25  ;;  %3880 = vrot.lane.b32.xlu0 %v7467_v20, %s7284_s30  ;;  %v2464_v41 = vsel %vm2463_vm10, %v7826_v53, %v7810_v49  ;;  %v6580_v53 = vld [vmem:[%s8584_s1 + $0x48] sm:$0xf] }
 0x100   : > { %v7837_v57 = vpop.permute.xlu0 %2459  ;;  %v2471_v45 = vand.u32 %v2464_v41, %v7488_v27 }
 0x101   : > { %v2465_v35 = vsel %vm2463_vm10, %v7810_v49, %v7837_v57 }
 0x102   : > { %6860 = vmatmul.mubr.msk.bf16.vlgmr.msra.gmra.mrb[52].mxu1 %vm227_vm5, %v6565_v56  ;;  %4005 = vrot.lane.b32.xlu1 %v7457_v17, %s7285_s8  ;;  %v7843_v60 = vpop.permute.xlu1 %2586  ;;  %v2474_v38 = vand.u32 %v2465_v35, %v7488_v27 }
 0x103   : > { %6864 = vmatpush3.bf16.msra.mxu1 %v1961_v54  ;;  %4007 = vrot.lane.b32.xlu0 %v7461_v19, %s7285_s8 }
 0x104   : > { %6566 = vmatmul.mubr.msk.bf16.vlgmr.msra.gmra.mrb[52].mxu0 %vm227_vm5, %v6565_v56  ;;  %6865 = vmatprep.mubr.msk.bf16.mxu1 %vm7253_vm0, %v7252_v4  ;;  %v7852_v62 = vpop.permute.xlu0 %2461 }
 0x105   : > { %1964 = vmatpush1.bf16.msra.mxu0 %v1955_v58  ;;  %6869 = vmatprep.subr.bf16.mxu1 %v7252_v4  ;;  %v2466_v14 = vsel %vm2463_vm10, %v7837_v57, %v7852_v62  ;;  %vm3882_vm10 = vcmask 318464  }
 0x106   : > { %2092 = vmatprep.subr.bf16.mxu0 %v2087_v59  ;;  %4003 = vrot.lane.b32.xlu1 %v7453_v15, %s7285_s8  ;;  %v7868_v5 = vpop.permute.xlu1 %2584  ;;  %v2477_v9 = vand.u32 %v2466_v14, %v7488_v27  ;;  %v6592_v14 = vld [vmem:[%s8584_s1 + $0x58] sm:$0xf] }
 0x107   : > { %1995 = vmatprep.mubr.bf16.mxu0 %v7257_v25  ;;  %4009 = vrot.lane.b32.xlu0 %v7467_v20, %s7285_s8  ;;  %v2593_v50 = vsel %vm2592_vm11, %v7868_v5, %v7843_v60  ;;  %s7074_s8 = smul.u32 192, %s7348_s19 }
 0x108   : > { %v7874_v10 = vpop.permute.xlu0 %2588  ;;  %v2600_v55 = vand.u32 %v2593_v50, %v7488_v27 }
 0x10a   : > { %6866 = vmatmul.mubr.msk.bf16.vlgmr.msra.gmra.mrb[56].mxu1 %vm227_vm5, %v6568_v2  ;;  %4134 = vrot.lane.b32.xlu1 %v7457_v17, %s7286_s14 }
 0x10b   : > { %6870 = vmatpush3.bf16.msra.mxu1 %v2090_v0  ;;  %4136 = vrot.lane.b32.xlu0 %v7461_v19, %s7286_s14  ;;  %v7888_v16 = vpop.permute.xlu1 %2715 }
 0x10c   : > { %6569 = vmatmul.mubr.msk.bf16.vlgmr.msra.gmra.mrb[56].mxu0 %vm227_vm5, %v6568_v2  ;;  %6871 = vmatprep.mubr.msk.bf16.mxu1 %vm7253_vm0, %v7252_v4 }
 0x10d   : > { %2093 = vmatpush1.bf16.msra.mxu0 %v2084_v7  ;;  %6875 = vmatprep.subr.bf16.mxu1 %v7252_v4 }
 0x10e   : > { %2221 = vmatprep.subr.bf16.mxu0 %v2216_v8  ;;  %4132 = vrot.lane.b32.xlu1 %v7453_v15, %s7286_s14 }
 0x10f   : > { %2124 = vmatprep.mubr.bf16.mxu0 %v7257_v25  ;;  %4138 = vrot.lane.b32.xlu0 %v7467_v20, %s7286_s14  ;;  %s7298_s14 = smov 120  }
 0x110   : > { %v7900_v24 = vpop.permute.xlu0 %2590 }
 0x111   : > { %v7918_v32 = vpop.permute.xlu1 %2713  ;;  %v2595_v48 = vsel %vm2592_vm11, %v7874_v10, %v7900_v24 }
 0x112   : > { %6872 = vmatmul.mubr.msk.bf16.vlgmr.msra.gmra.mrb[60].mxu1 %vm227_vm5, %v6571_v22  ;;  %4263 = vrot.lane.b32.xlu1 %v7457_v17, %s7287_s23  ;;  %v2606_v51 = vand.u32 %v2595_v48, %v7488_v27  ;;  %v6595_v48 = vld [vmem:[%s8584_s1 + $0x5c] sm:$0xf] }
 0x113   : > { %6876 = vmatpush3.bf16.msra.mxu1 %v2219_v18  ;;  %4265 = vrot.lane.b32.xlu0 %v7461_v19, %s7287_s23  ;;  %v2335_v19 = vsel %vm2334_vm6, %v7792_v42, %v7779_v40  ;;  %v2594_v42 = vsel %vm2592_vm11, %v7843_v60, %v7874_v10  ;;  %v2722_v60 = vsel %vm2721_vm12, %v7918_v32, %v7888_v16  ;;  %vm3753_vm6 = vcmask 326656  }
 0x114   : > { %6572 = vmatmul.mubr.msk.bf16.vlgmr.msra.gmra.mrb[60].mxu0 %vm227_vm5, %v6571_v22  ;;  %6877 = vmatprep.mubr.msk.bf16.mxu1 %vm7253_vm0, %v7252_v4  ;;  %v7916_v17 = vpop.permute.xlu0 %2717  ;;  %v2342_v12 = vand.u32 %v2335_v19, %v7488_v27  ;;  %v2603_v46 = vand.u32 %v2594_v42, %v7488_v27  ;;  %v2729_v1 = vand.u32 %v2722_v60, %v7488_v27  ;;  %vm4011_vm11 = vcmask 310272  }
 0x115   : > { %2222 = vmatpush1.bf16.msra.mxu0 %v2213_v26  ;;  %6881 = vmatprep.subr.bf16.mxu1 %v7252_v4  ;;  %v2723_v52 = vsel %vm2721_vm12, %v7888_v16, %v7916_v17  ;;  %v6586_v16 = vld [vmem:[%s8584_s1 + $0x50] sm:$0xf] }
 0x116   : > { %2350 = vmatprep.subr.bf16.mxu0 %v2345_v28  ;;  %4261 = vrot.lane.b32.xlu1 %v7453_v15, %s7287_s23  ;;  %v7939_v15 = vrot.slane %v4373_v30, %v7386_v6  ;;  %v2732_v56 = vand.u32 %v2723_v52, %v7488_v27 }
 0x117   : > { %2253 = vmatprep.mubr.bf16.mxu0 %v7257_v25  ;;  %4267 = vrot.lane.b32.xlu0 %v7467_v20, %s7287_s23 }
 0x118   : > { %v2720_v37 = vpop.permute.xlu0 %2719  ;;  %v7950_v20 = vcombine.high %v7939_v15, %v7939_v15 }
 0x119   : > { %v7945_v39 = vpop.permute.xlu1 %2844  ;;  %v2724_v58 = vsel %vm2721_vm12, %v7916_v17, %v2720_v37  ;;  %v6589_v17 = vld [vmem:[%s8584_s1 + $0x54] sm:$0xf]  ;;  %vm4140_vm12 = vcmask 302080  }
 0x11a   : > { %6878 = vmatmul.mubr.msk.bf16.vlgmr.msra.gmra.mrb[64].mxu1 %vm227_vm5, %v6574_v36  ;;  %4392 = vrot.lane.b32.xlu1 %v7927_v33, %s7288_s29  ;;  %v2735_v61 = vand.u32 %v2724_v58, %v7488_v27  ;;  %v6598_v58 = vld [vmem:[%s8584_s1 + $0x60] sm:$0xf] }
 0x11b   : > { %6882 = vmatpush3.bf16.msra.mxu1 %v2348_v34  ;;  %4394 = vrot.lane.b32.xlu0 %v7939_v15, %s7288_s29 }
 0x11c   : > { %6575 = vmatmul.mubr.msk.bf16.vlgmr.msra.gmra.mrb[64].mxu0 %vm227_vm5, %v6574_v36  ;;  %6883 = vmatprep.mubr.msk.bf16.mxu1 %vm7253_vm0, %v7252_v4  ;;  %v7958_v40 = vpop.permute.xlu0 %2846 }
 0x11d   : > { %2351 = vmatpush1.bf16.msra.mxu0 %v2342_v12  ;;  %6887 = vmatprep.subr.bf16.mxu1 %v7252_v4  ;;  %v2852_v62 = vsel %vm2850_vm13, %v7945_v39, %v7958_v40 }
 0x11e   : > { %2479 = vmatprep.subr.bf16.mxu0 %v2474_v38  ;;  %4390 = vrot.lane.b32.xlu1 %v7907_v29, %s7288_s29  ;;  %v2861_v2 = vand.u32 %v2852_v62, %v7488_v27 }
 0x11f   : > { %2382 = vmatprep.mubr.bf16.mxu0 %v7257_v25  ;;  %4396 = vrot.lane.b32.xlu0 %v7950_v20, %s7288_s29 }
 0x120   : > { %v7974_v44 = vpop.permute.xlu1 %2842 }
 0x121   : > { %v2849_v47 = vpop.permute.xlu0 %2848  ;;  %v2851_v10 = vsel %vm2850_vm13, %v7974_v44, %v7945_v39 }
 0x122   : > { %6884 = vmatmul.mubr.msk.bf16.vlgmr.msra.gmra.mrb[68].mxu1 %vm227_vm5, %v6577_v43  ;;  %4521 = vrot.lane.b32.xlu1 %v7927_v33, %s7289_s7  ;;  %v2853_v7 = vsel %vm2850_vm13, %v7958_v40, %v2849_v47  ;;  %v2858_v21 = vand.u32 %v2851_v10, %v7488_v27  ;;  %vm4269_vm13 = vcmask 293888  }
 0x123   : > { %6888 = vmatpush3.bf16.msra.mxu1 %v2477_v9  ;;  %4523 = vrot.lane.b32.xlu0 %v7939_v15, %s7289_s7  ;;  %v2864_v11 = vand.u32 %v2853_v7, %v7488_v27 }
 0x124   : > { %6578 = vmatmul.mubr.msk.bf16.vlgmr.msra.gmra.mrb[68].mxu0 %vm227_vm5, %v6577_v43  ;;  %6889 = vmatprep.mubr.msk.bf16.mxu1 %vm7253_vm0, %v7252_v4  ;;  %v7987_v49 = vpop.permute.xlu1 %2973 }
 0x125   : > { %2480 = vmatpush1.bf16.msra.mxu0 %v2471_v45  ;;  %6893 = vmatprep.subr.bf16.mxu1 %v7252_v4 }
 0x126   : > { %2608 = vmatprep.subr.bf16.mxu0 %v2603_v46  ;;  %4519 = vrot.lane.b32.xlu1 %v7907_v29, %s7289_s7 }
 0x127   : > { %2511 = vmatprep.mubr.bf16.mxu0 %v7257_v25  ;;  %4525 = vrot.lane.b32.xlu0 %v7950_v20, %s7289_s7  ;;  %s188_s7 = sand.u32 1, %s7241_s16  }
 0x128   : > { %v2976_v54 = vpop.permute.xlu0 %2975  ;;  %s6448_s19 = scalar_lea.sflag [#allocation3], %s188_s7 }
 0x129   : > { %v2972_v57 = vpop.permute.xlu1 %2971  ;;  %v2981_v13 = vsel %vm2979_vm14, %v7987_v49, %v2976_v54 }
 0x12a   : > { %6890 = vmatmul.mubr.msk.bf16.vlgmr.msra.gmra.mrb[72].mxu1 %vm227_vm5, %v6580_v53  ;;  %4650 = vrot.lane.b32.xlu1 %v7927_v33, %s7290_s13  ;;  %v2990_v22 = vand.u32 %v2981_v13, %v7488_v27  ;;  %v2980_v28 = vsel %vm2979_vm14, %v2972_v57, %v7987_v49 }
 0x12b   : > { %6894 = vmatpush3.bf16.msra.mxu1 %v2606_v51  ;;  %4652 = vrot.lane.b32.xlu0 %v7939_v15, %s7290_s13  ;;  %v2987_v19 = vand.u32 %v2980_v28, %v7488_v27 }
 0x12c   : > { %6581 = vmatmul.mubr.msk.bf16.vlgmr.msra.gmra.mrb[72].mxu0 %vm227_vm5, %v6580_v53  ;;  %6895 = vmatprep.mubr.msk.bf16.mxu1 %vm7253_vm0, %v7252_v4  ;;  %v2978_v59 = vpop.permute.xlu0 %2977 }
 0x12d   : > { %2609 = vmatpush1.bf16.msra.mxu0 %v2600_v55  ;;  %6899 = vmatprep.subr.bf16.mxu1 %v7252_v4  ;;  %v2982_v24 = vsel %vm2979_vm14, %v2976_v54, %v2978_v59  ;;  %v5530_v59 = vld [vmem:[%s7383_s5 + $0x2] sm:$0x3f]  ;;  %vm4398_vm14 = vcmask 285696  }
 0x12e   : > { %2737 = vmatprep.subr.bf16.mxu0 %v2732_v56  ;;  %4648 = vrot.lane.b32.xlu1 %v7907_v29, %s7290_s13  ;;  %v2993_v30 = vand.u32 %v2982_v24, %v7488_v27 }
 0x12f   : > { %2640 = vmatprep.mubr.bf16.mxu0 %v7257_v25  ;;  %4654 = vrot.lane.b32.xlu0 %v7950_v20, %s7290_s13 }
 0x130   : > { %v8027_v0 = vpop.permute.xlu1 %3102 }
 0x131   : > { %v3105_v5 = vpop.permute.xlu0 %3104 }
 0x132   : > { %6896 = vmatmul.mubr.msk.bf16.vlgmr.msra.gmra.mrb[76].mxu1 %vm227_vm5, %v6583_v63  ;;  %4779 = vrot.lane.b32.xlu1 %v7927_v33, %s7291_s22  ;;  %v3110_v31 = vsel %vm3108_vm15, %v8027_v0, %v3105_v5 }
 0x133   : > { %6900 = vmatpush3.bf16.msra.mxu1 %v2735_v61  ;;  %4781 = vrot.lane.b32.xlu0 %v7939_v15, %s7291_s22  ;;  %v3119_v34 = vand.u32 %v3110_v31, %v7488_v27 }
 0x134   : > { %6584 = vmatmul.mubr.msk.bf16.vlgmr.msra.gmra.mrb[76].mxu0 %vm227_vm5, %v6583_v63  ;;  %6901 = vmatprep.mubr.msk.bf16.mxu1 %vm7253_vm0, %v7252_v4  ;;  %v3101_v8 = vpop.permute.xlu1 %3100 }
 0x135   : > { %2738 = vmatpush1.bf16.msra.mxu0 %v2729_v1  ;;  %6905 = vmatprep.subr.bf16.mxu1 %v7252_v4  ;;  %v3109_v12 = vsel %vm3108_vm15, %v3101_v8, %v8027_v0  ;;  %v5541_v0 = vrot.slane %v5530_v59, %v7386_v6 }
 0x136   : > { %2866 = vmatprep.subr.bf16.mxu0 %v2861_v2  ;;  %4777 = vrot.lane.b32.xlu1 %v7907_v29, %s7291_s22  ;;  %v3116_v41 = vand.u32 %v3109_v12, %v7488_v27 }
 0x137   : > { %2769 = vmatprep.mubr.bf16.mxu0 %v7257_v25  ;;  %4783 = vrot.lane.b32.xlu0 %v7950_v20, %s7291_s22  ;;  %v5549_v7 = vcombine.high %v5541_v0, %v5541_v0  ;;  %s7299_s22 = smov 119  }
 0x138   : > { %v3107_v18 = vpop.permute.xlu0 %3106 }
 0x139   : > { %v3232_v23 = vpop.permute.xlu1 %3231  ;;  %v3111_v36 = vsel %vm3108_vm15, %v3105_v5, %v3107_v18  ;;  %v5534_v5 = vcombine.high %v5530_v59, %v5530_v59  ;;  %vm4527_vm15 = vcmask 277504  }
 0x13a   : > { %6902 = vmatmul.mubr.msk.bf16.vlgmr.msra.gmra.mrb[80].mxu1 %vm227_vm5, %v6586_v16  ;;  %4908 = vrot.lane.b32.xlu1 %v7927_v33, %s7292_s28  ;;  %v3122_v38 = vand.u32 %v3111_v36, %v7488_v27 }
 0x13b   : > { %6906 = vmatpush3.bf16.msra.mxu1 %v2864_v11  ;;  %4910 = vrot.lane.b32.xlu0 %v7939_v15, %s7292_s28  ;;  %v6601_v11 = vld [vmem:[%s8584_s1 + $0x64] sm:$0xf] }
 0x13c   : > { %6587 = vmatmul.mubr.msk.bf16.vlgmr.msra.gmra.mrb[80].mxu0 %vm227_vm5, %v6586_v16  ;;  %6907 = vmatprep.mubr.msk.bf16.mxu1 %vm7253_vm0, %v7252_v4  ;;  %v3234_v26 = vpop.permute.xlu0 %3233 }
 0x13d   : > { %2867 = vmatpush1.bf16.msra.mxu0 %v2858_v21  ;;  %6911 = vmatprep.subr.bf16.mxu1 %v7252_v4  ;;  %v3239_v39 = vsel %vm3237_vm1, %v3232_v23, %v3234_v26 }
 0x13e   : > { %2995 = vmatprep.subr.bf16.mxu0 %v2990_v22  ;;  %4906 = vrot.lane.b32.xlu1 %v7907_v29, %s7292_s28  ;;  %v3248_v9 = vand.u32 %v3239_v39, %v7488_v27 }
 0x13f   : > { %2898 = vmatprep.mubr.bf16.mxu0 %v7257_v25  ;;  %4912 = vrot.lane.b32.xlu0 %v7950_v20, %s7292_s28  ;;  %s7300_s28 = smov 118  }
 0x140   : > { %v3230_v32 = vpop.permute.xlu1 %3229 }
 0x141   : > { %v3236_v35 = vpop.permute.xlu0 %3235  ;;  %v3238_v45 = vsel %vm3237_vm1, %v3230_v32, %v3232_v23 }
 0x142   : > { %6908 = vmatmul.mubr.msk.bf16.vlgmr.msra.gmra.mrb[84].mxu1 %vm227_vm5, %v6589_v17  ;;  %5037 = vrot.lane.b32.xlu1 %v7927_v33, %s7293_s6  ;;  %v3240_v43 = vsel %vm3237_vm1, %v3234_v26, %v3236_v35  ;;  %v3245_v50 = vand.u32 %v3238_v45, %v7488_v27  ;;  %v5778_v26 = vld [vmem:[%s7383_s5 + $0x2] sm:$0x3f]  ;;  %vm4656_vm1 = vcmask 146432  }
 0x143   : > { %6912 = vmatpush3.bf16.msra.mxu1 %v2993_v30  ;;  %5039 = vrot.lane.b32.xlu0 %v7939_v15, %s7293_s6  ;;  %v3251_v46 = vand.u32 %v3240_v43, %v7488_v27  ;;  %v5789_v35 = vrot.slane %v5778_v26, %v7386_v6 }
 0x144   : > { %6590 = vmatmul.mubr.msk.bf16.vlgmr.msra.gmra.mrb[84].mxu0 %vm227_vm5, %v6589_v17  ;;  %6913 = vmatprep.mubr.msk.bf16.mxu1 %vm7253_vm0, %v7252_v4  ;;  %v3361_v37 = vpop.permute.xlu1 %3360 }
 0x145   : > { %2996 = vmatpush1.bf16.msra.mxu0 %v2987_v19  ;;  %6917 = vmatprep.subr.bf16.mxu1 %v7252_v4 }
 0x146   : > { %3124 = vmatprep.subr.bf16.mxu0 %v3119_v34  ;;  %5035 = vrot.lane.b32.xlu1 %v7907_v29, %s7293_s6  ;;  %v6604_v34 = vld [vmem:[%s8584_s1 + $0x68] sm:$0xf] }
 0x147   : > { %3027 = vmatprep.mubr.bf16.mxu0 %v7257_v25  ;;  %5041 = vrot.lane.b32.xlu0 %v7950_v20, %s7293_s6 }
 0x148   : > { %v3363_v40 = vpop.permute.xlu0 %3362 }
 0x149   : > { %v3359_v42 = vpop.permute.xlu1 %3358  ;;  %v3368_v47 = vsel %vm3366_vm2, %v3361_v37, %v3363_v40 }
 0x14a   : > { %6914 = vmatmul.mubr.msk.bf16.vlgmr.msra.gmra.mrb[88].mxu1 %vm227_vm5, %v6592_v14  ;;  %5166 = vrot.lane.b32.xlu1 %v7927_v33, %s7294_s12  ;;  %v3377_v51 = vand.u32 %v3368_v47, %v7488_v27  ;;  %v3367_v55 = vsel %vm3366_vm2, %v3359_v42, %v3361_v37 }
 0x14b   : > { %6918 = vmatpush3.bf16.msra.mxu1 %v3122_v38  ;;  %5168 = vrot.lane.b32.xlu0 %v7939_v15, %s7294_s12  ;;  %v3374_v61 = vand.u32 %v3367_v55, %v7488_v27  ;;  %v5782_v38 = vcombine.high %v5778_v26, %v5778_v26 }
 0x14c   : > { %6593 = vmatmul.mubr.msk.bf16.vlgmr.msra.gmra.mrb[88].mxu0 %vm227_vm5, %v6592_v14  ;;  %6919 = vmatprep.mubr.msk.bf16.mxu1 %vm7253_vm0, %v7252_v4  ;;  %v3365_v44 = vpop.permute.xlu0 %3364  ;;  %v5797_v14 = vcombine.high %v5789_v35, %v5789_v35 }
 0x14d   : > { %3125 = vmatpush1.bf16.msra.mxu0 %v3116_v41  ;;  %6923 = vmatprep.subr.bf16.mxu1 %v7252_v4  ;;  %v3369_v53 = vsel %vm3366_vm2, %v3363_v40, %v3365_v44  ;;  %v5796_v44 = vrot.slane %v5782_v38, %v7386_v6  ;;  %vm4785_vm2 = vcmask 138240  }
 0x14e   : > { %3253 = vmatprep.subr.bf16.mxu0 %v3248_v9  ;;  %5164 = vrot.lane.b32.xlu1 %v7907_v29, %s7294_s12  ;;  %v3380_v56 = vand.u32 %v3369_v53, %v7488_v27  ;;  %v5902_v9 = vld [vmem:[%s7383_s5 + $0x2] sm:$0x3f] }
 0x14f   : > { %3156 = vmatprep.mubr.bf16.mxu0 %v7257_v25  ;;  %5170 = vrot.lane.b32.xlu0 %v7950_v20, %s7294_s12 }
 0x150   : > { %v3490_v49 = vpop.permute.xlu1 %3489 }
 0x151   : > { %v3492_v52 = vpop.permute.xlu0 %3491 }
 0x152   : > { %6920 = vmatmul.mubr.msk.bf16.vlgmr.msra.gmra.mrb[92].mxu1 %vm227_vm5, %v6595_v48  ;;  %5295 = vrot.lane.b32.xlu1 %v7927_v33, %s7295_s20  ;;  %v3497_v57 = vsel %vm3495_vm3, %v3490_v49, %v3492_v52 }
 0x153   : > { %6924 = vmatpush3.bf16.msra.mxu1 %v3251_v46  ;;  %5297 = vrot.lane.b32.xlu0 %v7939_v15, %s7295_s20  ;;  %v3506_v63 = vand.u32 %v3497_v57, %v7488_v27 }
 0x154   : > { %6596 = vmatmul.mubr.msk.bf16.vlgmr.msra.gmra.mrb[92].mxu0 %vm227_vm5, %v6595_v48  ;;  %6925 = vmatprep.mubr.msk.bf16.mxu1 %vm7253_vm0, %v7252_v4  ;;  %v3488_v54 = vpop.permute.xlu1 %3487 }
 0x155   : > { %3254 = vmatpush1.bf16.msra.mxu0 %v3245_v50  ;;  %6929 = vmatprep.subr.bf16.mxu1 %v7252_v4 }
 0x156   : > { %3382 = vmatprep.subr.bf16.mxu0 %v3377_v51  ;;  %5293 = vrot.lane.b32.xlu1 %v7907_v29, %s7295_s20  ;;  %v6607_v51 = vld [vmem:[%s8584_s1 + $0x6c] sm:$0xf] }
 0x157   : > { %3285 = vmatprep.mubr.bf16.mxu0 %v7257_v25  ;;  %5299 = vrot.lane.b32.xlu0 %v7950_v20, %s7295_s20 }
 0x158   : > { %v3494_v60 = vpop.permute.xlu0 %3493 }
 0x159   : > { %v3619_v62 = vpop.permute.xlu1 %3618  ;;  %v3498_v1 = vsel %vm3495_vm3, %v3492_v52, %v3494_v60  ;;  %v5913_v52 = vrot.slane %v5902_v9, %v7386_v6 }
 0x15a   : > { %6926 = vmatmul.mubr.msk.bf16.vlgmr.msra.gmra.mrb[96].mxu1 %vm227_vm5, %v6598_v58  ;;  %5424 = vrot.lane.b32.xlu1 %v7927_v33, %s7296_s27  ;;  %v3496_v33 = vsel %vm3495_vm3, %v3488_v54, %v3490_v49  ;;  %v3509_v8 = vand.u32 %v3498_v1, %v7488_v27  ;;  %vm4914_vm3 = vcmask 130048  }
 0x15b   : > { %6930 = vmatpush3.bf16.msra.mxu1 %v3380_v56  ;;  %5426 = vrot.lane.b32.xlu0 %v7939_v15, %s7296_s27  ;;  %v5654_v15 = vld [vmem:[%s7383_s5 + $0x2] sm:$0x3f]  ;;  %v3503_v16 = vand.u32 %v3496_v33, %v7488_v27 }
 0x15c   : > { %6599 = vmatmul.mubr.msk.bf16.vlgmr.msra.gmra.mrb[96].mxu0 %vm227_vm5, %v6598_v58  ;;  %6931 = vmatprep.mubr.msk.bf16.mxu1 %vm7253_vm0, %v7252_v4  ;;  %v3621_v2 = vpop.permute.xlu0 %3620  ;;  %v5665_v21 = vrot.slane %v5654_v15, %v7386_v6  ;;  %v5658_v23 = vcombine.high %v5654_v15, %v5654_v15  ;;  %v5906_v58 = vcombine.high %v5902_v9, %v5902_v9 }
 0x15d   : > { %3383 = vmatpush1.bf16.msra.mxu0 %v3374_v61  ;;  %6935 = vmatprep.subr.bf16.mxu1 %v7252_v4  ;;  %v3626_v10 = vsel %vm3624_vm4, %v3619_v62, %v3621_v2 }
 0x15e   : > { %3511 = vmatprep.subr.bf16.mxu0 %v3506_v63  ;;  %5422 = vrot.lane.b32.xlu1 %v7907_v29, %s7296_s27  ;;  %v5548_v29 = vrot.slane %v5534_v5, %v7386_v6  ;;  %v3635_v22 = vand.u32 %v3626_v10, %v7488_v27  ;;  %v5673_v30 = vcombine.high %v5665_v21, %v5665_v21 }
 0x15f   : > { %3414 = vmatprep.mubr.bf16.mxu0 %v7257_v25  ;;  %5428 = vrot.lane.b32.xlu0 %v7950_v20, %s7296_s27  ;;  %v3617_v13 = vpop.permute.xlu1 %3616  ;;  %v5672_v17 = vrot.slane %v5658_v23, %v7386_v6  ;;  %v5920_v5 = vrot.slane %v5906_v58, %v7386_v6 }
 0x160   : > { %v3625_v31 = vsel %vm3624_vm4, %v3617_v13, %v3619_v62  ;;  %v5921_v62 = vcombine.high %v5913_v52, %v5913_v52 }
 0x161   : > { %v3623_v18 = vpop.permute.xlu0 %3622  ;;  %v3632_v37 = vand.u32 %v3625_v31, %v7488_v27 }
 0x162   : > { %6932 = vmatmul.mubr.msk.bf16.vlgmr.msra.gmra.mrb[100].mxu1 %vm227_vm5, %v6601_v11  ;;  %5552 = vrot.lane.b32.xlu1 %v5549_v7, %s7258_s9  ;;  %v3627_v20 = vsel %vm3624_vm4, %v3621_v2, %v3623_v18  ;;  %v6610_v18 = vld [vmem:[%s8584_s1 + $0x70] sm:$0xf]  ;;  %vm5043_vm4 = vcmask 121856  }
 0x163   : > { %6936 = vmatpush3.bf16.msra.mxu1 %v3509_v8  ;;  %v3748_v24 = vpop.permute.xlu1 %3747  ;;  %6937 = vmatprep.mubr.msk.bf16.mxu1 %vm7253_vm0, %v7252_v4  ;;  %v3638_v32 = vand.u32 %v3627_v20, %v7488_v27 }
 0x164   : > { %6602 = vmatmul.mubr.msk.bf16.vlgmr.msra.gmra.mrb[100].mxu0 %vm227_vm5, %v6601_v11  ;;  %6941 = vmatprep.subr.bf16.mxu1 %v7252_v4 }
 0x165   : > { %3512 = vmatpush1.bf16.msra.mxu0 %v3503_v16  ;;  %v3750_v28 = vpop.permute.xlu0 %3749  ;;  %5554 = vrot.lane.b32.xlu0 %v5548_v29, %s7258_s9 }
 0x166   : > { %3640 = vmatprep.subr.bf16.mxu0 %v3635_v22  ;;  %5550 = vrot.lane.b32.xlu1 %v5541_v0, %s7258_s9  ;;  %v3755_v19 = vsel %vm3753_vm6, %v3748_v24, %v3750_v28  ;;  %v6027_v0 = vld [vmem:[%s7383_s5 + $0x2] sm:$0x3f] }
 0x167   : > { %3543 = vmatprep.mubr.bf16.mxu0 %v7257_v25  ;;  %v3764_v39 = vand.u32 %v3755_v19, %v7488_v27  ;;  %v8218_v29 = vrot.slane %v6027_v0, %v7386_v6 }
 0x168   : > { %v3746_v36 = vpop.permute.xlu1 %3745 }
 0x169   : > { %v3752_v12 = vpop.permute.xlu0 %3751  ;;  %5676 = vrot.lane.b32.xlu0 %v5673_v30, %s7259_s10  ;;  %v3754_v45 = vsel %vm3753_vm6, %v3746_v36, %v3748_v24  ;;  %v6031_v30 = vcombine.high %v6027_v0, %v6027_v0  ;;  %v6046_v19 = vcombine.high %v8218_v29, %v8218_v29 }
 0x16a   : > { %6938 = vmatmul.mubr.msk.bf16.vlgmr.msra.gmra.mrb[104].mxu1 %vm227_vm5, %v6604_v34  ;;  %5678 = vrot.lane.b32.xlu1 %v5672_v17, %s7259_s10  ;;  %v3756_v40 = vsel %vm3753_vm6, %v3750_v28, %v3752_v12  ;;  %v3761_v55 = vand.u32 %v3754_v45, %v7488_v27  ;;  %vm5172_vm6 = vcmask 113664  }
 0x16b   : > { %6942 = vmatpush3.bf16.msra.mxu1 %v3638_v32  ;;  %6943 = vmatprep.mubr.msk.bf16.mxu1 %vm7253_vm0, %v7252_v4  ;;  %v3767_v47 = vand.u32 %v3756_v40, %v7488_v27  ;;  %v6045_v12 = vrot.slane %v6031_v30, %v7386_v6 }
 0x16c   : > { %6605 = vmatmul.mubr.msk.bf16.vlgmr.msra.gmra.mrb[104].mxu0 %vm227_vm5, %v6604_v34  ;;  %v3877_v41 = vpop.permute.xlu1 %3876  ;;  %6947 = vmatprep.subr.bf16.mxu1 %v7252_v4 }
 0x16d   : > { %3641 = vmatpush1.bf16.msra.mxu0 %v3632_v37  ;;  %v319_v42 = vpop.f32.mrb[0].mxu1  ;;  %v3879_v43 = vpop.permute.xlu0 %3878  ;;  %5674 = vrot.lane.b32.xlu0 %v5665_v21, %s7259_s10  ;;  %s7073_s10 = smul.u32 12, %s188_s7 }
 0x16e   : > { %v6783_v46 = vpop.f32.mrb[1].mxu1  ;;  %3769 = vmatprep.subr.bf16.mxu0 %v3764_v39  ;;  %3672 = vmatprep.mubr.bf16.mxu0 %v7257_v25  ;;  %v3884_v50 = vsel %vm3882_vm10, %v3877_v41, %v3879_v43 }
 0x16f   : > { %v278_v48 = vpop.f32.mrb[0].mxu0  ;;  %v322_v49 = vpop.f32.mrb[2].mxu1  ;;  %5800 = vrot.lane.b32.xlu1 %v5797_v14, %s7260_s11  ;;  %v3893_v60 = vand.u32 %v3884_v50, %v7488_v27 }
 0x170   : > { %v280_v53 = vpop.f32.mrb[1].mxu0  ;;  %v6784_v54 = vpop.f32.mrb[3].mxu1 }
 0x171   : > { %v282_v56 = vpop.f32.mrb[2].mxu0  ;;  %v3875_v57 = vpop.permute.xlu1 %3874  ;;  %5802 = vrot.lane.b32.xlu0 %v5796_v44, %s7260_s11  ;;  %v6613_v44 = vld [vmem:[%s8584_s1 + $0x74] sm:$0xf] }
 0x172   : > { %v283_v59 = vpop.f32.mrb[3].mxu0  ;;  %6944 = vmatmul.mubr.msk.bf16.vlgmr.msra.gmra.mrb[108].mxu1 %vm227_vm5, %v6607_v51  ;;  %v3881_v61 = vpop.permute.xlu0 %3880  ;;  %v3883_v33 = vsel %vm3882_vm10, %v3875_v57, %v3877_v41 }
 0x173   : > { %6948 = vmatpush3.bf16.msra.mxu1 %v3767_v47  ;;  %6949 = vmatprep.mubr.msk.bf16.mxu1 %vm7253_vm0, %v7252_v4  ;;  %v3885_v63 = vsel %vm3882_vm10, %v3879_v43, %v3881_v61  ;;  %v3890_v24 = vand.u32 %v3883_v33, %v7488_v27  ;;  %v6277_v59 = vld [vmem:[%s7383_s5 + $0x2] sm:$0x3f]  ;;  %vm5301_vm10 = vcmask 105472  }
 0x174   : > { %6608 = vmatmul.mubr.msk.bf16.vlgmr.msra.gmra.mrb[108].mxu0 %vm227_vm5, %v6607_v51  ;;  %6953 = vmatprep.subr.bf16.mxu1 %v7252_v4  ;;  %v3896_v10 = vand.u32 %v3885_v63, %v7488_v27 }
 0x175   : > { %3770 = vmatpush1.bf16.msra.mxu0 %v3761_v55  ;;  %v412_v1 = vpop.f32.mrb[4].mxu1  ;;  %v4006_v2 = vpop.permute.xlu1 %4005  ;;  %5798 = vrot.lane.b32.xlu1 %v5789_v35, %s7260_s11  ;;  %s7297_s11 = smov 121   ;;  %v6152_v35 = vld [vmem:[%s7383_s5 + $0x2] sm:$0x3f]  ;;  %s8539_s5 = scalar_lea.hbm %s8587_s4, %s7074_s8 }
 0x176   : > { %v413_v7 = vadd.f32 %v412_v1, %v319_v42  ;;  %v6789_v15 = vpop.f32.mrb[5].mxu1  ;;  %3898 = vmatprep.subr.bf16.mxu0 %v3893_v60  ;;  %v4008_v8 = vpop.permute.xlu0 %4007  ;;  %3801 = vmatprep.mubr.bf16.mxu0 %v7257_v25  ;;  %v8240_v45 = vrot.slane %v6152_v35, %v7386_v6 }
 0x177   : > { %v371_v11 = vpop.f32.mrb[4].mxu0  ;;  %v415_v13 = vpop.f32.mrb[6].mxu1  ;;  %v4013_v16 = vsel %vm4011_vm11, %v4006_v2, %v4008_v8  ;;  %5924 = vrot.lane.b32.xlu0 %v5921_v62, %s7297_s11 }
 0x178   : > { %v372_v21 = vadd.f32 %v371_v11, %v278_v48  ;;  %v373_v22 = vpop.f32.mrb[5].mxu0  ;;  %v6790_v23 = vpop.f32.mrb[7].mxu1  ;;  %v4022_v17 = vand.u32 %v4013_v16, %v7488_v27  ;;  %v6171_v57 = vcombine.high %v8240_v45, %v8240_v45 }
 0x179   : > { %v374_v20 = vadd.f32 %v373_v22, %v280_v53  ;;  %v375_v26 = vpop.f32.mrb[6].mxu0  ;;  %v4004_v28 = vpop.permute.xlu1 %4003  ;;  %5926 = vrot.lane.b32.xlu1 %v5920_v5, %s7297_s11  ;;  %v6156_v53 = vcombine.high %v6152_v35, %v6152_v35  ;;  %v6281_v23 = vcombine.high %v6277_v59, %v6277_v59 }
 0x17a   : > { %v376_v31 = vpop.f32.mrb[7].mxu0  ;;  %6950 = vmatmul.mubr.msk.bf16.vlgmr.msra.gmra.mrb[112].mxu1 %vm227_vm5, %v6610_v18  ;;  %v4010_v32 = vpop.permute.xlu0 %4009  ;;  %v4012_v38 = vsel %vm4011_vm11, %v4004_v28, %v4006_v2 }
 0x17b   : > { %6954 = vmatpush3.bf16.msra.mxu1 %v3896_v10  ;;  %6955 = vmatprep.mubr.msk.bf16.mxu1 %vm7253_vm0, %v7252_v4  ;;  %v4014_v34 = vsel %vm4011_vm11, %v4008_v8, %v4010_v32  ;;  %v4019_v49 = vand.u32 %v4012_v38, %v7488_v27  ;;  %v6170_v62 = vrot.slane %v6156_v53, %v7386_v6  ;;  %v6616_v8 = vld [vmem:[%s8584_s1 + $0x78] sm:$0xf]  ;;  %vm5430_vm11 = vcmask 97280  }
 0x17c   : > { %6611 = vmatmul.mubr.msk.bf16.vlgmr.msra.gmra.mrb[112].mxu0 %vm227_vm5, %v6610_v18  ;;  %6959 = vmatprep.subr.bf16.mxu1 %v7252_v4  ;;  %v4025_v41 = vand.u32 %v4014_v34, %v7488_v27  ;;  %v6288_v10 = vrot.slane %v6277_v59, %v7386_v6  ;;  %v6295_v32 = vrot.slane %v6281_v23, %v7386_v6  ;;  %v6622_v59 = vld [vmem:[%s8584_s1 + $0x80] sm:$0xf] }
 0x17d   : > { %3899 = vmatpush1.bf16.msra.mxu0 %v3890_v24  ;;  %v534_v36 = vpop.f32.mrb[8].mxu1  ;;  %v4135_v37 = vpop.permute.xlu1 %4134  ;;  %5922 = vrot.lane.b32.xlu0 %v5913_v52, %s7297_s11  ;;  %s190_s11 = scalar_lea.vmem [#allocation2], %s7073_s10 }
 0x17e   : > { %v542_v39 = vadd.f32 %v534_v36, %v413_v7  ;;  %v6795_v14 = vpop.f32.mrb[9].mxu1  ;;  %4027 = vmatprep.subr.bf16.mxu0 %v4022_v17  ;;  %v4137_v40 = vpop.permute.xlu0 %4136  ;;  %3930 = vmatprep.mubr.bf16.mxu0 %v7257_v25  ;;  %v6296_v28 = vcombine.high %v6288_v10, %v6288_v10  ;;  %s6462_s12 = sshll.u32 %s190_s11, 4  ;;  %s8541_s12 = int_to_ptr.vmem [resolvable:$true] %s6462_s12 }
 0x17f   : > { %v493_v9 = vpop.f32.mrb[8].mxu0  ;;  %v537_v42 = vpop.f32.mrb[10].mxu1  ;;  %v4142_v43 = vsel %vm4140_vm12, %v4135_v37, %v4137_v40  ;;  %6049 = vrot.lane.b32.xlu1 %v6046_v19, %s7298_s14  ;;  %v6619_v14 = vld [vmem:[%s8584_s1 + $0x7c] sm:$0xf]  ;;  %s7187_s20 = scalar_lea.vmem %s8541_s12, 192 }
 0x180   : > { %v540_v46 = vadd.f32 %v493_v9, %v372_v21  ;;  %v495_v47 = vpop.f32.mrb[9].mxu0  ;;  %v6796_v48 = vpop.f32.mrb[11].mxu1  ;;  %v4151_v55 = vand.u32 %v4142_v43, %v7488_v27  ;;  %p7188_p11 = scmp.ne.s32.totalorder %s8541_s12, %s7187_s20 }
 0x181   : > { %v541_v50 = vadd.f32 %v495_v47, %v374_v20  ;;  %v497_v51 = vpop.f32.mrb[10].mxu0  ;;  %v4133_v52 = vpop.permute.xlu1 %4132  ;;  %6051 = vrot.lane.b32.xlu0 %v6045_v12, %s7298_s14 }
 0x182   : > { %v498_v54 = vpop.f32.mrb[11].mxu0  ;;  %6956 = vmatmul.mubr.msk.bf16.vlgmr.msra.gmra.mrb[116].mxu1 %vm227_vm5, %v6613_v44  ;;  %v4139_v56 = vpop.permute.xlu0 %4138  ;;  %v4141_v63 = vsel %vm4140_vm12, %v4133_v52, %v4135_v37  ;;  %p7189_p12 = pnand %p7188_p11, %p7365_p5 }
 0x183   : > { %6960 = vmatpush3.bf16.msra.mxu1 %v4025_v41  ;;  %6961 = vmatprep.mubr.msk.bf16.mxu1 %vm7253_vm0, %v7252_v4  ;;  %v4143_v58 = vsel %vm4140_vm12, %v4137_v40, %v4139_v56  ;;  %v4148_v18 = vand.u32 %v4141_v63, %v7488_v27  ;;  %vm6303_vm12 = vcmask 965632  }
 0x184   : > { %6614 = vmatmul.mubr.msk.bf16.vlgmr.msra.gmra.mrb[116].mxu0 %vm227_vm5, %v6613_v44  ;;  %6965 = vmatprep.subr.bf16.mxu1 %v7252_v4  ;;  %v4154_v5 = vand.u32 %v4143_v58, %v7488_v27  ;;  %p7190_p13 = pneg %p7189_p12 }
 0x185   : > { %4028 = vmatpush1.bf16.msra.mxu0 %v4019_v49  ;;  %v659_v60 = vpop.f32.mrb[12].mxu1  ;;  %v4264_v61 = vpop.permute.xlu1 %4263  ;;  %6047 = vrot.lane.b32.xlu1 %v8218_v29, %s7298_s14 }
 0x186   : > { %v667_v0 = vadd.f32 %v659_v60, %v542_v39  ;;  %v6801_v1 = vpop.f32.mrb[13].mxu1  ;;  %4156 = vmatprep.subr.bf16.mxu0 %v4151_v55  ;;  %v4266_v2 = vpop.permute.xlu0 %4265  ;;  %4059 = vmatprep.mubr.bf16.mxu0 %v7257_v25 }
 0x187   : > { %v618_v33 = vpop.f32.mrb[12].mxu0  ;;  %v662_v7 = vpop.f32.mrb[14].mxu1  ;;  %v4271_v15 = vsel %vm4269_vm13, %v4264_v61, %v4266_v2  ;;  %6174 = vrot.lane.b32.xlu0 %v6171_v57, %s7299_s22 }
 0x188   : > { %v665_v11 = vadd.f32 %v618_v33, %v540_v46  ;;  %v620_v13 = vpop.f32.mrb[13].mxu0  ;;  %v6802_v16 = vpop.f32.mrb[15].mxu1  ;;  %v4280_v20 = vand.u32 %v4271_v15, %v7488_v27 }
 0x189   : > { %v666_v29 = vadd.f32 %v620_v13, %v541_v50  ;;  %v622_v21 = vpop.f32.mrb[14].mxu0  ;;  %v4262_v22 = vpop.permute.xlu1 %4261  ;;  %6176 = vrot.lane.b32.xlu1 %v6170_v62, %s7299_s22 }
 0x18a   : > { %v623_v24 = vpop.f32.mrb[15].mxu0  ;;  %6962 = vmatmul.mubr.msk.bf16.vlgmr.msra.gmra.mrb[120].mxu1 %vm227_vm5, %v6616_v8  ;;  %v4268_v26 = vpop.permute.xlu0 %4267  ;;  %v4270_v19 = vsel %vm4269_vm13, %v4262_v22, %v4264_v61 }
 0x18b   : > { %6966 = vmatpush3.bf16.msra.mxu1 %v4154_v5  ;;  %6967 = vmatprep.mubr.msk.bf16.mxu1 %vm7253_vm0, %v7252_v4  ;;  %v4272_v30 = vsel %vm4269_vm13, %v4266_v2, %v4268_v26  ;;  %v4277_v9 = vand.u32 %v4270_v19, %v7488_v27  ;;  %v6625_v24 = vld [vmem:[%s8584_s1 + $0x84] sm:$0xf] }
 0x18c   : > { %6617 = vmatmul.mubr.msk.bf16.vlgmr.msra.gmra.mrb[120].mxu0 %vm227_vm5, %v6616_v8  ;;  %6971 = vmatprep.subr.bf16.mxu1 %v7252_v4  ;;  %v4283_v37 = vand.u32 %v4272_v30, %v7488_v27 }
 0x18d   : > { %4157 = vmatpush1.bf16.msra.mxu0 %v4148_v18  ;;  %v784_v31 = vpop.f32.mrb[16].mxu1  ;;  %v4393_v17 = vpop.permute.xlu1 %4392  ;;  %6172 = vrot.lane.b32.xlu0 %v8240_v45, %s7299_s22  ;;  %s7301_s22 = smov [#allocation2]  }
 0x18e   : > { %v792_v34 = vadd.f32 %v784_v31, %v667_v0  ;;  %v6807_v35 = vpop.f32.mrb[17].mxu1  ;;  %4285 = vmatprep.subr.bf16.mxu0 %v4280_v20  ;;  %v4395_v36 = vpop.permute.xlu0 %4394  ;;  %4188 = vmatprep.mubr.bf16.mxu0 %v7257_v25  ;;  %s7191_s23 = sshll.u32 %s7301_s22, 4  ;;  %s7192_s23 = int_to_ptr.vmem [resolvable:$false] %s7191_s23 }
 0x18f   : > { %v743_v12 = vpop.f32.mrb[16].mxu0  ;;  %v787_v38 = vpop.f32.mrb[18].mxu1  ;;  %v4400_v39 = vsel %vm4398_vm14, %v4393_v17, %v4395_v36  ;;  %6299 = vrot.lane.b32.xlu1 %v6296_v28, %s7300_s28  ;;  %s7193_s27 = scalar_lea.vmem %s7192_s23, 384  ;;  %p7194_p0 = scmp.lt.s32.totalorder %s8541_s12, %s7192_s23 }
 0x190   : > { %v790_v6 = vadd.f32 %v743_v12, %v665_v11  ;;  %v745_v40 = vpop.f32.mrb[17].mxu0  ;;  %v6808_v41 = vpop.f32.mrb[19].mxu1  ;;  %v4409_v46 = vand.u32 %v4400_v39, %v7488_v27  ;;  %p7195_p1 = scmp.lt.s32.totalorder %s7193_s27, %s7187_s20 }
 0x191   : > { %v791_v42 = vadd.f32 %v745_v40, %v666_v29  ;;  %v747_v43 = vpop.f32.mrb[18].mxu0  ;;  %v4391_v44 = vpop.permute.xlu1 %4390  ;;  %6301 = vrot.lane.b32.xlu0 %v6295_v32, %s7300_s28 }
 0x192   : > { %v748_v45 = vpop.f32.mrb[19].mxu0  ;;  %6968 = vmatmul.mubr.msk.bf16.vlgmr.msra.gmra.mrb[124].mxu1 %vm227_vm5, %v6619_v14  ;;  %v4397_v47 = vpop.permute.xlu0 %4396  ;;  %v4399_v51 = vsel %vm4398_vm14, %v4391_v44, %v4393_v17  ;;  %v6628_v43 = vld [vmem:[%s8584_s1 + $0x88] sm:$0xf]  ;;  %p7196_p2 = por %p7195_p1, %p7194_p0 }
 0x193   : > { %6972 = vmatpush3.bf16.msra.mxu1 %v4283_v37  ;;  %6973 = vmatprep.mubr.msk.bf16.mxu1 %vm7253_vm0, %v7252_v4  ;;  %v4401_v48 = vsel %vm4398_vm14, %v4395_v36, %v4397_v47  ;;  %v4406_v63 = vand.u32 %v4399_v51, %v7488_v27 }
 0x194   : > { %6620 = vmatmul.mubr.msk.bf16.vlgmr.msra.gmra.mrb[124].mxu0 %vm227_vm5, %v6619_v14  ;;  %6977 = vmatprep.subr.bf16.mxu1 %v7252_v4  ;;  %v4412_v55 = vand.u32 %v4401_v48, %v7488_v27  ;;  %p7197_p3 = pnand %p7196_p2, %p7190_p13 }
 0x195   : > { %4286 = vmatpush1.bf16.msra.mxu0 %v4277_v9  ;;  %v909_v49 = vpop.f32.mrb[20].mxu1  ;;  %v4522_v50 = vpop.permute.xlu1 %4521  ;;  %6297 = vrot.lane.b32.xlu1 %v6288_v10, %s7300_s28 }
 0x196   : > { %v917_v52 = vadd.f32 %v909_v49, %v792_v34  ;;  %v6813_v53 = vpop.f32.mrb[21].mxu1  ;;  %4414 = vmatprep.subr.bf16.mxu0 %v4409_v46  ;;  %v4524_v54 = vpop.permute.xlu0 %4523  ;;  %4317 = vmatprep.mubr.bf16.mxu0 %v7257_v25 }
 0x197   : > { %v868_v56 = vpop.f32.mrb[20].mxu0  ;;  %v912_v57 = vpop.f32.mrb[22].mxu1  ;;  %v4529_v58 = vsel %vm4527_vm15, %v4522_v50, %v4524_v54 }
 0x198   : > { %v915_v60 = vadd.f32 %v868_v56, %v790_v6  ;;  %v870_v61 = vpop.f32.mrb[21].mxu0  ;;  %v6814_v62 = vpop.f32.mrb[23].mxu1  ;;  %v4538_v33 = vand.u32 %v4529_v58, %v7488_v27 }
 0x199   : > { %v916_v0 = vadd.f32 %v870_v61, %v791_v42  ;;  %v872_v1 = vpop.f32.mrb[22].mxu0  ;;  %v4520_v2 = vpop.permute.xlu1 %4519 }
 0x19a   : > { %v873_v5 = vpop.f32.mrb[23].mxu0  ;;  %6974 = vmatmul.mubr.msk.bf16.vlgmr.msra.gmra.mrb[128].mxu1 %vm227_vm5, %v6622_v59  ;;  %v4526_v7 = vpop.permute.xlu0 %4525  ;;  %v4528_v11 = vsel %vm4527_vm15, %v4520_v2, %v4522_v50  ;;  %v6631_v1 = vld [vmem:[%s8584_s1 + $0x8c] sm:$0xf] }
 0x19b   : > { %6978 = vmatpush3.bf16.msra.mxu1 %v4412_v55  ;;  %6979 = vmatprep.mubr.msk.bf16.mxu1 %vm7253_vm0, %v7252_v4  ;;  %v4530_v15 = vsel %vm4527_vm15, %v4524_v54, %v4526_v7  ;;  %v4535_v30 = vand.u32 %v4528_v11, %v7488_v27 }
 0x19c   : > { %6623 = vmatmul.mubr.msk.bf16.vlgmr.msra.gmra.mrb[128].mxu0 %vm227_vm5, %v6622_v59  ;;  %6983 = vmatprep.subr.bf16.mxu1 %v7252_v4  ;;  %v4541_v29 = vand.u32 %v4530_v15, %v7488_v27 }
 0x19d   : > { %4415 = vmatpush1.bf16.msra.mxu0 %v4406_v63  ;;  %v1034_v8 = vpop.f32.mrb[24].mxu1  ;;  %v4651_v10 = vpop.permute.xlu1 %4650  ;;  %4446 = vmatprep.mubr.bf16.mxu0 %v7257_v25 }
 0x19e   : > { %v1042_v13 = vadd.f32 %v1034_v8, %v917_v52  ;;  %v6819_v16 = vpop.f32.mrb[25].mxu1  ;;  %4543 = vmatprep.subr.bf16.mxu0 %v4538_v33  ;;  %v4653_v18 = vpop.permute.xlu0 %4652 }
 0x19f   : > { %v993_v21 = vpop.f32.mrb[24].mxu0  ;;  %v1037_v22 = vpop.f32.mrb[26].mxu1  ;;  %v4658_v23 = vsel %vm4656_vm1, %v4651_v10, %v4653_v18 }
 0x1a0   : > { %v1040_v20 = vadd.f32 %v993_v21, %v915_v60  ;;  %v995_v26 = vpop.f32.mrb[25].mxu0  ;;  %v6820_v28 = vpop.f32.mrb[27].mxu1  ;;  %v4667_v34 = vand.u32 %v4658_v23, %v7488_v27 }
 0x1a1   : > { %v1041_v31 = vadd.f32 %v995_v26, %v916_v0  ;;  %v997_v17 = vpop.f32.mrb[26].mxu0  ;;  %v4649_v32 = vpop.permute.xlu1 %4648 }
 0x1a2   : > { %v998_v19 = vpop.f32.mrb[27].mxu0  ;;  %6980 = vmatmul.mubr.msk.bf16.vlgmr.msra.gmra.mrb[132].mxu1 %vm227_vm5, %v6625_v24  ;;  %v4655_v35 = vpop.permute.xlu0 %4654  ;;  %v4657_v38 = vsel %vm4656_vm1, %v4649_v32, %v4651_v10  ;;  %v6634_v17 = vld [vmem:[%s8584_s1 + $0x90] sm:$0xf] }
 0x1a3   : > { %6984 = vmatpush3.bf16.msra.mxu1 %v4541_v29  ;;  %6985 = vmatprep.mubr.msk.bf16.mxu1 %vm7253_vm0, %v7252_v4  ;;  %v4659_v36 = vsel %vm4656_vm1, %v4653_v18, %v4655_v35  ;;  %v4664_v47 = vand.u32 %v4657_v38, %v7488_v27 }
 0x1a4   : > { %6626 = vmatmul.mubr.msk.bf16.vlgmr.msra.gmra.mrb[132].mxu0 %vm227_vm5, %v6625_v24  ;;  %6989 = vmatprep.subr.bf16.mxu1 %v7252_v4  ;;  %v4670_v40 = vand.u32 %v4659_v36, %v7488_v27 }
 0x1a5   : > { %4544 = vmatpush1.bf16.msra.mxu0 %v4535_v30  ;;  %v1159_v37 = vpop.f32.mrb[28].mxu1  ;;  %v4780_v12 = vpop.permute.xlu1 %4779  ;;  %4575 = vmatprep.mubr.bf16.mxu0 %v7257_v25 }
 0x1a6   : > { %v1167_v39 = vadd.f32 %v1159_v37, %v1042_v13  ;;  %v6825_v14 = vpop.f32.mrb[29].mxu1  ;;  %4672 = vmatprep.subr.bf16.mxu0 %v4667_v34  ;;  %v4782_v6 = vpop.permute.xlu0 %4781 }
 0x1a7   : > { %v1118_v41 = vpop.f32.mrb[28].mxu0  ;;  %v1162_v9 = vpop.f32.mrb[30].mxu1  ;;  %v4787_v42 = vsel %vm4785_vm2, %v4780_v12, %v4782_v6 }
 0x1a8   : > { %v1165_v44 = vadd.f32 %v1118_v41, %v1040_v20  ;;  %v1120_v45 = vpop.f32.mrb[29].mxu0  ;;  %v6826_v46 = vpop.f32.mrb[31].mxu1  ;;  %v4796_v52 = vand.u32 %v4787_v42, %v7488_v27 }
 0x1a9   : > { %v1166_v48 = vadd.f32 %v1120_v45, %v1041_v31  ;;  %v1122_v49 = vpop.f32.mrb[30].mxu0  ;;  %v4778_v50 = vpop.permute.xlu1 %4777 }
 0x1aa   : > { %v1123_v51 = vpop.f32.mrb[31].mxu0  ;;  %6986 = vmatmul.mubr.msk.bf16.vlgmr.msra.gmra.mrb[136].mxu1 %vm227_vm5, %v6628_v43  ;;  %v4784_v53 = vpop.permute.xlu0 %4783  ;;  %v4786_v57 = vsel %vm4785_vm2, %v4778_v50, %v4780_v12  ;;  %v6637_v49 = vld [vmem:[%s8584_s1 + $0x94] sm:$0xf] }
 0x1ab   : > { %6990 = vmatpush3.bf16.msra.mxu1 %v4670_v40  ;;  %6991 = vmatprep.mubr.msk.bf16.mxu1 %vm7253_vm0, %v7252_v4  ;;  %v4788_v54 = vsel %vm4785_vm2, %v4782_v6, %v4784_v53  ;;  %v4793_v7 = vand.u32 %v4786_v57, %v7488_v27 }
 0x1ac   : > { %6629 = vmatmul.mubr.msk.bf16.vlgmr.msra.gmra.mrb[136].mxu0 %vm227_vm5, %v6628_v43  ;;  %6995 = vmatprep.subr.bf16.mxu1 %v7252_v4  ;;  %v4799_v61 = vand.u32 %v4788_v54, %v7488_v27 }
 0x1ad   : > { %4673 = vmatpush1.bf16.msra.mxu0 %v4664_v47  ;;  %v1284_v55 = vpop.f32.mrb[32].mxu1  ;;  %v4909_v56 = vpop.permute.xlu1 %4908  ;;  %4704 = vmatprep.mubr.bf16.mxu0 %v7257_v25 }
 0x1ae   : > { %v1292_v58 = vadd.f32 %v1284_v55, %v1167_v39  ;;  %v6831_v59 = vpop.f32.mrb[33].mxu1  ;;  %4801 = vmatprep.subr.bf16.mxu0 %v4796_v52  ;;  %v4911_v60 = vpop.permute.xlu0 %4910 }
 0x1af   : > { %v1243_v62 = vpop.f32.mrb[32].mxu0  ;;  %v1287_v63 = vpop.f32.mrb[34].mxu1  ;;  %v4916_v0 = vsel %vm4914_vm3, %v4909_v56, %v4911_v60 }
 0x1b0   : > { %v1290_v2 = vadd.f32 %v1243_v62, %v1165_v44  ;;  %v1245_v5 = vpop.f32.mrb[33].mxu0  ;;  %v6832_v33 = vpop.f32.mrb[35].mxu1  ;;  %v4925_v13 = vand.u32 %v4916_v0, %v7488_v27 }
 0x1b1   : > { %v1291_v15 = vadd.f32 %v1245_v5, %v1166_v48  ;;  %v1247_v8 = vpop.f32.mrb[34].mxu0  ;;  %v4907_v10 = vpop.permute.xlu1 %4906 }
 0x1b2   : > { %v1248_v11 = vpop.f32.mrb[35].mxu0  ;;  %6992 = vmatmul.mubr.msk.bf16.vlgmr.msra.gmra.mrb[140].mxu1 %vm227_vm5, %v6631_v1  ;;  %v4913_v16 = vpop.permute.xlu0 %4912  ;;  %v4915_v22 = vsel %vm4914_vm3, %v4907_v10, %v4909_v56  ;;  %v6640_v8 = vld [vmem:[%s8584_s1 + $0x98] sm:$0xf] }
 0x1b3   : > { %6996 = vmatpush3.bf16.msra.mxu1 %v4799_v61  ;;  %6997 = vmatprep.mubr.msk.bf16.mxu1 %vm7253_vm0, %v7252_v4  ;;  %v4917_v18 = vsel %vm4914_vm3, %v4911_v60, %v4913_v16  ;;  %v4922_v35 = vand.u32 %v4915_v22, %v7488_v27 }
 0x1b4   : > { %6632 = vmatmul.mubr.msk.bf16.vlgmr.msra.gmra.mrb[140].mxu0 %vm227_vm5, %v6631_v1  ;;  %7001 = vmatprep.subr.bf16.mxu1 %v7252_v4  ;;  %v4928_v26 = vand.u32 %v4917_v18, %v7488_v27 }
 0x1b5   : > { %4802 = vmatpush1.bf16.msra.mxu0 %v4793_v7  ;;  %v1409_v29 = vpop.f32.mrb[36].mxu1  ;;  %v5038_v21 = vpop.permute.xlu1 %5037  ;;  %4833 = vmatprep.mubr.bf16.mxu0 %v7257_v25 }
 0x1b6   : > { %v1417_v23 = vadd.f32 %v1409_v29, %v1292_v58  ;;  %v6837_v24 = vpop.f32.mrb[37].mxu1  ;;  %4930 = vmatprep.subr.bf16.mxu0 %v4925_v13  ;;  %v5040_v20 = vpop.permute.xlu0 %5039 }
 0x1b7   : > { %v1368_v28 = vpop.f32.mrb[36].mxu0  ;;  %v1412_v30 = vpop.f32.mrb[38].mxu1  ;;  %v5045_v31 = vsel %vm5043_vm4, %v5038_v21, %v5040_v20 }
 0x1b8   : > { %v1415_v32 = vadd.f32 %v1368_v28, %v1290_v2  ;;  %v1370_v19 = vpop.f32.mrb[37].mxu0  ;;  %v6838_v34 = vpop.f32.mrb[39].mxu1  ;;  %v5054_v39 = vand.u32 %v5045_v31, %v7488_v27 }
 0x1b9   : > { %v1416_v36 = vadd.f32 %v1370_v19, %v1291_v15  ;;  %v1372_v37 = vpop.f32.mrb[38].mxu0  ;;  %v5036_v12 = vpop.permute.xlu1 %5035 }
 0x1ba   : > { %v1373_v38 = vpop.f32.mrb[39].mxu0  ;;  %6998 = vmatmul.mubr.msk.bf16.vlgmr.msra.gmra.mrb[144].mxu1 %vm227_vm5, %v6634_v17  ;;  %v5042_v14 = vpop.permute.xlu0 %5041  ;;  %v5044_v9 = vsel %vm5043_vm4, %v5036_v12, %v5038_v21  ;;  %v6643_v37 = vld [vmem:[%s8584_s1 + $0x9c] sm:$0xf] }
 0x1bb   : > { %7002 = vmatpush3.bf16.msra.mxu1 %v4928_v26  ;;  %7003 = vmatprep.mubr.msk.bf16.mxu1 %vm7253_vm0, %v7252_v4  ;;  %v5046_v6 = vsel %vm5043_vm4, %v5040_v20, %v5042_v14  ;;  %v5051_v53 = vand.u32 %v5044_v9, %v7488_v27 }
 0x1bc   : > { %6635 = vmatmul.mubr.msk.bf16.vlgmr.msra.gmra.mrb[144].mxu0 %vm227_vm5, %v6634_v17  ;;  %7007 = vmatprep.subr.bf16.mxu1 %v7252_v4  ;;  %v5057_v45 = vand.u32 %v5046_v6, %v7488_v27 }
 0x1bd   : > { %4931 = vmatpush1.bf16.msra.mxu0 %v4922_v35  ;;  %v1534_v40 = vpop.f32.mrb[40].mxu1  ;;  %v5167_v41 = vpop.permute.xlu1 %5166  ;;  %4962 = vmatprep.mubr.bf16.mxu0 %v7257_v25 }
 0x1be   : > { %v1542_v42 = vadd.f32 %v1534_v40, %v1417_v23  ;;  %v6843_v43 = vpop.f32.mrb[41].mxu1  ;;  %5059 = vmatprep.subr.bf16.mxu0 %v5054_v39  ;;  %v5169_v44 = vpop.permute.xlu0 %5168 }
 0x1bf   : > { %v1493_v46 = vpop.f32.mrb[40].mxu0  ;;  %v1537_v47 = vpop.f32.mrb[42].mxu1  ;;  %v5174_v48 = vsel %vm5172_vm6, %v5167_v41, %v5169_v44 }
 0x1c0   : > { %v1540_v50 = vadd.f32 %v1493_v46, %v1415_v32  ;;  %v1495_v51 = vpop.f32.mrb[41].mxu0  ;;  %v6844_v52 = vpop.f32.mrb[43].mxu1  ;;  %v5183_v58 = vand.u32 %v5174_v48, %v7488_v27 }
 0x1c1   : > { %v1541_v54 = vadd.f32 %v1495_v51, %v1416_v36  ;;  %v1497_v55 = vpop.f32.mrb[42].mxu0  ;;  %v5165_v56 = vpop.permute.xlu1 %5164 }
 0x1c2   : > { %v1498_v57 = vpop.f32.mrb[43].mxu0  ;;  %7004 = vmatmul.mubr.msk.bf16.vlgmr.msra.gmra.mrb[148].mxu1 %vm227_vm5, %v6637_v49  ;;  %v5171_v59 = vpop.permute.xlu0 %5170  ;;  %v5173_v63 = vsel %vm5172_vm6, %v5165_v56, %v5167_v41 }
 0x1c3   : > { %7008 = vmatpush3.bf16.msra.mxu1 %v5057_v45  ;;  %7009 = vmatprep.mubr.msk.bf16.mxu1 %vm7253_vm0, %v7252_v4  ;;  %v5175_v60 = vsel %vm5172_vm6, %v5169_v44, %v5171_v59  ;;  %v5180_v16 = vand.u32 %v5173_v63, %v7488_v27 }
 0x1c4   : > { %6638 = vmatmul.mubr.msk.bf16.vlgmr.msra.gmra.mrb[148].mxu0 %vm227_vm5, %v6637_v49  ;;  %7013 = vmatprep.subr.bf16.mxu1 %v7252_v4  ;;  %v5186_v5 = vand.u32 %v5175_v60, %v7488_v27 }
 0x1c5   : > { %5060 = vmatpush1.bf16.msra.mxu0 %v5051_v53  ;;  %v1659_v61 = vpop.f32.mrb[44].mxu1  ;;  %v5296_v62 = vpop.permute.xlu1 %5295  ;;  %5091 = vmatprep.mubr.bf16.mxu0 %v7257_v25  ;;  %v6646_v53 = vld [vmem:[%s8584_s1 + $0xa0] sm:$0xf] }
 0x1c6   : > { %v1667_v0 = vadd.f32 %v1659_v61, %v1542_v42  ;;  %v6849_v1 = vpop.f32.mrb[45].mxu1  ;;  %5188 = vmatprep.subr.bf16.mxu0 %v5183_v58  ;;  %v5298_v2 = vpop.permute.xlu0 %5297 }
 0x1c7   : > { %v1618_v33 = vpop.f32.mrb[44].mxu0  ;;  %v1662_v7 = vpop.f32.mrb[46].mxu1  ;;  %v5303_v15 = vsel %vm5301_vm10, %v5296_v62, %v5298_v2 }
 0x1c8   : > { %v1665_v10 = vadd.f32 %v1618_v33, %v1540_v50  ;;  %v1620_v11 = vpop.f32.mrb[45].mxu0  ;;  %v6850_v13 = vpop.f32.mrb[47].mxu1  ;;  %v5312_v23 = vand.u32 %v5303_v15, %v7488_v27 }
 0x1c9   : > { %v1666_v18 = vadd.f32 %v1620_v11, %v1541_v54  ;;  %v1622_v29 = vpop.f32.mrb[46].mxu0  ;;  %v5294_v21 = vpop.permute.xlu1 %5293  ;;  %v6649_v13 = vld [vmem:[%s8584_s1 + $0xa4] sm:$0xf] }
 0x1ca   : > { %v1623_v22 = vpop.f32.mrb[47].mxu0  ;;  %7010 = vmatmul.mubr.msk.bf16.vlgmr.msra.gmra.mrb[152].mxu1 %vm227_vm5, %v6640_v8  ;;  %v5300_v24 = vpop.permute.xlu0 %5299  ;;  %v5302_v30 = vsel %vm5301_vm10, %v5294_v21, %v5296_v62 }
 0x1cb   : > { %7014 = vmatpush3.bf16.msra.mxu1 %v5186_v5  ;;  %7015 = vmatprep.mubr.msk.bf16.mxu1 %vm7253_vm0, %v7252_v4  ;;  %v5304_v20 = vsel %vm5301_vm10, %v5298_v2, %v5300_v24  ;;  %v5309_v14 = vand.u32 %v5302_v30, %v7488_v27 }
 0x1cc   : > { %6641 = vmatmul.mubr.msk.bf16.vlgmr.msra.gmra.mrb[152].mxu0 %vm227_vm5, %v6640_v8  ;;  %7019 = vmatprep.subr.bf16.mxu1 %v7252_v4  ;;  %v5315_v19 = vand.u32 %v5304_v20, %v7488_v27 }
 0x1cd   : > { %5189 = vmatpush1.bf16.msra.mxu0 %v5180_v16  ;;  %v1784_v26 = vpop.f32.mrb[48].mxu1  ;;  %v5425_v28 = vpop.permute.xlu1 %5424  ;;  %5220 = vmatprep.mubr.bf16.mxu0 %v7257_v25 }
 0x1ce   : > { %v1792_v31 = vadd.f32 %v1784_v26, %v1667_v0  ;;  %v6855_v17 = vpop.f32.mrb[49].mxu1  ;;  %5317 = vmatprep.subr.bf16.mxu0 %v5312_v23  ;;  %v5427_v32 = vpop.permute.xlu0 %5426 }
 0x1cf   : > { %v1743_v34 = vpop.f32.mrb[48].mxu0  ;;  %v1787_v35 = vpop.f32.mrb[50].mxu1  ;;  %v5432_v36 = vsel %vm5430_vm11, %v5425_v28, %v5427_v32 }
 0x1d0   : > { %v1790_v12 = vadd.f32 %v1743_v34, %v1665_v10  ;;  %v1745_v38 = vpop.f32.mrb[49].mxu0  ;;  %v6856_v39 = vpop.f32.mrb[51].mxu1  ;;  %v5441_v42 = vand.u32 %v5432_v36, %v7488_v27 }
 0x1d1   : > { %v1791_v6 = vadd.f32 %v1745_v38, %v1666_v18  ;;  %v1747_v40 = vpop.f32.mrb[50].mxu0  ;;  %v5423_v41 = vpop.permute.xlu1 %5422 }
 0x1d2   : > { %v1748_v9 = vpop.f32.mrb[51].mxu0  ;;  %7016 = vmatmul.mubr.msk.bf16.vlgmr.msra.gmra.mrb[156].mxu1 %vm227_vm5, %v6643_v37  ;;  %v5429_v43 = vpop.permute.xlu0 %5428  ;;  %v5431_v47 = vsel %vm5430_vm11, %v5423_v41, %v5425_v28 }
 0x1d3   : > { %7020 = vmatpush3.bf16.msra.mxu1 %v5315_v19  ;;  %7021 = vmatprep.mubr.msk.bf16.mxu1 %vm7253_vm0, %v7252_v4  ;;  %v5433_v44 = vsel %vm5430_vm11, %v5427_v32, %v5429_v43  ;;  %v5438_v57 = vand.u32 %v5431_v47, %v7488_v27 }
 0x1d4   : > { %6644 = vmatmul.mubr.msk.bf16.vlgmr.msra.gmra.mrb[156].mxu0 %vm227_vm5, %v6643_v37  ;;  %7025 = vmatprep.subr.bf16.mxu1 %v7252_v4  ;;  %v5444_v50 = vand.u32 %v5433_v44, %v7488_v27 }
 0x1d5   : > { %5318 = vmatpush1.bf16.msra.mxu0 %v5309_v14  ;;  %v1909_v45 = vpop.f32.mrb[52].mxu1  ;;  %v5553_v46 = vpop.permute.xlu1 %5552  ;;  %5349 = vmatprep.mubr.bf16.mxu0 %v7257_v25 }
 0x1d6   : > { %v1917_v48 = vadd.f32 %v1909_v45, %v1792_v31  ;;  %v6861_v49 = vpop.f32.mrb[53].mxu1  ;;  %5446 = vmatprep.subr.bf16.mxu0 %v5441_v42 }
 0x1d7   : > { %v1868_v51 = vpop.f32.mrb[52].mxu0  ;;  %v1912_v52 = vpop.f32.mrb[54].mxu1 }
 0x1d8   : > { %v1915_v54 = vadd.f32 %v1868_v51, %v1790_v12  ;;  %v1870_v55 = vpop.f32.mrb[53].mxu0  ;;  %v6862_v56 = vpop.f32.mrb[55].mxu1  ;;  %v6652_v12 = vld [vmem:[%s8584_s1 + $0xa8] sm:$0xf] }
 0x1d9   : > { %v1916_v58 = vadd.f32 %v1870_v55, %v1791_v6  ;;  %v1872_v59 = vpop.f32.mrb[54].mxu0  ;;  %v5551_v60 = vpop.permute.xlu1 %5550  ;;  %v6402_v56 = vld [vmem:[%s8585_s2] sm:$0xff] }
 0x1da   : > { %v1873_v61 = vpop.f32.mrb[55].mxu0  ;;  %7022 = vmatmul.mubr.msk.bf16.vlgmr.msra.gmra.mrb[160].mxu1 %vm227_vm5, %v6646_v53  ;;  %v5555_v62 = vpop.permute.xlu0 %5554  ;;  %v5556_v5 = vsel %vm694_vm7, %v5551_v60, %v5553_v46  ;;  %6405 = vperm.xlu0 %7164, %v6402_v56  }
 0x1db   : > { %7026 = vmatpush3.bf16.msra.mxu1 %v5444_v50  ;;  %v5557_v63 = vsel %vm694_vm7, %v5553_v46, %v5555_v62  ;;  %7027 = vmatprep.mubr.msk.bf16.mxu1 %vm7253_vm0, %v7252_v4  ;;  %v5568_v8 = vand.u32 %v5555_v62, %v7488_v27  ;;  %v5562_v22 = vand.u32 %v5556_v5, %v7488_v27  ;;  %vm5928_vm7 = vcmask 990208  }
 0x1dc   : > { %6647 = vmatmul.mubr.msk.bf16.vlgmr.msra.gmra.mrb[160].mxu0 %vm227_vm5, %v6646_v53  ;;  %v5565_v0 = vand.u32 %v5557_v63, %v7488_v27  ;;  %7031 = vmatprep.subr.bf16.mxu1 %v7252_v4 }
 0x1dd   : > { %5447 = vmatpush1.bf16.msra.mxu0 %v5438_v57  ;;  %v2038_v1 = vpop.f32.mrb[56].mxu1  ;;  %5478 = vmatprep.mubr.bf16.mxu0 %v7257_v25  ;;  %v5679_v2 = vpop.permute.xlu1 %5678 }
 0x1de   : > { %v2046_v33 = vadd.f32 %v2038_v1, %v1917_v48  ;;  %v6867_v7 = vpop.f32.mrb[57].mxu1  ;;  %5570 = vmatprep.subr.bf16.mxu0 %v5565_v0  ;;  %v5677_v15 = vpop.permute.xlu0 %5676  ;;  %v5692_v35 = vand.u32 %v5679_v2, %v7488_v27 }
 0x1df   : > { %v1997_v10 = vpop.f32.mrb[56].mxu0  ;;  %v2041_v11 = vpop.f32.mrb[58].mxu1  ;;  %v5681_v16 = vsel %vm819_vm8, %v5677_v15, %v5679_v2 }
 0x1e0   : > { %v2044_v18 = vadd.f32 %v1997_v10, %v1915_v54  ;;  %v1999_v29 = vpop.f32.mrb[57].mxu0  ;;  %v6868_v21 = vpop.f32.mrb[59].mxu1  ;;  %v5689_v26 = vand.u32 %v5681_v16, %v7488_v27  ;;  %v6655_v54 = vld [vmem:[%s8584_s1 + $0xac] sm:$0xf]  ;;  %v6658_v16 = vld [vmem:[%s8584_s1 + $0xb0] sm:$0xf] }
 0x1e1   : > { %v2045_v23 = vadd.f32 %v1999_v29, %v1916_v58  ;;  %v2001_v24 = vpop.f32.mrb[58].mxu0  ;;  %v5801_v30 = vpop.permute.xlu1 %5800 }
 0x1e2   : > { %v2002_v20 = vpop.f32.mrb[59].mxu0  ;;  %7028 = vmatmul.mubr.msk.bf16.vlgmr.msra.gmra.mrb[164].mxu1 %vm227_vm5, %v6649_v13  ;;  %v5675_v28 = vpop.permute.xlu0 %5674 }
 0x1e3   : > { %7032 = vmatpush3.bf16.msra.mxu1 %v5568_v8  ;;  %7033 = vmatprep.mubr.msk.bf16.mxu1 %vm7253_vm0, %v7252_v4  ;;  %v5680_v17 = vsel %vm819_vm8, %v5675_v28, %v5677_v15  ;;  %vm6053_vm8 = vcmask 982016  }
 0x1e4   : > { %6650 = vmatmul.mubr.msk.bf16.vlgmr.msra.gmra.mrb[164].mxu0 %vm227_vm5, %v6649_v13  ;;  %7037 = vmatprep.subr.bf16.mxu1 %v7252_v4  ;;  %v5686_v40 = vand.u32 %v5680_v17, %v7488_v27 }
 0x1e5   : > { %5571 = vmatpush1.bf16.msra.mxu0 %v5562_v22  ;;  %v2167_v31 = vpop.f32.mrb[60].mxu1  ;;  %5602 = vmatprep.mubr.bf16.mxu0 %v7257_v25 }
 0x1e6   : > { %v2175_v32 = vadd.f32 %v2167_v31, %v2046_v33  ;;  %v6873_v19 = vpop.f32.mrb[61].mxu1  ;;  %5694 = vmatprep.subr.bf16.mxu0 %v5689_v26  ;;  %v5803_v34 = vpop.permute.xlu0 %5802 }
 0x1e7   : > { %v2126_v36 = vpop.f32.mrb[60].mxu0  ;;  %v2170_v37 = vpop.f32.mrb[62].mxu1  ;;  %v5805_v38 = vsel %vm944_vm9, %v5801_v30, %v5803_v34  ;;  %v5816_v51 = vand.u32 %v5803_v34, %v7488_v27 }
 0x1e8   : > { %v2173_v39 = vadd.f32 %v2126_v36, %v2044_v18  ;;  %v2128_v14 = vpop.f32.mrb[61].mxu0  ;;  %v6874_v6 = vpop.f32.mrb[63].mxu1  ;;  %v5813_v44 = vand.u32 %v5805_v38, %v7488_v27  ;;  %v6661_v38 = vld [vmem:[%s8584_s1 + $0xb4] sm:$0xf] }
 0x1e9   : > { %v2174_v41 = vadd.f32 %v2128_v14, %v2045_v23  ;;  %v2130_v9 = vpop.f32.mrb[62].mxu0  ;;  %v5799_v42 = vpop.permute.xlu1 %5798 }
 0x1ea   : > { %v2131_v43 = vpop.f32.mrb[63].mxu0  ;;  %7034 = vmatmul.mubr.msk.bf16.vlgmr.msra.gmra.mrb[168].mxu1 %vm227_vm5, %v6652_v12  ;;  %v5925_v45 = vpop.permute.xlu0 %5924  ;;  %v5804_v48 = vsel %vm944_vm9, %v5799_v42, %v5801_v30  ;;  %vm6178_vm9 = vcmask 973824  }
 0x1eb   : > { %7038 = vmatpush3.bf16.msra.mxu1 %v5692_v35  ;;  %7039 = vmatprep.mubr.msk.bf16.mxu1 %vm7253_vm0, %v7252_v4  ;;  %v5810_v60 = vand.u32 %v5804_v48, %v7488_v27 }
 0x1ec   : > { %6653 = vmatmul.mubr.msk.bf16.vlgmr.msra.gmra.mrb[168].mxu0 %vm227_vm5, %v6652_v12  ;;  %7043 = vmatprep.subr.bf16.mxu1 %v7252_v4 }
 0x1ed   : > { %5695 = vmatpush1.bf16.msra.mxu0 %v5686_v40  ;;  %v2296_v46 = vpop.f32.mrb[64].mxu1  ;;  %5726 = vmatprep.mubr.bf16.mxu0 %v7257_v25  ;;  %v5927_v47 = vpop.permute.xlu1 %5926 }
 0x1ee   : > { %v2304_v49 = vadd.f32 %v2296_v46, %v2175_v32  ;;  %v6879_v50 = vpop.f32.mrb[65].mxu1  ;;  %5818 = vmatprep.subr.bf16.mxu0 %v5813_v44  ;;  %v5930_v55 = vsel %vm5928_vm7, %v5925_v45, %v5927_v47  ;;  %v5941_v10 = vand.u32 %v5927_v47, %v7488_v27 }
 0x1ef   : > { %v2255_v52 = vpop.f32.mrb[64].mxu0  ;;  %v2299_v53 = vpop.f32.mrb[66].mxu1  ;;  %v5938_v1 = vand.u32 %v5930_v55, %v7488_v27  ;;  %v6664_v55 = vld [vmem:[%s8584_s1 + $0xb8] sm:$0xf] }
 0x1f0   : > { %v2302_v57 = vadd.f32 %v2255_v52, %v2173_v39  ;;  %v2257_v58 = vpop.f32.mrb[65].mxu0  ;;  %v6880_v59 = vpop.f32.mrb[67].mxu1 }
 0x1f1   : > { %v2303_v61 = vadd.f32 %v2257_v58, %v2174_v41  ;;  %v2259_v62 = vpop.f32.mrb[66].mxu0  ;;  %v5923_v63 = vpop.permute.xlu0 %5922 }
 0x1f2   : > { %v2260_v0 = vpop.f32.mrb[67].mxu0  ;;  %7040 = vmatmul.mubr.msk.bf16.vlgmr.msra.gmra.mrb[172].mxu1 %vm227_vm5, %v6655_v54  ;;  %v6050_v2 = vpop.permute.xlu1 %6049  ;;  %v5929_v7 = vsel %vm5928_vm7, %v5923_v63, %v5925_v45 }
 0x1f3   : > { %7044 = vmatpush3.bf16.msra.mxu1 %v5816_v51  ;;  %7045 = vmatprep.mubr.msk.bf16.mxu1 %vm7253_vm0, %v7252_v4  ;;  %v5935_v23 = vand.u32 %v5929_v7, %v7488_v27 }
 0x1f4   : > { %6656 = vmatmul.mubr.msk.bf16.vlgmr.msra.gmra.mrb[172].mxu0 %vm227_vm5, %v6655_v54  ;;  %7049 = vmatprep.subr.bf16.mxu1 %v7252_v4 }
 0x1f5   : > { %5819 = vmatpush1.bf16.msra.mxu0 %v5810_v60  ;;  %v2425_v5 = vpop.f32.mrb[68].mxu1  ;;  %5850 = vmatprep.mubr.bf16.mxu0 %v7257_v25  ;;  %v6052_v33 = vpop.permute.xlu0 %6051 }
 0x1f6   : > { %v2433_v15 = vadd.f32 %v2425_v5, %v2304_v49  ;;  %v6885_v8 = vpop.f32.mrb[69].mxu1  ;;  %5943 = vmatprep.subr.bf16.mxu0 %v5938_v1  ;;  %v6055_v18 = vsel %vm6053_vm8, %v6050_v2, %v6052_v33  ;;  %v6066_v36 = vand.u32 %v6052_v33, %v7488_v27 }
 0x1f7   : > { %v2384_v11 = vpop.f32.mrb[68].mxu0  ;;  %v2428_v13 = vpop.f32.mrb[70].mxu1  ;;  %v6063_v30 = vand.u32 %v6055_v18, %v7488_v27 }
 0x1f8   : > { %v2431_v29 = vadd.f32 %v2384_v11, %v2302_v57  ;;  %v2386_v21 = vpop.f32.mrb[69].mxu0  ;;  %v6886_v22 = vpop.f32.mrb[71].mxu1  ;;  %v6667_v11 = vld [vmem:[%s8584_s1 + $0xbc] sm:$0xf] }
 0x1f9   : > { %v2432_v24 = vadd.f32 %v2386_v21, %v2303_v61  ;;  %v2388_v20 = vpop.f32.mrb[70].mxu0  ;;  %v6048_v26 = vpop.permute.xlu1 %6047 }
 0x1fa   : > { %v2389_v28 = vpop.f32.mrb[71].mxu0  ;;  %7046 = vmatmul.mubr.msk.bf16.vlgmr.msra.gmra.mrb[176].mxu1 %vm227_vm5, %v6658_v16  ;;  %v6175_v31 = vpop.permute.xlu0 %6174  ;;  %v6054_v19 = vsel %vm6053_vm8, %v6048_v26, %v6050_v2 }
 0x1fb   : > { %7050 = vmatpush3.bf16.msra.mxu1 %v5941_v10  ;;  %7051 = vmatprep.mubr.msk.bf16.mxu1 %vm7253_vm0, %v7252_v4  ;;  %v6060_v41 = vand.u32 %v6054_v19, %v7488_v27 }
 0x1fc   : > { %6659 = vmatmul.mubr.msk.bf16.vlgmr.msra.gmra.mrb[176].mxu0 %vm227_vm5, %v6658_v16  ;;  %7055 = vmatprep.subr.bf16.mxu1 %v7252_v4 }
 0x1fd   : > { %5944 = vmatpush1.bf16.msra.mxu0 %v5935_v23  ;;  %v2554_v17 = vpop.f32.mrb[72].mxu1  ;;  %5975 = vmatprep.mubr.bf16.mxu0 %v7257_v25  ;;  %v6177_v32 = vpop.permute.xlu1 %6176 }
 0x1fe   : > { %v2562_v34 = vadd.f32 %v2554_v17, %v2433_v15  ;;  %v6891_v35 = vpop.f32.mrb[73].mxu1  ;;  %6068 = vmatprep.subr.bf16.mxu0 %v6063_v30  ;;  %v6180_v39 = vsel %vm6178_vm9, %v6175_v31, %v6177_v32  ;;  %v6191_v52 = vand.u32 %v6177_v32, %v7488_v27 }
 0x1ff   : > { %v2513_v37 = vpop.f32.mrb[72].mxu0  ;;  %v2557_v12 = vpop.f32.mrb[74].mxu1  ;;  %v6188_v45 = vand.u32 %v6180_v39, %v7488_v27 }
 0x200   : > { %v2560_v14 = vadd.f32 %v2513_v37, %v2431_v29  ;;  %v2515_v6 = vpop.f32.mrb[73].mxu0  ;;  %v6892_v40 = vpop.f32.mrb[75].mxu1 }
 0x201   : > { %v2561_v9 = vadd.f32 %v2515_v6, %v2432_v24  ;;  %v2517_v42 = vpop.f32.mrb[74].mxu0  ;;  %v6173_v43 = vpop.permute.xlu0 %6172 }
 0x202   : > { %v2518_v44 = vpop.f32.mrb[75].mxu0  ;;  %7052 = vmatmul.mubr.msk.bf16.vlgmr.msra.gmra.mrb[180].mxu1 %vm227_vm5, %v6661_v38  ;;  %v6300_v46 = vpop.permute.xlu1 %6299  ;;  %v6179_v49 = vsel %vm6178_vm9, %v6173_v43, %v6175_v31 }
 0x203   : > { %7056 = vmatpush3.bf16.msra.mxu1 %v6066_v36  ;;  %7057 = vmatprep.mubr.msk.bf16.mxu1 %vm7253_vm0, %v7252_v4  ;;  %v6185_v60 = vand.u32 %v6179_v49, %v7488_v27 }
 0x204   : > { %6662 = vmatmul.mubr.msk.bf16.vlgmr.msra.gmra.mrb[180].mxu0 %vm227_vm5, %v6661_v38  ;;  %7061 = vmatprep.subr.bf16.mxu1 %v7252_v4 }
 0x205   : > { %6069 = vmatpush1.bf16.msra.mxu0 %v6060_v41  ;;  %v2683_v47 = vpop.f32.mrb[76].mxu1  ;;  %6100 = vmatprep.mubr.bf16.mxu0 %v7257_v25  ;;  %v6302_v48 = vpop.permute.xlu0 %6301 }
 0x206   : > { %v2691_v50 = vadd.f32 %v2683_v47, %v2562_v34  ;;  %v6897_v51 = vpop.f32.mrb[77].mxu1  ;;  %6193 = vmatprep.subr.bf16.mxu0 %v6188_v45  ;;  %v6305_v56 = vsel %vm6303_vm12, %v6300_v46, %v6302_v48  ;;  %v6316_v15 = vand.u32 %v6302_v48, %v7488_v27 }
 0x207   : > { %v2642_v53 = vpop.f32.mrb[76].mxu0  ;;  %v2686_v54 = vpop.f32.mrb[78].mxu1  ;;  %v6313_v0 = vand.u32 %v6305_v56, %v7488_v27 }
 0x208   : > { %v2689_v57 = vadd.f32 %v2642_v53, %v2560_v14  ;;  %v2644_v58 = vpop.f32.mrb[77].mxu0  ;;  %v6898_v59 = vpop.f32.mrb[79].mxu1 }
 0x209   : > { %v2690_v61 = vadd.f32 %v2644_v58, %v2561_v9  ;;  %v2646_v62 = vpop.f32.mrb[78].mxu0  ;;  %v6298_v1 = vpop.permute.xlu1 %6297 }
 0x20a   : > { %v2647_v63 = vpop.f32.mrb[79].mxu0  ;;  %7058 = vmatmul.mubr.msk.bf16.vlgmr.msra.gmra.mrb[184].mxu1 %vm227_vm5, %v6664_v55  ;;  %v6304_v5 = vsel %vm6303_vm12, %v6298_v1, %v6300_v46 }
 0x20b   : > { %7062 = vmatpush3.bf16.msra.mxu1 %v6191_v52  ;;  %7063 = vmatprep.mubr.msk.bf16.mxu1 %vm7253_vm0, %v7252_v4  ;;  %v6310_v29 = vand.u32 %v6304_v5, %v7488_v27  ;;  %v6670_v27 = vld [vmem:[%s8584_s1 + $0xc0] sm:$0xf] }
 0x20c   : > { %6665 = vmatmul.mubr.msk.bf16.vlgmr.msra.gmra.mrb[184].mxu0 %vm227_vm5, %v6664_v55  ;;  %7067 = vmatprep.subr.bf16.mxu1 %v7252_v4 }
 0x20d   : > { %6194 = vmatpush1.bf16.msra.mxu0 %v6185_v60  ;;  %v2812_v2 = vpop.f32.mrb[80].mxu1  ;;  %6225 = vmatprep.mubr.bf16.mxu0 %v7257_v25 }
 0x20e   : > { %v2820_v33 = vadd.f32 %v2812_v2, %v2691_v50  ;;  %v6903_v7 = vpop.f32.mrb[81].mxu1  ;;  %6318 = vmatprep.subr.bf16.mxu0 %v6313_v0 }
 0x20f   : > { %v2771_v8 = vpop.f32.mrb[80].mxu0  ;;  %v2815_v10 = vpop.f32.mrb[82].mxu1 }
 0x210   : > { %v2818_v13 = vadd.f32 %v2771_v8, %v2689_v57  ;;  %v2773_v16 = vpop.f32.mrb[81].mxu0  ;;  %v6904_v18 = vpop.f32.mrb[83].mxu1 }
 0x211   : > { %v2819_v21 = vadd.f32 %v2773_v16, %v2690_v61  ;;  %v2775_v22 = vpop.f32.mrb[82].mxu0 }
 0x212   : > { %v2776_v23 = vpop.f32.mrb[83].mxu0  ;;  %7064 = vmatmul.mubr.msk.bf16.vlgmr.msra.gmra.mrb[188].mxu1 %vm227_vm5, %v6667_v11 }
 0x213   : > { %7068 = vmatpush3.bf16.msra.mxu1 %v6316_v15  ;;  %7069 = vmatprep.mubr.msk.bf16.mxu1 %vm7253_vm0, %v7252_v4  ;;  %vm6445_vm0 = vcmask 781312  }
 0x214   : > { %6668 = vmatmul.mubr.msk.bf16.vlgmr.msra.gmra.mrb[188].mxu0 %vm227_vm5, %v6667_v11 }
 0x215   : > { %6319 = vmatpush1.bf16.msra.mxu0 %v6310_v29  ;;  %v2941_v24 = vpop.f32.mrb[84].mxu1  ;;  %6350 = vmatprep.mubr.bf16.mxu0 %v7257_v25 }
 0x216   : > { %v2949_v20 = vadd.f32 %v2941_v24, %v2820_v33  ;;  %v6909_v26 = vpop.f32.mrb[85].mxu1 }
 0x217   : > { %v2900_v28 = vpop.f32.mrb[84].mxu0  ;;  %v2944_v30 = vpop.f32.mrb[86].mxu1 }
 0x218   : > { %v2947_v31 = vadd.f32 %v2900_v28, %v2818_v13  ;;  %v2902_v17 = vpop.f32.mrb[85].mxu0  ;;  %v6910_v32 = vpop.f32.mrb[87].mxu1 }
 0x219   : > { %v2948_v19 = vadd.f32 %v2902_v17, %v2819_v21  ;;  %v2904_v34 = vpop.f32.mrb[86].mxu0 }
 0x21a   : > { %v2905_v4 = vpop.f32.mrb[87].mxu0  ;;  %7070 = vmatmul.mubr.msk.bf16.vlgmr.msra.gmra.mrb[192].mxu1 %vm227_vm5, %v6670_v27 }
 0x21c   : > { %6671 = vmatmul.mubr.msk.bf16.vlgmr.msra.gmra.mrb[192].mxu0 %vm227_vm5, %v6670_v27 }
 0x21d   : > { %v3070_v35 = vpop.f32.mrb[88].mxu1 }
 0x21e   : > { %v3078_v25 = vadd.f32 %v3070_v35, %v2949_v20  ;;  %v6915_v36 = vpop.f32.mrb[89].mxu1 }
 0x21f   : > { %v3029_v37 = vpop.f32.mrb[88].mxu0  ;;  %v3073_v12 = vpop.f32.mrb[90].mxu1 }
 0x220   : > { %v3076_v38 = vadd.f32 %v3029_v37, %v2947_v31  ;;  %v3031_v39 = vpop.f32.mrb[89].mxu0  ;;  %v6916_v14 = vpop.f32.mrb[91].mxu1 }
 0x221   : > { %v3077_v6 = vadd.f32 %v3031_v39, %v2948_v19  ;;  %v3033_v40 = vpop.f32.mrb[90].mxu0 }
 0x222   : > { %v3034_v41 = vpop.f32.mrb[91].mxu0 }
 0x225   : > { %v3199_v9 = vpop.f32.mrb[92].mxu1 }
 0x226   : > { %v3207_v42 = vadd.f32 %v3199_v9, %v3078_v25  ;;  %v6921_v43 = vpop.f32.mrb[93].mxu1 }
 0x227   : > { %v3158_v44 = vpop.f32.mrb[92].mxu0  ;;  %v3202_v45 = vpop.f32.mrb[94].mxu1 }
 0x228   : > { %v3205_v46 = vadd.f32 %v3158_v44, %v3076_v38  ;;  %v3160_v47 = vpop.f32.mrb[93].mxu0  ;;  %v6922_v48 = vpop.f32.mrb[95].mxu1 }
 0x229   : > { %v3206_v49 = vadd.f32 %v3160_v47, %v3077_v6  ;;  %v3162_v50 = vpop.f32.mrb[94].mxu0 }
 0x22a   : > { %v3163_v51 = vpop.f32.mrb[95].mxu0 }
 0x22d   : > { %v3328_v52 = vpop.f32.mrb[96].mxu1 }
 0x22e   : > { %v3336_v53 = vadd.f32 %v3328_v52, %v3207_v42  ;;  %v6927_v54 = vpop.f32.mrb[97].mxu1 }
 0x22f   : > { %v3287_v55 = vpop.f32.mrb[96].mxu0  ;;  %v3331_v56 = vpop.f32.mrb[98].mxu1 }
 0x230   : > { %v3334_v57 = vadd.f32 %v3287_v55, %v3205_v46  ;;  %v3289_v58 = vpop.f32.mrb[97].mxu0  ;;  %v6928_v59 = vpop.f32.mrb[99].mxu1 }
 0x231   : > { %v3335_v60 = vadd.f32 %v3289_v58, %v3206_v49  ;;  %v3291_v61 = vpop.f32.mrb[98].mxu0 }
 0x232   : > { %v3292_v62 = vpop.f32.mrb[99].mxu0 }
 0x235   : > { %v3457_v63 = vpop.f32.mrb[100].mxu1 }
 0x236   : > { %v3465_v0 = vadd.f32 %v3457_v63, %v3336_v53  ;;  %v6933_v1 = vpop.f32.mrb[101].mxu1 }
 0x237   : > { %v3416_v2 = vpop.f32.mrb[100].mxu0  ;;  %v3460_v5 = vpop.f32.mrb[102].mxu1 }
 0x238   : > { %v3463_v33 = vadd.f32 %v3416_v2, %v3334_v57  ;;  %v3418_v7 = vpop.f32.mrb[101].mxu0  ;;  %v6934_v15 = vpop.f32.mrb[103].mxu1 }
 0x239   : > { %v3464_v8 = vadd.f32 %v3418_v7, %v3335_v60  ;;  %v3420_v10 = vpop.f32.mrb[102].mxu0 }
 0x23a   : > { %v3421_v11 = vpop.f32.mrb[103].mxu0 }
 0x23d   : > { %v3586_v13 = vpop.f32.mrb[104].mxu1 }
 0x23e   : > { %v3594_v16 = vadd.f32 %v3586_v13, %v3465_v0  ;;  %v6939_v18 = vpop.f32.mrb[105].mxu1 }
 0x23f   : > { %v3545_v29 = vpop.f32.mrb[104].mxu0  ;;  %v3589_v21 = vpop.f32.mrb[106].mxu1 }
 0x240   : > { %v3592_v22 = vadd.f32 %v3545_v29, %v3463_v33  ;;  %v3547_v23 = vpop.f32.mrb[105].mxu0  ;;  %v6940_v24 = vpop.f32.mrb[107].mxu1 }
 0x241   : > { %v3593_v20 = vadd.f32 %v3547_v23, %v3464_v8  ;;  %v3549_v26 = vpop.f32.mrb[106].mxu0 }
 0x242   : > { %v3550_v28 = vpop.f32.mrb[107].mxu0 }
 0x245   : > { %v3715_v30 = vpop.f32.mrb[108].mxu1 }
 0x246   : > { %v3723_v27 = vadd.f32 %v3715_v30, %v3594_v16  ;;  %v6945_v31 = vpop.f32.mrb[109].mxu1 }
 0x247   : > { %v3674_v17 = vpop.f32.mrb[108].mxu0  ;;  %v3718_v32 = vpop.f32.mrb[110].mxu1 }
 0x248   : > { %v3721_v19 = vadd.f32 %v3674_v17, %v3592_v22  ;;  %v3676_v34 = vpop.f32.mrb[109].mxu0  ;;  %v6946_v4 = vpop.f32.mrb[111].mxu1 }
 0x249   : > { %v3722_v35 = vadd.f32 %v3676_v34, %v3593_v20  ;;  %v3678_v25 = vpop.f32.mrb[110].mxu0 }
 0x24a   : > { %v3679_v36 = vpop.f32.mrb[111].mxu0 }
 0x24d   : > { %v3844_v37 = vpop.f32.mrb[112].mxu1 }
 0x24e   : > { %v3852_v12 = vadd.f32 %v3844_v37, %v3723_v27  ;;  %v6951_v38 = vpop.f32.mrb[113].mxu1 }
 0x24f   : > { %v3803_v39 = vpop.f32.mrb[112].mxu0  ;;  %v3847_v14 = vpop.f32.mrb[114].mxu1 }
 0x250   : > { %v3850_v6 = vadd.f32 %v3803_v39, %v3721_v19  ;;  %v3805_v40 = vpop.f32.mrb[113].mxu0  ;;  %v6952_v41 = vpop.f32.mrb[115].mxu1 }
 0x251   : > { %v3851_v9 = vadd.f32 %v3805_v40, %v3722_v35  ;;  %v3807_v42 = vpop.f32.mrb[114].mxu0 }
 0x252   : > { %v3808_v43 = vpop.f32.mrb[115].mxu0 }
 0x255   : > { %v3973_v44 = vpop.f32.mrb[116].mxu1 }
 0x256   : > { %v3981_v45 = vadd.f32 %v3973_v44, %v3852_v12  ;;  %v6957_v46 = vpop.f32.mrb[117].mxu1 }
 0x257   : > { %v3932_v47 = vpop.f32.mrb[116].mxu0  ;;  %v3976_v48 = vpop.f32.mrb[118].mxu1 }
 0x258   : > { %v3979_v49 = vadd.f32 %v3932_v47, %v3850_v6  ;;  %v3934_v50 = vpop.f32.mrb[117].mxu0  ;;  %v6958_v51 = vpop.f32.mrb[119].mxu1 }
 0x259   : > { %v3980_v52 = vadd.f32 %v3934_v50, %v3851_v9  ;;  %v3936_v53 = vpop.f32.mrb[118].mxu0 }
 0x25a   : > { %v3937_v54 = vpop.f32.mrb[119].mxu0 }
 0x25d   : > { %v4102_v55 = vpop.f32.mrb[120].mxu1 }
 0x25e   : > { %v4110_v56 = vadd.f32 %v4102_v55, %v3981_v45  ;;  %v6963_v57 = vpop.f32.mrb[121].mxu1 }
 0x25f   : > { %v4061_v58 = vpop.f32.mrb[120].mxu0  ;;  %v4105_v59 = vpop.f32.mrb[122].mxu1 }
 0x260   : > { %v4108_v60 = vadd.f32 %v4061_v58, %v3979_v49  ;;  %v4063_v61 = vpop.f32.mrb[121].mxu0  ;;  %v6964_v62 = vpop.f32.mrb[123].mxu1 }
 0x261   : > { %v4109_v63 = vadd.f32 %v4063_v61, %v3980_v52  ;;  %v4065_v0 = vpop.f32.mrb[122].mxu0 }
 0x262   : > { %v4066_v1 = vpop.f32.mrb[123].mxu0 }
 0x265   : > { %v4231_v2 = vpop.f32.mrb[124].mxu1 }
 0x266   : > { %v4239_v5 = vadd.f32 %v4231_v2, %v4110_v56  ;;  %v6969_v33 = vpop.f32.mrb[125].mxu1 }
 0x267   : > { %v4190_v7 = vpop.f32.mrb[124].mxu0  ;;  %v4234_v15 = vpop.f32.mrb[126].mxu1 }
 0x268   : > { %v4237_v8 = vadd.f32 %v4190_v7, %v4108_v60  ;;  %v4192_v10 = vpop.f32.mrb[125].mxu0  ;;  %v6970_v11 = vpop.f32.mrb[127].mxu1 }
 0x269   : > { %v4238_v13 = vadd.f32 %v4192_v10, %v4109_v63  ;;  %v4194_v16 = vpop.f32.mrb[126].mxu0 }
 0x26a   : > { %v4195_v18 = vpop.f32.mrb[127].mxu0 }
 0x26d   : > { %v4360_v29 = vpop.f32.mrb[128].mxu1 }
 0x26e   : > { %v4368_v21 = vadd.f32 %v4360_v29, %v4239_v5  ;;  %v6975_v22 = vpop.f32.mrb[129].mxu1 }
 0x26f   : > { %v4319_v23 = vpop.f32.mrb[128].mxu0  ;;  %v4363_v24 = vpop.f32.mrb[130].mxu1 }
 0x270   : > { %v4366_v20 = vadd.f32 %v4319_v23, %v4237_v8  ;;  %v4321_v26 = vpop.f32.mrb[129].mxu0  ;;  %v6976_v28 = vpop.f32.mrb[131].mxu1 }
 0x271   : > { %v4367_v30 = vadd.f32 %v4321_v26, %v4238_v13  ;;  %v4323_v27 = vpop.f32.mrb[130].mxu0 }
 0x272   : > { %v4324_v31 = vpop.f32.mrb[131].mxu0 }
 0x275   : > { %v4489_v17 = vpop.f32.mrb[132].mxu1 }
 0x276   : > { %v4497_v32 = vadd.f32 %v4489_v17, %v4368_v21  ;;  %v6981_v19 = vpop.f32.mrb[133].mxu1 }
 0x277   : > { %v4448_v34 = vpop.f32.mrb[132].mxu0  ;;  %v4492_v4 = vpop.f32.mrb[134].mxu1 }
 0x278   : > { %v4495_v35 = vadd.f32 %v4448_v34, %v4366_v20  ;;  %v4450_v25 = vpop.f32.mrb[133].mxu0  ;;  %v6982_v36 = vpop.f32.mrb[135].mxu1 }
 0x279   : > { %v4496_v37 = vadd.f32 %v4450_v25, %v4367_v30  ;;  %v4452_v12 = vpop.f32.mrb[134].mxu0 }
 0x27a   : > { %v4453_v38 = vpop.f32.mrb[135].mxu0 }
 0x27d   : > { %v4618_v39 = vpop.f32.mrb[136].mxu1 }
 0x27e   : > { %v4626_v14 = vadd.f32 %v4618_v39, %v4497_v32  ;;  %v6987_v6 = vpop.f32.mrb[137].mxu1 }
 0x27f   : > { %v4577_v40 = vpop.f32.mrb[136].mxu0  ;;  %v4621_v41 = vpop.f32.mrb[138].mxu1 }
 0x280   : > { %v4624_v9 = vadd.f32 %v4577_v40, %v4495_v35  ;;  %v4579_v42 = vpop.f32.mrb[137].mxu0  ;;  %v6988_v43 = vpop.f32.mrb[139].mxu1 }
 0x281   : > { %v4625_v44 = vadd.f32 %v4579_v42, %v4496_v37  ;;  %v4581_v45 = vpop.f32.mrb[138].mxu0 }
 0x282   : > { %v4582_v46 = vpop.f32.mrb[139].mxu0 }
 0x285   : > { %v4747_v47 = vpop.f32.mrb[140].mxu1 }
 0x286   : > { %v4755_v48 = vadd.f32 %v4747_v47, %v4626_v14  ;;  %v6993_v49 = vpop.f32.mrb[141].mxu1 }
 0x287   : > { %v4706_v50 = vpop.f32.mrb[140].mxu0  ;;  %v4750_v51 = vpop.f32.mrb[142].mxu1 }
 0x288   : > { %v4753_v52 = vadd.f32 %v4706_v50, %v4624_v9  ;;  %v4708_v53 = vpop.f32.mrb[141].mxu0  ;;  %v6994_v54 = vpop.f32.mrb[143].mxu1 }
 0x289   : > { %v4754_v55 = vadd.f32 %v4708_v53, %v4625_v44  ;;  %v4710_v56 = vpop.f32.mrb[142].mxu0 }
 0x28a   : > { %v4711_v57 = vpop.f32.mrb[143].mxu0 }
 0x28d   : > { %v4876_v58 = vpop.f32.mrb[144].mxu1 }
 0x28e   : > { %v4884_v59 = vadd.f32 %v4876_v58, %v4755_v48  ;;  %v6999_v60 = vpop.f32.mrb[145].mxu1 }
 0x28f   : > { %v4835_v61 = vpop.f32.mrb[144].mxu0  ;;  %v4879_v62 = vpop.f32.mrb[146].mxu1 }
 0x290   : > { %v4882_v63 = vadd.f32 %v4835_v61, %v4753_v52  ;;  %v4837_v0 = vpop.f32.mrb[145].mxu0  ;;  %v7000_v1 = vpop.f32.mrb[147].mxu1 }
 0x291   : > { %v4883_v2 = vadd.f32 %v4837_v0, %v4754_v55  ;;  %v4839_v5 = vpop.f32.mrb[146].mxu0 }
 0x292   : > { %v4840_v33 = vpop.f32.mrb[147].mxu0 }
 0x295   : > { %v5005_v7 = vpop.f32.mrb[148].mxu1 }
 0x296   : > { %v5013_v15 = vadd.f32 %v5005_v7, %v4884_v59  ;;  %v7005_v8 = vpop.f32.mrb[149].mxu1 }
 0x297   : > { %v4964_v10 = vpop.f32.mrb[148].mxu0  ;;  %v5008_v11 = vpop.f32.mrb[150].mxu1 }
 0x298   : > { %v5011_v13 = vadd.f32 %v4964_v10, %v4882_v63  ;;  %v4966_v16 = vpop.f32.mrb[149].mxu0  ;;  %v7006_v18 = vpop.f32.mrb[151].mxu1 }
 0x299   : > { %v5012_v29 = vadd.f32 %v4966_v16, %v4883_v2  ;;  %v4968_v21 = vpop.f32.mrb[150].mxu0 }
 0x29a   : > { %v4969_v22 = vpop.f32.mrb[151].mxu0 }
 0x29d   : > { %v5134_v23 = vpop.f32.mrb[152].mxu1 }
 0x29e   : > { %v5142_v24 = vadd.f32 %v5134_v23, %v5013_v15  ;;  %v7011_v20 = vpop.f32.mrb[153].mxu1 }
 0x29f   : > { %v5093_v26 = vpop.f32.mrb[152].mxu0  ;;  %v5137_v28 = vpop.f32.mrb[154].mxu1 }
 0x2a0   : > { %v5140_v30 = vadd.f32 %v5093_v26, %v5011_v13  ;;  %v5095_v27 = vpop.f32.mrb[153].mxu0  ;;  %v7012_v31 = vpop.f32.mrb[155].mxu1 }
 0x2a1   : > { %v5141_v17 = vadd.f32 %v5095_v27, %v5012_v29  ;;  %v5097_v32 = vpop.f32.mrb[154].mxu0 }
 0x2a2   : > { %v5098_v19 = vpop.f32.mrb[155].mxu0 }
 0x2a5   : > { %v5263_v34 = vpop.f32.mrb[156].mxu1 }
 0x2a6   : > { %v5271_v4 = vadd.f32 %v5263_v34, %v5142_v24  ;;  %v7017_v35 = vpop.f32.mrb[157].mxu1 }
 0x2a7   : > { %v5222_v25 = vpop.f32.mrb[156].mxu0  ;;  %v5266_v36 = vpop.f32.mrb[158].mxu1 }
 0x2a8   : > { %v5269_v37 = vadd.f32 %v5222_v25, %v5140_v30  ;;  %v5224_v12 = vpop.f32.mrb[157].mxu0  ;;  %v7018_v38 = vpop.f32.mrb[159].mxu1 }
 0x2a9   : > { %v5270_v39 = vadd.f32 %v5224_v12, %v5141_v17  ;;  %v5226_v14 = vpop.f32.mrb[158].mxu0 }
 0x2aa   : > { %v5227_v6 = vpop.f32.mrb[159].mxu0 }
 0x2ad   : > { %v5392_v40 = vpop.f32.mrb[160].mxu1 }
 0x2ae   : > { %v5400_v41 = vadd.f32 %v5392_v40, %v5271_v4  ;;  %v7023_v9 = vpop.f32.mrb[161].mxu1 }
 0x2af   : > { %v5351_v42 = vpop.f32.mrb[160].mxu0  ;;  %v5395_v43 = vpop.f32.mrb[162].mxu1 }
 0x2b0   : > { %v5398_v44 = vadd.f32 %v5351_v42, %v5269_v37  ;;  %v5353_v45 = vpop.f32.mrb[161].mxu0  ;;  %v7024_v46 = vpop.f32.mrb[163].mxu1 }
 0x2b1   : > { %v5399_v47 = vadd.f32 %v5353_v45, %v5270_v39  ;;  %v5355_v48 = vpop.f32.mrb[162].mxu0 }
 0x2b2   : > { %v5356_v49 = vpop.f32.mrb[163].mxu0 }
 0x2b5   : > { %v5521_v50 = vpop.f32.mrb[164].mxu1 }
 0x2b6   : > { %v5529_v51 = vadd.f32 %v5521_v50, %v5400_v41  ;;  %v7029_v52 = vpop.f32.mrb[165].mxu1 }
 0x2b7   : > { %v5480_v53 = vpop.f32.mrb[164].mxu0  ;;  %v5524_v54 = vpop.f32.mrb[166].mxu1 }
 0x2b8   : > { %v5527_v55 = vadd.f32 %v5480_v53, %v5398_v44  ;;  %v5482_v56 = vpop.f32.mrb[165].mxu0  ;;  %v7030_v57 = vpop.f32.mrb[167].mxu1 }
 0x2b9   : > { %v5528_v58 = vadd.f32 %v5482_v56, %v5399_v47  ;;  %v5484_v59 = vpop.f32.mrb[166].mxu0 }
 0x2ba   : > { %v5485_v60 = vpop.f32.mrb[167].mxu0 }
 0x2bd   : > { %v5645_v61 = vpop.f32.mrb[168].mxu1 }
 0x2be   : > { %v5653_v62 = vadd.f32 %v5645_v61, %v5529_v51  ;;  %v7035_v63 = vpop.f32.mrb[169].mxu1 }
 0x2bf   : > { %v5604_v0 = vpop.f32.mrb[168].mxu0  ;;  %v5648_v1 = vpop.f32.mrb[170].mxu1 }
 0x2c0   : > { %v5651_v2 = vadd.f32 %v5604_v0, %v5527_v55  ;;  %v5606_v5 = vpop.f32.mrb[169].mxu0  ;;  %v7036_v33 = vpop.f32.mrb[171].mxu1  ;;  %v6423_v0 = vsub.s32 2, %v7377_v3  ;;  %v6411_v1 = vld [vmem:[%s8586_s3] sm:$0x7] }
 0x2c1   : > { %v5652_v7 = vadd.f32 %v5606_v5, %v5528_v58  ;;  %v5608_v15 = vpop.f32.mrb[170].mxu0  ;;  %v6406_v33 = vpop.permute.xlu0 %6405 }
 0x2c2   : > { %v5609_v8 = vpop.f32.mrb[171].mxu0 }
 0x2c3   : > { %v6424_v8 = vrot.slane %v6411_v1, %v6423_v0 }
 0x2c5   : > { %v5769_v10 = vpop.f32.mrb[172].mxu1 }
 0x2c6   : > { %v5777_v11 = vadd.f32 %v5769_v10, %v5653_v62  ;;  %v7041_v13 = vpop.f32.mrb[173].mxu1 }
 0x2c7   : > { %v5728_v16 = vpop.f32.mrb[172].mxu0  ;;  %v5772_v18 = vpop.f32.mrb[174].mxu1 }
 0x2c8   : > { %v5775_v29 = vadd.f32 %v5728_v16, %v5651_v2  ;;  %v5730_v21 = vpop.f32.mrb[173].mxu0  ;;  %v7042_v22 = vpop.f32.mrb[175].mxu1  ;;  %v6415_v2 = vsub.s32 0, %v7377_v3 }
 0x2c9   : > { %v5776_v23 = vadd.f32 %v5730_v21, %v5652_v7  ;;  %v5732_v24 = vpop.f32.mrb[174].mxu0  ;;  %v6419_v7 = vsub.s32 1, %v7377_v3 }
 0x2ca   : > { %v5733_v20 = vpop.f32.mrb[175].mxu0  ;;  %v6416_v18 = vrot.slane %v6411_v1, %v6415_v2 }
 0x2cb   : > { %v6420_v24 = vrot.slane %v6411_v1, %v6419_v7 }
 0x2cd   : > { %v5893_v26 = vpop.f32.mrb[176].mxu1 }
 0x2ce   : > { %v5901_v28 = vadd.f32 %v5893_v26, %v5777_v11  ;;  %v7047_v30 = vpop.f32.mrb[177].mxu1 }
 0x2cf   : > { %v5852_v27 = vpop.f32.mrb[176].mxu0  ;;  %v5896_v31 = vpop.f32.mrb[178].mxu1 }
 0x2d0   : > { %v5899_v17 = vadd.f32 %v5852_v27, %v5775_v29  ;;  %v5854_v32 = vpop.f32.mrb[177].mxu0  ;;  %v7048_v19 = vpop.f32.mrb[179].mxu1 }
 0x2d1   : > { %v5900_v34 = vadd.f32 %v5854_v32, %v5776_v23  ;;  %v5856_v4 = vpop.f32.mrb[178].mxu0 }
 0x2d2   : > { %v5857_v35 = vpop.f32.mrb[179].mxu0 }
 0x2d5   : > { %v6018_v25 = vpop.f32.mrb[180].mxu1 }
 0x2d6   : > { %v6026_v36 = vadd.f32 %v6018_v25, %v5901_v28  ;;  %v7053_v37 = vpop.f32.mrb[181].mxu1 }
 0x2d7   : > { %v5977_v12 = vpop.f32.mrb[180].mxu0  ;;  %v6021_v38 = vpop.f32.mrb[182].mxu1 }
 0x2d8   : > { %v6024_v39 = vadd.f32 %v5977_v12, %v5899_v17  ;;  %v5979_v14 = vpop.f32.mrb[181].mxu0  ;;  %v7054_v6 = vpop.f32.mrb[183].mxu1 }
 0x2d9   : > { %v6025_v40 = vadd.f32 %v5979_v14, %v5900_v34  ;;  %v5981_v41 = vpop.f32.mrb[182].mxu0 }
 0x2da   : > { %v5982_v9 = vpop.f32.mrb[183].mxu0 }
 0x2dd   : > { %v6143_v42 = vpop.f32.mrb[184].mxu1 }
 0x2de   : > { %v6151_v43 = vadd.f32 %v6143_v42, %v6026_v36  ;;  %v7059_v44 = vpop.f32.mrb[185].mxu1 }
 0x2df   : > { %v6102_v45 = vpop.f32.mrb[184].mxu0  ;;  %v6146_v46 = vpop.f32.mrb[186].mxu1 }
 0x2e0   : > { %v6149_v47 = vadd.f32 %v6102_v45, %v6024_v39  ;;  %v6104_v48 = vpop.f32.mrb[185].mxu0  ;;  %v7060_v49 = vpop.f32.mrb[187].mxu1 }
 0x2e1   : > { %v6150_v50 = vadd.f32 %v6104_v48, %v6025_v40  ;;  %v6106_v51 = vpop.f32.mrb[186].mxu0 }
 0x2e2   : > { %v6107_v52 = vpop.f32.mrb[187].mxu0 }
 0x2e5   : > { %v6268_v53 = vpop.f32.mrb[188].mxu1 }
 0x2e6   : > { %v6276_v54 = vadd.f32 %v6268_v53, %v6151_v43  ;;  %v7065_v55 = vpop.f32.mrb[189].mxu1 }
 0x2e7   : > { %v6227_v56 = vpop.f32.mrb[188].mxu0  ;;  %v6271_v57 = vpop.f32.mrb[190].mxu1 }
 0x2e8   : > { %v6274_v58 = vadd.f32 %v6227_v56, %v6149_v47  ;;  %v6229_v59 = vpop.f32.mrb[189].mxu0  ;;  %v7066_v60 = vpop.f32.mrb[191].mxu1 }
 0x2e9   : > { %v6275_v61 = vadd.f32 %v6229_v59, %v6150_v50  ;;  %v6231_v62 = vpop.f32.mrb[190].mxu0 }
 0x2ea   : > { %v6232_v63 = vpop.f32.mrb[191].mxu0 }
 0x2ed   : > { %v6393_v5 = vpop.f32.mrb[192].mxu1 }
 0x2ee   : > { %v6401_v15 = vadd.f32 %v6393_v5, %v6276_v54  ;;  %v7071_v10 = vpop.f32.mrb[193].mxu1 }
 0x2ef   : > { %v6352_v11 = vpop.f32.mrb[192].mxu0  ;;  %v6396_v13 = vpop.f32.mrb[194].mxu1 }
 0x2f0   : > { %v6399_v16 = vadd.f32 %v6352_v11, %v6274_v58  ;;  %v6410_v29 = vadd.f32 %v6406_v33, %v6401_v15  ;;  %v6354_v21 = vpop.f32.mrb[193].mxu0  ;;  %v7072_v22 = vpop.f32.mrb[195].mxu1 }
 0x2f1   : > { %v6400_v23 = vadd.f32 %v6354_v21, %v6275_v61  ;;  %v6356_v20 = vpop.f32.mrb[194].mxu0 }
 0x2f2   : > { %v6408_v26 = vadd.f32 %v6406_v33, %v6399_v16  ;;  %v6430_v28 = vmul.f32 %v6424_v8, %v6410_v29  ;;  %v6357_v3 = vpop.f32.mrb[195].mxu0 }
 0x2f3   : > { %v6409_v30 = vadd.f32 %v6406_v33, %v6400_v23 }
 0x2f4   : > { %v6428_v27 = vmul.f32 %v6416_v18, %v6408_v26  ;;  %v6680_v31 = vpack.c.bf16 %v6430_v28, %v6430_v28 }
 0x2f5   : > { %v6429_v17 = vmul.f32 %v6420_v24, %v6409_v30 }
 0x2f6   : > { %6446 = vst.msk [vmem:[%s190_s11 + $0x8] sm:$0xf] %vm6445_vm0, %v6680_v31 }
 0x2f7   : > { %v6679_v32 = vpack.c.bf16 %v6429_v17, %v6428_v27 }
 0x2f9   : > { %6444 = vst [vmem:[%s190_s11] sm:$0xff] %v6679_v32 }
 0x2fa   : > { %7200 = shalt.err (!%p7197_p3)
}
 0x2fb   : > { %s7201_s28 = scalar_lea.hbm %s8539_s5, 192  ;;  %s7205_s6 = scalar_lea.hbm %s8587_s4, 384 }
 0x2fc   : > { %p7202_p4 = scmp.ne.s32.totalorder %s8539_s5, %s7201_s28  ;;  %p7206_p9 = scmp.lt.u32.totalorder %s8539_s5, %s8587_s4 }
 0x2fd   : > { %p7207_p10 = scmp.lt.u32.totalorder %s7205_s6, %s7201_s28  ;;  %p7209_p12 = scmp.lt.u32.totalorder %s7201_s28, %s8539_s5 }
 0x2fe   : > { %p7203_p7 = pnand %p7202_p4, %p7365_p5 }
 0x2ff   : > { %p7208_p11 = por %p7207_p10, %p7206_p9 }
 0x300   : > { %p7204_p8 = pneg %p7203_p7 }
 0x301   : > { %p7210_p13 = por %p7209_p12, %p7208_p11 }
 0x303   : > { %p7211_p0 = pnand %p7210_p13, %p7204_p8 }
 0x305   : > { %7214 = shalt.err (!%p7211_p0)
}
 0x306   : > { %7075 = dma.vmem_to_hbm [thread:$0]  (%p7365_p5), %s8541_s12, 192, %s8539_s5, %s6448_s19  }
 0x307 PF: > { %p7081_p1 = scmp.ge.s32.totalorder %s7249_s18, 2  ;;  %s6474_s10 = sand.u32 1, %s7237_s15  }
 0x308   : > { %s6475_s8 = scalar_lea.sflag [#allocation3], %s6474_s10 }
 0x309   : > { %p7078_p2 = pnand %p7081_p1, %p7369_p6 }
 0x30b   : > { %7232 = dma.done.wait (!%p7078_p2), %s6475_s8, 192  }
 0x30c   : > { %7234 = vsyncadd (!%p7078_p2), %s6475_s8, 4294967104  ;;  %p14_p3 = scmp.ge.s32.totalorder %s7352_s21, 4   ;;  %s8590_s15 = smov %s7241_s16 }
 0x30d   : > { %s8591_s16 = smov %s7245_s17  ;;  %s8592_s17 = smov %s7363_s24 }
 0x30e   : > { %s8593_s18 = smov %s7352_s21  ;;  %16 = sbr.rel (!%p14_p3) target bundleno = 3 (0x3), region = 119 }
 0x315   :  { %6480 = vsyncpa [#allocation3], 1 }
 0x316   :  { %6482 = vsyncpa [#allocation3 + $0x1], 1 }

</bundles_post_ra>
